<compile_context>
chip_gen: v5e
topology: v5e:2x2
jax: 0.10.0
libtpu: 0.0.40
codegen_flags: <defaults>
</compile_context>

<pallas_src>
import numpy as np
import jax
import jax.numpy as jnp
from jax.experimental import pallas as pl
from jax.experimental.pallas import tpu as pltpu


def _round_up(x: int, m: int) -> int:
    return ((x + m - 1) // m) * m


# --------------------------------------------------------------------------- kernel
def _contrastive_loss_kernel(scale_ref, a_row_ref, b_row_ref, a_col_ref, b_col_ref,
                             madd_ref, mrow_ref, out_ref, l_ab, l_ba):
    """Flash-style streamed (TB_row, TB_col) logits with a fixed log-sum-exp shift.

    Inputs are pre-L2-normalized bf16 embeddings, so every logit is bounded above by
    logit_scale; the generic online-max tracking is unnecessary and the accumulator
    is simply l += sum(exp(logits - scale), lanes).
    """
    k = pl.program_id(1)
    nk = pl.num_programs(1)
    scale = scale_ref[0, 0]                       # f32 scalar from SMEM

    @pl.when(k == 0)
    def _():
        l_ab[...] = jnp.zeros_like(l_ab)
        l_ba[...] = jnp.zeros_like(l_ba)

    a_row = a_row_ref[...]                        # (TR, D) bf16 unit-norm, row block i
    b_row = b_row_ref[...]                        # (TR, D)
    a_col = a_col_ref[...]                        # (TC, D) bf16 unit-norm, col block k
    b_col = b_col_ref[...]                        # (TC, D)
    madd = madd_ref[...]                          # (1, TC) f32 additive mask {0, -1e30}

    dn = (((1,), (1,)), ((), ()))                 # x @ y^T (contract feature dims)

    # ---- a -> b direction: rows = a block i, columns = b block k ------------------
    logits_ab = scale * jax.lax.dot_general(
        a_row, b_col, dn, preferred_element_type=jnp.float32) + madd       # (TR, TC)
    l_ab[...] += jnp.sum(jnp.exp(logits_ab - scale), axis=-1, keepdims=True)

    # ---- b -> a direction: rows = b block i, columns = a block k ------------------
    logits_ba = scale * jax.lax.dot_general(
        b_row, a_col, dn, preferred_element_type=jnp.float32) + madd       # (TR, TC)
    l_ba[...] += jnp.sum(jnp.exp(logits_ba - scale), axis=-1, keepdims=True)

    # ---- finalize this row block ---------------------------------------------------
    @pl.when(k == nk - 1)
    def _():
        # Diagonal logits directly from the row tiles: no eye matrix, no N^2 temps.
        diag = scale * jnp.sum(a_row.astype(jnp.float32) * b_row.astype(jnp.float32),
                               axis=-1, keepdims=True)                     # (TR, 1)
        tiny = jnp.float32(1e-30)          # guards log(0) when a row sees no valid col
        lse_ab = scale + jnp.log(jnp.maximum(l_ab[...], tiny))
        lse_ba = scale + jnp.log(jnp.maximum(l_ba[...], tiny))
        per_row = 0.5 * (lse_ab + lse_ba) - diag                           # (TR, 1)
        mrow = mrow_ref[...]                                               # (1, TR) {0,1}
        # Masked row reduction without a (TR,1) mask input: (1,TR) @ (TR,1) -> (1,1).
        partial = jax.lax.dot_general(mrow, per_row, (((1,), (0,)), ((), ())),
                                      preferred_element_type=jnp.float32)
        out_ref[...] = jnp.broadcast_to(partial, (8, 128))


# --------------------------------------------------------------------------- wrapper
def _masked_infonce_jax(a_n, b_n, mask_f, scale):
    """Fused XLA path for tiny batches (same semantics as the kernel)."""
    madd = jnp.where(mask_f > 0, jnp.float32(0.0), jnp.float32(-1e30))
    logits = scale * (a_n @ b_n.T)
    lse_ab = jax.scipy.special.logsumexp(logits + madd[None, :], axis=-1)
    lse_ba = jax.scipy.special.logsumexp(logits.T + madd[None, :], axis=-1)
    per_row = 0.5 * (lse_ab + lse_ba) - jnp.diagonal(logits)
    return jnp.sum(per_row * mask_f)


def contrastive_loss_pallas(a_embed, b_embed, mask, logit_scale):
    """a_embed, b_embed: (N, D); mask: (N,) bool; logit_scale: scalar. Returns scalar."""
    n, d = a_embed.shape
    scale = jnp.asarray(logit_scale, jnp.float32)

    # L2-normalize once, in f32, in the wrapper (single fused XLA pass).
    def l2norm(x):
        x = x.astype(jnp.float32)
        return x * jax.lax.rsqrt(jnp.sum(x * x, axis=-1, keepdims=True) + 1e-12)

    a_n = l2norm(a_embed)
    b_n = l2norm(b_embed)
    mask_f = mask.astype(jnp.float32)
    valid = jnp.sum(mask_f)

    # Tiny batches: padding N to MXU tiles wastes >10x compute and launch/grid
    # overhead dominates -- use the fused XLA path instead of Pallas.
    if n <= 256:
        total = _masked_infonce_jax(a_n, b_n, mask_f, scale)
        return jnp.where(valid > 0, total / jnp.maximum(valid, 1.0), jnp.float32(0.0))

    d_pad = _round_up(max(d, 128), 128)

    # Column tile stays MXU-sized; row tile grows so each streamed column tile is
    # reused against more rows.  Cap double-buffered bf16 input bytes at ~36 MiB so
    # the kernel fits v7x's 64 MiB VMEM with headroom.
    tb_col = 256
    tb_row = 512 if n >= 1024 else 256
    while tb_row > 256 and 8 * (tb_row + tb_col) * d_pad > 36 * 1024 * 1024:
        tb_row //= 2
    n_pad = _round_up(n, max(tb_row, tb_col))       # tb_row is a multiple of tb_col

    # bf16 inputs halve exposed DMA and VMEM; matmuls still accumulate in f32.
    a_p = jnp.pad(a_n, ((0, n_pad - n), (0, d_pad - d))).astype(jnp.bfloat16)
    b_p = jnp.pad(b_n, ((0, n_pad - n), (0, d_pad - d))).astype(jnp.bfloat16)
    m_p = jnp.pad(mask_f.reshape(1, n), ((0, 0), (0, n_pad - n)))          # (1, n_pad)
    m_add = jnp.where(m_p > 0, jnp.float32(0.0), jnp.float32(-1e30))       # additive col mask
    scale_2d = scale.reshape(1, 1)

    g_rows = n_pad // tb_row                        # "parallel" (megacore) axis
    g_cols = n_pad // tb_col                        # online-LSE reduction axis

    # VMEM limit from actual tile bytes + headroom; never the full physical VMEM.
    inputs_bytes = 8 * (tb_row + tb_col) * d_pad            # 2 streams * bf16 * 2 bufs
    work_bytes = 4 * (2 * tb_row * tb_col + 8 * tb_row) + (1 << 20)
    vmem_limit = int(min(inputs_bytes + work_bytes + (8 << 20), 48 * 1024 * 1024))

    partials = pl.pallas_call(
        _contrastive_loss_kernel,
        out_shape=jax.ShapeDtypeStruct((g_rows * 8, 128), jnp.float32),
        grid=(g_rows, g_cols),
        in_specs=[
            pl.BlockSpec((1, 1), lambda i, k: (0, 0),
                         memory_space=pltpu.MemorySpace.SMEM),             # logit_scale
            pl.BlockSpec((tb_row, d_pad), lambda i, k: (i, 0)),            # a rows (blk i)
            pl.BlockSpec((tb_row, d_pad), lambda i, k: (i, 0)),            # b rows (blk i)
            pl.BlockSpec((tb_col, d_pad), lambda i, k: (k, 0)),            # a cols (blk k)
            pl.BlockSpec((tb_col, d_pad), lambda i, k: (k, 0)),            # b cols (blk k)
            pl.BlockSpec((1, tb_col), lambda i, k: (0, k)),                # additive col mask
            pl.BlockSpec((1, tb_row), lambda i, k: (0, i)),                # row mask {0,1}
        ],
        out_specs=pl.BlockSpec((8, 128), lambda i, k: (i, 0)),
        scratch_shapes=[pltpu.VMEM((tb_row, 1), jnp.float32)] * 2,         # l_ab, l_ba
        compiler_params=pltpu.CompilerParams(
            dimension_semantics=("parallel", "arbitrary"),
            vmem_limit_bytes=vmem_limit),
    )(scale_2d, a_p, b_p, a_p, b_p, m_add, m_p)

    total = jnp.sum(partials[::8, 0])
    # mask.sum() == 0  ->  0.0 loss (matches the reference forward()).
    return jnp.where(valid > 0, total / jnp.maximum(valid, 1.0), jnp.float32(0.0))


# ----------------------------------------------------------------------------- module
class ContrastiveLoss:
    """JAX mirror of the PyTorch ContrastiveLoss module's forward()."""

    def __init__(self, base_modality: str):
        self.base_modality = base_modality
        # nn.Parameter((torch.ones([]) * np.log(1/0.07)).exp()) -> exp(log(1/0.07)) = 1/0.07
        self.logit_scale = jnp.exp(jnp.ones([], jnp.float32) * np.log(1.0 / 0.07))

    def __call__(self, data_dict):
        output_embeddings = data_dict['embeddings']
        loss_dict = {}
        for modality in output_embeddings.keys():
            if modality == self.base_modality:
                continue
            mask = jnp.logical_and(data_dict['masks'][self.base_modality],
                                   data_dict['masks'][modality])
            a_embed = output_embeddings[self.base_modality]
            b_embed = output_embeddings[modality]
            loss = contrastive_loss_pallas(a_embed, b_embed, mask, self.logit_scale)
            loss_dict[f'loss_{modality}'] = loss
        total_loss = sum(loss_dict.values())
        loss_dict['total_loss'] = total_loss
        return total_loss, loss_dict


if __name__ == "__main__":
    key = jax.random.PRNGKey(0)
    # N > 256 so the tiled Pallas path (bf16 streams, fixed-shift LSE) is exercised.
    N, D = 384, 64
    k1, k2, k3, k4 = jax.random.split(key, 4)

    embeddings = {
        "image": jax.random.normal(k1, (N, D), jnp.float32),
        "text":  jax.random.normal(k2, (N, D), jnp.float32),
        "audio": jax.random.normal(k3, (N, D), jnp.float32),
    }
    masks = {
        "image": jax.random.bernoulli(k4, 0.9, (N,)),
        "text":  jnp.ones((N,), dtype=bool),
        "audio": jnp.zeros((N,), dtype=bool),   # exercises the mask.sum()==0 branch
    }
    data_dict = {"embeddings": embeddings, "masks": masks}

    loss_fn = ContrastiveLoss(base_modality="image")
    total_loss, loss_dict = loss_fn(data_dict)
    jax.block_until_ready(total_loss)

    # Pure-JAX f32 reference (bf16 matmuls in the kernel -> loose tolerance).
    def reference(a, b, mask, scale):
        a = a / jnp.linalg.norm(a, axis=-1, keepdims=True)
        b = b / jnp.linalg.norm(b, axis=-1, keepdims=True)
        m = mask.astype(jnp.float32)
        madd = jnp.where(m > 0, jnp.float32(0.0), jnp.float32(-1e30))
        logits = scale * (a @ b.T)
        lse_ab = jax.scipy.special.logsumexp(logits + madd[None, :], axis=-1)
        lse_ba = jax.scipy.special.logsumexp(logits.T + madd[None, :], axis=-1)
        per_row = 0.5 * (lse_ab + lse_ba) - jnp.diagonal(logits)
        tot = jnp.sum(per_row * m)
        v = jnp.sum(m)
        return jnp.where(v > 0, tot / jnp.maximum(v, 1.0), jnp.float32(0.0))

    ref_text = reference(embeddings["image"], embeddings["text"],
                         jnp.logical_and(masks["image"], masks["text"]),
                         float(loss_fn.logit_scale))

    assert jnp.isfinite(total_loss)
    assert float(loss_dict["loss_audio"]) == 0.0                    # empty-mask branch
    assert abs(float(loss_dict["loss_text"]) - float(ref_text)) \
        < 0.1 * max(1.0, abs(float(ref_text)))
    print("KERNEL_OK")
</pallas_src>

<mosaic_0001>
module attributes {stable_mosaic.version = 11 : i64} {
  func.func @_contrastive_loss_kernel(%arg0: i32, %arg1: i32, %arg2: memref<1x1xf32, #tpu.memory_space<smem>>, %arg3: memref<256x128xbf16, #tpu.memory_space<vmem>>, %arg4: memref<256x128xbf16, #tpu.memory_space<vmem>>, %arg5: memref<256x128xbf16, #tpu.memory_space<vmem>>, %arg6: memref<256x128xbf16, #tpu.memory_space<vmem>>, %arg7: memref<1x256xf32, #tpu.memory_space<vmem>>, %arg8: memref<1x256xf32, #tpu.memory_space<vmem>>, %arg9: memref<8x128xf32, #tpu.memory_space<vmem>>, %arg10: memref<256x1xf32, #tpu.memory_space<vmem>>, %arg11: memref<256x1xf32, #tpu.memory_space<vmem>>) attributes {dimension_semantics = [#tpu.dimension_semantics<parallel>, #tpu.dimension_semantics<arbitrary>], iteration_bounds = array<i64: 2, 2>, scalar_prefetch = 0 : i64, scratch_operands = 2 : i64, tpu.core_type = #tpu.core_type<tc>, window_params = [{transform_indices = @transform_0, window_bounds = array<i64: 1, 1>}, {transform_indices = @transform_1, window_bounds = array<i64: 256, 128>}, {transform_indices = @transform_2, window_bounds = array<i64: 256, 128>}, {transform_indices = @transform_3, window_bounds = array<i64: 256, 128>}, {transform_indices = @transform_4, window_bounds = array<i64: 256, 128>}, {transform_indices = @transform_5, window_bounds = array<i64: 1, 256>}, {transform_indices = @transform_6, window_bounds = array<i64: 1, 256>}, {transform_indices = @transform_7, window_bounds = array<i64: 8, 128>}]} {
    %c0 = arith.constant 0 : index
    %c0_0 = arith.constant 0 : index
    %0 = memref.load %arg2[%c0, %c0_0] : memref<1x1xf32, #tpu.memory_space<smem>>
    %c0_i32 = arith.constant 0 : i32
    %1 = arith.cmpi eq, %arg1, %c0_i32 : i32
    %2 = arith.extui %1 : i1 to i32
    %c0_i32_1 = arith.constant 0 : i32
    %3 = arith.cmpi ne, %2, %c0_i32_1 : i32
    scf.if %3 {
      %cst_24 = arith.constant 0.000000e+00 : f32
      %38 = vector.broadcast %cst_24 : f32 to vector<256x1xf32>
      %c0_25 = arith.constant 0 : index
      %c0_26 = arith.constant 0 : index
      %39 = vector.load %arg10[%c0_25, %c0_26] : memref<256x1xf32, #tpu.memory_space<vmem>>, vector<256x1xf32>
      tpu.vector_store %arg10[%c0_25, %c0_26], %38 {strides = array<i32>} : memref<256x1xf32, #tpu.memory_space<vmem>>, vector<256x1xf32>,
      %cst_27 = arith.constant 0.000000e+00 : f32
      %40 = vector.broadcast %cst_27 : f32 to vector<256x1xf32>
      %c0_28 = arith.constant 0 : index
      %c0_29 = arith.constant 0 : index
      %41 = vector.load %arg11[%c0_28, %c0_29] : memref<256x1xf32, #tpu.memory_space<vmem>>, vector<256x1xf32>
      tpu.vector_store %arg11[%c0_28, %c0_29], %40 {strides = array<i32>} : memref<256x1xf32, #tpu.memory_space<vmem>>, vector<256x1xf32>,
    } else {
    }
    %c0_2 = arith.constant 0 : index
    %c0_3 = arith.constant 0 : index
    %4 = vector.load %arg3[%c0_2, %c0_3] : memref<256x128xbf16, #tpu.memory_space<vmem>>, vector<256x128xbf16>
    %c0_4 = arith.constant 0 : index
    %c0_5 = arith.constant 0 : index
    %5 = vector.load %arg4[%c0_4, %c0_5] : memref<256x128xbf16, #tpu.memory_space<vmem>>, vector<256x128xbf16>
    %c0_6 = arith.constant 0 : index
    %c0_7 = arith.constant 0 : index
    %6 = vector.load %arg5[%c0_6, %c0_7] : memref<256x128xbf16, #tpu.memory_space<vmem>>, vector<256x128xbf16>
    %c0_8 = arith.constant 0 : index
    %c0_9 = arith.constant 0 : index
    %7 = vector.load %arg6[%c0_8, %c0_9] : memref<256x128xbf16, #tpu.memory_space<vmem>>, vector<256x128xbf16>
    %c0_10 = arith.constant 0 : index
    %c0_11 = arith.constant 0 : index
    %8 = vector.load %arg7[%c0_10, %c0_11] : memref<1x256xf32, #tpu.memory_space<vmem>>, vector<1x256xf32>
    %cst = arith.constant dense<0.000000e+00> : vector<256x256xf32>
    %9 = tpu.matmul %4, %7, %cst {dimension_numbers = #tpu.dot_dimension_numbers<[1], [1], [0], [0], [0, 0, 1, 0], [], []>} : vector<256x128xbf16>, vector<256x128xbf16>, vector<256x256xf32> -> vector<256x256xf32>
    %10 = vector.broadcast %0 : f32 to vector<256x256xf32>
    %11 = arith.mulf %10, %9 : vector<256x256xf32>
    %12 = vector.broadcast %8 : vector<1x256xf32> to vector<256x256xf32>
    %13 = arith.addf %11, %12 : vector<256x256xf32>
    %c0_12 = arith.constant 0 : index
    %c0_13 = arith.constant 0 : index
    %14 = vector.load %arg10[%c0_12, %c0_13] : memref<256x1xf32, #tpu.memory_space<vmem>>, vector<256x1xf32>
    %15 = vector.broadcast %0 : f32 to vector<256x256xf32>
    %16 = arith.subf %13, %15 : vector<256x256xf32>
    %17 = math.exp %16 : vector<256x256xf32>
    %cst_14 = arith.constant dense<0.000000e+00> : vector<256xf32>
    %18 = vector.multi_reduction <add>, %17, %cst_14 [1] : vector<256x256xf32> to vector<256xf32>
    %19 = vector.shape_cast %18 : vector<256xf32> to vector<256x1xf32>
    %20 = arith.addf %14, %19 : vector<256x1xf32>
    %c0_15 = arith.constant 0 : index
    %c0_16 = arith.constant 0 : index
    %21 = vector.load %arg10[%c0_15, %c0_16] : memref<256x1xf32, #tpu.memory_space<vmem>>, vector<256x1xf32>
    tpu.vector_store %arg10[%c0_15, %c0_16], %20 {strides = array<i32>} : memref<256x1xf32, #tpu.memory_space<vmem>>, vector<256x1xf32>,
    %cst_17 = arith.constant dense<0.000000e+00> : vector<256x256xf32>
    %22 = tpu.matmul %5, %6, %cst_17 {dimension_numbers = #tpu.dot_dimension_numbers<[1], [1], [0], [0], [0, 0, 1, 0], [], []>} : vector<256x128xbf16>, vector<256x128xbf16>, vector<256x256xf32> -> vector<256x256xf32>
    %23 = vector.broadcast %0 : f32 to vector<256x256xf32>
    %24 = arith.mulf %23, %22 : vector<256x256xf32>
    %25 = vector.broadcast %8 : vector<1x256xf32> to vector<256x256xf32>
    %26 = arith.addf %24, %25 : vector<256x256xf32>
    %c0_18 = arith.constant 0 : index
    %c0_19 = arith.constant 0 : index
    %27 = vector.load %arg11[%c0_18, %c0_19] : memref<256x1xf32, #tpu.memory_space<vmem>>, vector<256x1xf32>
    %28 = vector.broadcast %0 : f32 to vector<256x256xf32>
    %29 = arith.subf %26, %28 : vector<256x256xf32>
    %30 = math.exp %29 : vector<256x256xf32>
    %cst_20 = arith.constant dense<0.000000e+00> : vector<256xf32>
    %31 = vector.multi_reduction <add>, %30, %cst_20 [1] : vector<256x256xf32> to vector<256xf32>
    %32 = vector.shape_cast %31 : vector<256xf32> to vector<256x1xf32>
    %33 = arith.addf %27, %32 : vector<256x1xf32>
    %c0_21 = arith.constant 0 : index
    %c0_22 = arith.constant 0 : index
    %34 = vector.load %arg11[%c0_21, %c0_22] : memref<256x1xf32, #tpu.memory_space<vmem>>, vector<256x1xf32>
    tpu.vector_store %arg11[%c0_21, %c0_22], %33 {strides = array<i32>} : memref<256x1xf32, #tpu.memory_space<vmem>>, vector<256x1xf32>,
    %c1_i32 = arith.constant 1 : i32
    %35 = arith.cmpi eq, %arg1, %c1_i32 : i32
    %36 = arith.extui %35 : i1 to i32
    %c0_i32_23 = arith.constant 0 : i32
    %37 = arith.cmpi ne, %36, %c0_i32_23 : i32
    scf.if %37 {
      %38 = arith.extf %4 : vector<256x128xbf16> to vector<256x128xf32>
      %39 = arith.extf %5 : vector<256x128xbf16> to vector<256x128xf32>
      %40 = arith.mulf %38, %39 : vector<256x128xf32>
      %cst_24 = arith.constant dense<0.000000e+00> : vector<256xf32>
      %41 = vector.multi_reduction <add>, %40, %cst_24 [1] : vector<256x128xf32> to vector<256xf32>
      %42 = vector.shape_cast %41 : vector<256xf32> to vector<256x1xf32>
      %43 = vector.broadcast %0 : f32 to vector<256x1xf32>
      %44 = arith.mulf %43, %42 : vector<256x1xf32>
      %c0_25 = arith.constant 0 : index
      %c0_26 = arith.constant 0 : index
      %45 = vector.load %arg10[%c0_25, %c0_26] : memref<256x1xf32, #tpu.memory_space<vmem>>, vector<256x1xf32>
      %cst_27 = arith.constant 1.000000e-30 : f32
      %46 = vector.broadcast %cst_27 : f32 to vector<256x1xf32>
      %47 = arith.maximumf %45, %46 : vector<256x1xf32>
      %48 = math.log %47 : vector<256x1xf32>
      %49 = vector.broadcast %0 : f32 to vector<256x1xf32>
      %50 = arith.addf %49, %48 : vector<256x1xf32>
      %c0_28 = arith.constant 0 : index
      %c0_29 = arith.constant 0 : index
      %51 = vector.load %arg11[%c0_28, %c0_29] : memref<256x1xf32, #tpu.memory_space<vmem>>, vector<256x1xf32>
      %cst_30 = arith.constant 1.000000e-30 : f32
      %52 = vector.broadcast %cst_30 : f32 to vector<256x1xf32>
      %53 = arith.maximumf %51, %52 : vector<256x1xf32>
      %54 = math.log %53 : vector<256x1xf32>
      %55 = vector.broadcast %0 : f32 to vector<256x1xf32>
      %56 = arith.addf %55, %54 : vector<256x1xf32>
      %57 = arith.addf %50, %56 : vector<256x1xf32>
      %cst_31 = arith.constant 5.000000e-01 : f32
      %58 = vector.broadcast %cst_31 : f32 to vector<256x1xf32>
      %59 = arith.mulf %58, %57 : vector<256x1xf32>
      %60 = arith.subf %59, %44 : vector<256x1xf32>
      %c0_32 = arith.constant 0 : index
      %c0_33 = arith.constant 0 : index
      %61 = vector.load %arg8[%c0_32, %c0_33] : memref<1x256xf32, #tpu.memory_space<vmem>>, vector<1x256xf32>
      %cst_34 = arith.constant dense<0.000000e+00> : vector<1x1xf32>
      %62 = tpu.matmul %61, %60, %cst_34 {dimension_numbers = #tpu.dot_dimension_numbers<[1], [0], [0], [1], [0, 0, 1, 1], [], []>} : vector<1x256xf32>, vector<256x1xf32>, vector<1x1xf32> -> vector<1x1xf32>
      %63 = vector.shape_cast %62 : vector<1x1xf32> to vector<1x1xf32>
      %64 = vector.broadcast %63 : vector<1x1xf32> to vector<8x128xf32>
      %c0_35 = arith.constant 0 : index
      %c0_36 = arith.constant 0 : index
      %65 = vector.load %arg9[%c0_35, %c0_36] : memref<8x128xf32, #tpu.memory_space<vmem>>, vector<8x128xf32>
      tpu.vector_store %arg9[%c0_35, %c0_36], %64 {strides = array<i32>} : memref<8x128xf32, #tpu.memory_space<vmem>>, vector<8x128xf32>,
    } else {
    }
    return
  }
  func.func @transform_0(%arg0: i32, %arg1: i32) -> (i32, i32) {
    %c0_i32 = arith.constant 0 : i32
    %c0_i32_0 = arith.constant 0 : i32
    %c0_i32_1 = arith.constant 0 : i32
    return %c0_i32, %c0_i32_0 : i32, i32
  }
  func.func @transform_1(%arg0: i32, %arg1: i32) -> (i32, i32) {
    %c0_i32 = arith.constant 0 : i32
    %c0_i32_0 = arith.constant 0 : i32
    return %arg0, %c0_i32 : i32, i32
  }
  func.func @transform_2(%arg0: i32, %arg1: i32) -> (i32, i32) {
    %c0_i32 = arith.constant 0 : i32
    %c0_i32_0 = arith.constant 0 : i32
    return %arg0, %c0_i32 : i32, i32
  }
  func.func @transform_3(%arg0: i32, %arg1: i32) -> (i32, i32) {
    %c0_i32 = arith.constant 0 : i32
    %c0_i32_0 = arith.constant 0 : i32
    return %arg1, %c0_i32 : i32, i32
  }
  func.func @transform_4(%arg0: i32, %arg1: i32) -> (i32, i32) {
    %c0_i32 = arith.constant 0 : i32
    %c0_i32_0 = arith.constant 0 : i32
    return %arg1, %c0_i32 : i32, i32
  }
  func.func @transform_5(%arg0: i32, %arg1: i32) -> (i32, i32) {
    %c0_i32 = arith.constant 0 : i32
    %c0_i32_0 = arith.constant 0 : i32
    return %c0_i32, %arg1 : i32, i32
  }
  func.func @transform_6(%arg0: i32, %arg1: i32) -> (i32, i32) {
    %c0_i32 = arith.constant 0 : i32
    %c0_i32_0 = arith.constant 0 : i32
    return %c0_i32, %arg0 : i32, i32
  }
  func.func @transform_7(%arg0: i32, %arg1: i32) -> (i32, i32) {
    %c0_i32 = arith.constant 0 : i32
    %c0_i32_0 = arith.constant 0 : i32
    return %arg0, %c0_i32 : i32, i32
  }
}

</mosaic_0001>

<bundles_post_ra>
// kernel: tpu_custom_call.1
= control target key start
LH: loop header
LB: loop body
LE: loop exit
PB: predicated region body
PF: predicated region fallthrough
CT: control target
= control target key end

     0   :  { %s5768_s0 = inlined_call_operand.<no memory space> [shape: f32[1,1], index: 0, kind: input, shape index: {}]   ;;  %s5769_s1 = inlined_call_operand.hbm [shape: bf16[512,128], index: 1, kind: input, shape index: {}]   ;;  %s5770_s2 = inlined_call_operand.hbm [shape: bf16[512,128], index: 2, kind: input, shape index: {}]   ;;  %s5771_s3 = inlined_call_operand.hbm [shape: bf16[512,128], index: 3, kind: input, shape index: {}]   ;;  %s5772_s4 = inlined_call_operand.hbm [shape: bf16[512,128], index: 4, kind: input, shape index: {}]   ;;  %s5773_s5 = inlined_call_operand.vmem [shape: f32[1,512], index: 5, kind: input, shape index: {}]   ;;  %s5774_s6 = inlined_call_operand.hbm [shape: f32[1,512], index: 6, kind: input, shape index: {}]   ;;  %s5775_s7 = inlined_call_operand.hbm [shape: f32[16,128], index: 7, kind: output, shape index: {}]  }
   0x1   :  { %5796 = sst [smem:[#allocation34_spill]] %s5770_s2 }
   0x2   :  { %5797 = sst [smem:[#allocation35_spill]] %s5771_s3 }
   0x3   :  { %5798 = sst [smem:[#allocation36_spill]] %s5772_s4 }
   0x4   :  { %5799 = sst [smem:[#allocation37_spill]] %s5773_s5 }
   0x5   :  { %5800 = sst [smem:[#allocation38_spill]] %s5775_s7 }
   0x6   :  { %12 = sst [smem:[#allocation4]] %s5768_s0 }
   0x7   :  { %13 = vsyncpa [#allocation6], 0 }
   0x8   :  { %15 = vsyncpa [#allocation6 + $0x1], 0 }
   0x9   :  { %16 = vsyncpa [#allocation9], 0 }
   0xa   :  { %18 = vsyncpa [#allocation9 + $0x1], 0 }
   0xb   :  { %19 = vsyncpa [#allocation12], 0 }
   0xc   :  { %21 = vsyncpa [#allocation12 + $0x1], 0 }
   0xd   :  { %22 = vsyncpa [#allocation7], 0 }
   0xe   :  { %24 = vsyncpa [#allocation7 + $0x1], 0  ;;  %s4523_s26 = smov 0   ;;  %s4525_s27 = smov 0  }
   0xf   :  { %s4527_s28 = smov 0   ;;  %s4529_s29 = smov 0  }
  0x10   :  { %s4531_s30 = smov 0   ;;  %s4533_s8 = smov 0  }
  0x11   :  { %s4535_s0 = smov 0   ;;  %s4537_s9 = smov 0  }
  0x12   :  { %s4539_s10 = smov 0   ;;  %s4541_s11 = smov 0  }
  0x13   :  { %s4543_s12 = smov 0  }
  0x14 LB: > { %5801 = sst [smem:[#allocation21_spill]] %s4443_s28  ;;  %s4579_s13 = sadd.s32 4294967295, %s4475_s12   ;;  %s4475_s12 = sphi %s4543_s12, %s30_s12   ;;  %s4471_s11 = sphi %s4541_s11, %s5853_s11   ;;  %s4467_s10 = sphi %s4539_s10, %s5846_s10   ;;  %s4463_s9 = sphi %s4537_s9, %s5852_s9   ;;  %s4459_s0 = sphi %s4535_s0, %s5845_s0   ;;  %s4455_s8 = sphi %s4533_s8, %s5844_s8   ;;  %s4451_s30 = sphi %s4531_s30, %s5851_s30   ;;  %s4447_s29 = sphi %s4529_s29, %s5850_s29   ;;  %s4443_s28 = sphi %s4527_s28, %s5842_s28   ;;  %s4439_s27 = sphi %s4525_s27, %s5849_s27   ;;  %s4435_s26 = sphi %s4523_s26, %s5848_s26  }
  0x15   : > { %5802 = sst [smem:[#allocation22_spill]] %s4447_s29  ;;  %s3321_s14 = sadd.s32 4294967294, %s4475_s12  }
  0x16   : > { %5803 = sst [smem:[#allocation23_spill]] %s4455_s8  ;;  %p77_p0 = scmp.ne.s32.totalorder %s4455_s8, %s4451_s30 }
  0x17   : > { %5804 = sst [smem:[#allocation24_spill]] %s4459_s0  ;;  %p78_p1 = scmp.eq.s32.totalorder %s4475_s12, 0 }
  0x18   : > { %5805 = sst [smem:[#allocation25_spill]] %s4463_s9  ;;  %p83_p2 = scmp.ne.s32.totalorder %s4451_s30, %s4447_s29 }
  0x19   : > { %5806 = sst [smem:[#allocation26_spill]] %s4467_s10  ;;  %p84_p3 = scmp.eq.s32.totalorder %s4579_s13, 0 }
  0x1a   : > { %5807 = sst [smem:[#allocation27_spill]] %s4475_s12  ;;  %p237_p4 = scmp.eq.s32.totalorder %s4579_s13, 3 }
  0x1b   : > { %p79_p5 = por %p78_p1, %p77_p0  ;;  %p243_p6 = scmp.eq.s32.totalorder %s3321_s14, 3 }
  0x1c   : > { %p4594_p7 = por %p84_p3, %p83_p2  ;;  %p4598_p8 = por %p237_p4, %p77_p0 }
  0x1d   : > { %p4602_p9 = por %p243_p6, %p83_p2  ;;  %p3710_p10 = scmp.lt.s32.totalorder %s4475_s12, 4 }
  0x1e   : > { %s5809_s17 = scalar_select %p4598_p8, 1, 0 }
  0x1f   : > { %s5811_s18 = scalar_select %p4602_p9, 1, 0 }
  0x20   : > { %5810 = sst [smem:[#allocation28_spill]] %s5809_s17  ;;  %s4608_s19 = sand.u32 1, %s4455_s8  }
  0x21   : > { %5812 = sst [smem:[#allocation29_spill]] %s5811_s18  ;;  %s5781_s20 = sshll.u32 %s4608_s19, 7 }
  0x22   : > { %s5782_s21 = sshll.u32 %s4471_s11, 7  ;;  %p4614_p11 = pnand %p3710_p10, %p79_p5 }
  0x23   : > { %s5787_s23 = sand.u32 1, %s4475_s12   ;;  %s5814_s2 = sld [smem:[#allocation34_spill]] }
  0x24   : > { %s292_s18 = scalar_lea.vmem [#allocation8], %s5781_s20  ;;  %s4628_s7 = scalar_lea.sflag [#allocation9], %s5787_s23 }
  0x25   : > { %s300_s29 = sshll.u32 %s292_s18, 4  ;;  %s5783_s17 = smov 64   ;;  %s301_s29 = int_to_ptr.vmem [resolvable:$true] %s300_s29 }
  0x26   : > { %s5785_s24 = smov 4   ;;  %p3338_p12 = scmp.ge.s32.totalorder %s4475_s12, 1 }
  0x27   : > { %p379_p13 = scmp.lt.s32.totalorder %s4475_s12, 5  ;;  %s39_s25 = sadd.s32 1, %s4467_s10 }
  0x28   : > { %p40_p2 = scmp.ge.s32.totalorder %s39_s25, 2  ;;  %s122_s20 = sadd.s32 1, %s4443_s28 }
  0x29   : > { %s297_s14 = scalar_lea.hbm %s5814_s2, %s5782_s21  ;;  %p4638_p0 = pnand %p3338_p12, %p379_p13 }
  0x2a   : > { %s298_s15 = sshll.u32 %s297_s14, 4  ;;  %s42_s14 = sadd.s32 1, %s4471_s11  ;;  %s299_s15 = int_to_ptr.hbm [resolvable:$true] %s298_s15 }
  0x2b   : > { %3696 = dma.hbm_to_vmem [thread:$0]  (!%p4614_p11), %s299_s15, 2048, %s301_s29, %s4628_s7, %s5783_s17, %s5783_s17, %s5785_s24  }
  0x2c   : > { %p129_p4 = scmp.ne.s32.totalorder %s4443_s28, %s4439_s27  ;;  %s5855_s25 = smov (%p40_p2, %s39_s25), 0 }
  0x2d   : > { %5816 = sst [smem:[#allocation30_spill]] %s5855_s25  ;;  %s5857_s14 = smov (!%p40_p2, %s42_s14), %s4471_s11 }
  0x2e   : > { %s119_s29 = ssub.s32 %s4467_s10, %s5855_s25  ;;  %p4654_p5 = por %p129_p4, %p78_p1 }
  0x2f   : > { %p44_p6 = scmp.ge.s32.totalorder %s5857_s14, 2  ;;  %p120_p12 = scmp.eq.s32.totalorder %s119_s29, 0 }
  0x30   : > { %p135_p13 = scmp.ne.s32.totalorder %s4439_s27, %s4435_s26  ;;  %s312_s21 = sand.u32 1, %s4443_s28  }
  0x31   : > { %s5859_s14 = smov (%p44_p6, %s5857_s14), 0  ;;  %s3330_s2 = sshll.u32 %s312_s21, 7 }
  0x32   : > { %5818 = sst [smem:[#allocation31_spill]] %s5859_s14  ;;  %s67_s24 = ssub.s32 %s4471_s11, %s5859_s14 }
  0x33   : > { %s4664_s17 = scalar_select %p120_p12, %s4443_s28, %s122_s20  }
  0x34   : > { %p4670_p2 = por %p135_p13, %p84_p3  ;;  %p68_p1 = scmp.eq.s32.totalorder %s67_s24, 0 }
  0x35   : > { %5819 = sst [smem:[#allocation32_spill]] %s4664_s17  ;;  %s3610_s25 = sshll.u32 %s4467_s10, 7 }
  0x36   : > { %s5821_s29 = sadd.s32 1, %s4455_s8  ;;  %s5823_s3 = sld [smem:[#allocation35_spill]] }
  0x37   : > { %s4678_s26 = scalar_select %p68_p1, %s4455_s8, %s5821_s29  }
  0x38   : > { %s314_s20 = scalar_lea.vmem [#allocation10], %s3330_s2  ;;  %p4687_p3 = pnand %p3710_p10, %p4654_p5 }
  0x39   : > { %5822 = sst [smem:[#allocation33_spill]] %s4678_s26  ;;  %s322_s14 = sshll.u32 %s314_s20, 4  ;;  %s323_s14 = int_to_ptr.vmem [resolvable:$true] %s322_s14 }
  0x3a   : > { %s5825_s4 = sld [smem:[#allocation36_spill]]  ;;  %s5826_s15 = sand.u32 1, %s4475_s12  }
  0x3b   : > { %s5827_s10 = smov 4   ;;  %s5828_s26 = smov 64  }
  0x3c   : > { %s319_s0 = scalar_lea.hbm %s5823_s3, %s3610_s25  ;;  %s333_s3 = scalar_lea.sflag [#allocation12], %s5826_s15 }
  0x3d   : > { %s320_s17 = sshll.u32 %s319_s0, 4  ;;  %s336_s0 = scalar_lea.vmem [#allocation11], %s3330_s2  ;;  %s321_s17 = int_to_ptr.hbm [resolvable:$true] %s320_s17 }
  0x3e   : > { %s344_s20 = sshll.u32 %s336_s0, 4  ;;  %s5829_s24 = sshll.u32 %s4471_s11, 7  ;;  %s345_s20 = int_to_ptr.vmem [resolvable:$true] %s344_s20 }
  0x3f   : > { %s3336_s0 = sshll.u32 %s4608_s19, 1  ;;  %s267_s12 = scalar_lea.sflag [#allocation6], %s4608_s19 }
  0x40   : > { %s341_s5 = scalar_lea.hbm %s5825_s4, %s3610_s25  ;;  %s275_s25 = scalar_lea.hbm %s5769_s1, %s5829_s24 }
  0x41   : > { %s342_s9 = sshll.u32 %s341_s5, 4  ;;  %s5830_s5 = sshll.u32 %s4608_s19, 7  ;;  %s343_s9 = int_to_ptr.hbm [resolvable:$true] %s342_s9 }
  0x42   : > { %3702 = dma.hbm_to_vmem [thread:$0]  (!%p4687_p3), %s343_s9, 2048, %s345_s20, %s333_s3, %s5828_s26, %s5828_s26, %s5827_s10  }
  0x43   : > { %s270_s4 = scalar_lea.vmem [#allocation5], %s5830_s5  ;;  %s276_s28 = sshll.u32 %s275_s25, 4  ;;  %s277_s28 = int_to_ptr.hbm [resolvable:$true] %s276_s28 }
  0x44   : > { %s278_s2 = sshll.u32 %s270_s4, 4  ;;  %s3337_s8 = sshll.u32 %s4471_s11, 1  ;;  %s279_s2 = int_to_ptr.vmem [resolvable:$true] %s278_s2 }
  0x45   : > { %3693 = dma.hbm_to_vmem [thread:$0]  (!%p4614_p11), %s277_s28, 2048, %s279_s2, %s267_s12, %s5828_s26, %s5828_s26, %s5827_s10  }
  0x46   : > { %3699 = dma.hbm_to_vmem [thread:$0]  (!%p4687_p3), %s321_s17, 2048, %s323_s14, %s4628_s7, %s5828_s26, %s5828_s26, %s5827_s10  }
  0x47   : > { %s370_s4 = scalar_lea.hbm %s5774_s6, %s3337_s8  ;;  %s366_s15 = scalar_lea.vmem [#allocation13], %s3336_s0 }
  0x48   : > { %s374_s24 = sshll.u32 %s366_s15, 4  ;;  %s372_s29 = sshll.u32 %s370_s4, 4  ;;  %s375_s24 = int_to_ptr.vmem [resolvable:$true] %s374_s24  ;;  %s373_s29 = int_to_ptr.hbm [resolvable:$true] %s372_s29 }
  0x49   : > { %3705 = dma.hbm_to_vmem [thread:$0]  (!%p4614_p11), %s373_s29, 32, %s375_s24, %s333_s3  }
  0x4a   : > { %383 = sbr.rel (%p4638_p0) target bundleno = 1174 (0x496), region = 48  ;;  %s4730_s28 = sand.u32 (!%p4638_p0), 1, %s4451_s30  }
  0x4b   : > { %s3339_s7 = sshll.u32 (!%p4638_p0), %s4730_s28, 7  ;;  %s386_s10 = scalar_lea.sflag (!%p4638_p0), [#allocation6], %s4730_s28 }
  0x4c   : > { %s4734_s12 = scalar_lea.vmem (!%p4638_p0), [#allocation5], %s3339_s7 }
  0x4f   : > { %4410 = dma.done.wait (%p4594_p7), %s386_s10, 2048  }
  0x50   : > { %4412 = vsyncadd (%p4594_p7), %s386_s10, 4294965248  ;;  %s395_s3 = sand.u32 1, %s4579_s13   ;;  %s4741_s19 = scalar_lea.vmem [#allocation8], %s3339_s7 }
  0x51   : > { %s396_s17 = scalar_lea.sflag [#allocation9], %s395_s3 }
  0x52   : > { %4414 = dma.done.wait (%p4594_p7), %s396_s17, 2048  }
  0x53   : > { %4416 = vsyncadd (%p4594_p7), %s396_s17, 4294965248  ;;  %s407_s22 = sand.u32 1, %s4439_s27  }
  0x54   : > { %s3341_s18 = sshll.u32 %s407_s22, 7 }
  0x55   : > { %s4748_s14 = scalar_lea.vmem [#allocation10], %s3341_s18 }
  0x56   : > { %4418 = dma.done.wait (%p4670_p2), %s396_s17, 2048  }
  0x57   : > { %4420 = vsyncadd (%p4670_p2), %s396_s17, 4294965248  ;;  %s416_s13 = scalar_lea.sflag [#allocation12], %s395_s3  ;;  %s4754_s26 = scalar_lea.vmem [#allocation11], %s3341_s18 }
  0x58   : > { %4422 = dma.done.wait (%p4670_p2), %s416_s13, 2048  }
  0x59   : > { %4424 = vsyncadd (%p4670_p2), %s416_s13, 4294965248  ;;  %s3343_s21 = sshll.u32 %s4730_s28, 1 }
  0x5a   : > { %s4761_s25 = scalar_lea.vmem [#allocation13], %s3343_s21 }
  0x5b   : > { %4426 = dma.done.wait (%p4594_p7), %s416_s13, 32  }
  0x5c   : > { %4428 = vsyncadd (%p4594_p7), %s416_s13, 4294967264  ;;  %s5831_s5 = sld [smem:[#allocation24_spill]]  ;;  %s3344_s2 = sshll.u32 %s4730_s28, 3 }
  0x5d   : > { %s4769_s8 = sld [smem:[#allocation4]]  ;;  %s4777_s15 = scalar_lea.vmem [#allocation14], %s3344_s2 }
  0x5e   : > { %s5832_s20 = sld [smem:[#allocation37_spill]] }
  0x62   : > { %s3345_s0 = sshll.u32 %s5831_s5, 1  ;;  %p3346_p11 = scmp.ne.s32.totalorder %s5831_s5, 0 }
  0x63   : > { %p490_p10 = scmp.lt.s32.totalorder %s3345_s0, 3 }
  0x64   : > { %499 = sbr.rel (%p3346_p11) target bundleno = 170 (0xaa), region = 72 }
  0x65   : > { %s5861_s0 = smov (!%p490_p10, %s3345_s0), 3 }
  0x66   : > { %s492_s4 = scalar_lea.vmem %s5832_s20, %s5861_s0 }
  0x69   : > { %vm500_vm0 = vcmask 7168   ;;  %v4479_v0 = vmov 0.0  }
  0x6a   : > { %501 = vst.msk [vmem:[#allocation2] sm:$0xff] %vm500_vm0, %v4479_v0 }
  0x6b   : > { %502 = vst.msk [vmem:[#allocation2 + $0x8] sm:$0xff] %vm500_vm0, %v4479_v0 }
  0x6c   : > { %503 = vst.msk [vmem:[#allocation2 + $0x10] sm:$0xff] %vm500_vm0, %v4479_v0 }
  0x6d   : > { %504 = vst.msk [vmem:[#allocation2 + $0x18] sm:$0xff] %vm500_vm0, %v4479_v0 }
  0x6e   : > { %505 = vst.msk [vmem:[#allocation2 + $0x20] sm:$0xff] %vm500_vm0, %v4479_v0 }
  0x6f   : > { %506 = vst.msk [vmem:[#allocation2 + $0x28] sm:$0xff] %vm500_vm0, %v4479_v0 }
  0x70   : > { %507 = vst.msk [vmem:[#allocation2 + $0x30] sm:$0xff] %vm500_vm0, %v4479_v0 }
  0x71   : > { %508 = vst.msk [vmem:[#allocation2 + $0x38] sm:$0xff] %vm500_vm0, %v4479_v0 }
  0x72   : > { %509 = vst.msk [vmem:[#allocation2 + $0x40] sm:$0xff] %vm500_vm0, %v4479_v0 }
  0x73   : > { %510 = vst.msk [vmem:[#allocation2 + $0x48] sm:$0xff] %vm500_vm0, %v4479_v0 }
  0x74   : > { %511 = vst.msk [vmem:[#allocation2 + $0x50] sm:$0xff] %vm500_vm0, %v4479_v0 }
  0x75   : > { %512 = vst.msk [vmem:[#allocation2 + $0x58] sm:$0xff] %vm500_vm0, %v4479_v0 }
  0x76   : > { %513 = vst.msk [vmem:[#allocation2 + $0x60] sm:$0xff] %vm500_vm0, %v4479_v0 }
  0x77   : > { %514 = vst.msk [vmem:[#allocation2 + $0x68] sm:$0xff] %vm500_vm0, %v4479_v0 }
  0x78   : > { %515 = vst.msk [vmem:[#allocation2 + $0x70] sm:$0xff] %vm500_vm0, %v4479_v0 }
  0x79   : > { %516 = vst.msk [vmem:[#allocation2 + $0x78] sm:$0xff] %vm500_vm0, %v4479_v0 }
  0x7a   : > { %517 = vst.msk [vmem:[#allocation2 + $0x80] sm:$0xff] %vm500_vm0, %v4479_v0 }
  0x7b   : > { %518 = vst.msk [vmem:[#allocation2 + $0x88] sm:$0xff] %vm500_vm0, %v4479_v0 }
  0x7c   : > { %519 = vst.msk [vmem:[#allocation2 + $0x90] sm:$0xff] %vm500_vm0, %v4479_v0 }
  0x7d   : > { %520 = vst.msk [vmem:[#allocation2 + $0x98] sm:$0xff] %vm500_vm0, %v4479_v0 }
  0x7e   : > { %521 = vst.msk [vmem:[#allocation2 + $0xa0] sm:$0xff] %vm500_vm0, %v4479_v0 }
  0x7f   : > { %522 = vst.msk [vmem:[#allocation2 + $0xa8] sm:$0xff] %vm500_vm0, %v4479_v0 }
  0x80   : > { %523 = vst.msk [vmem:[#allocation2 + $0xb0] sm:$0xff] %vm500_vm0, %v4479_v0 }
  0x81   : > { %524 = vst.msk [vmem:[#allocation2 + $0xb8] sm:$0xff] %vm500_vm0, %v4479_v0 }
  0x82   : > { %525 = vst.msk [vmem:[#allocation2 + $0xc0] sm:$0xff] %vm500_vm0, %v4479_v0 }
  0x83   : > { %526 = vst.msk [vmem:[#allocation2 + $0xc8] sm:$0xff] %vm500_vm0, %v4479_v0 }
  0x84   : > { %527 = vst.msk [vmem:[#allocation2 + $0xd0] sm:$0xff] %vm500_vm0, %v4479_v0 }
  0x85   : > { %528 = vst.msk [vmem:[#allocation2 + $0xd8] sm:$0xff] %vm500_vm0, %v4479_v0 }
  0x86   : > { %529 = vst.msk [vmem:[#allocation2 + $0xe0] sm:$0xff] %vm500_vm0, %v4479_v0 }
  0x87   : > { %530 = vst.msk [vmem:[#allocation2 + $0xe8] sm:$0xff] %vm500_vm0, %v4479_v0 }
  0x88   : > { %531 = vst.msk [vmem:[#allocation2 + $0xf0] sm:$0xff] %vm500_vm0, %v4479_v0 }
  0x89   : > { %532 = vst.msk [vmem:[#allocation2 + $0xf8] sm:$0xff] %vm500_vm0, %v4479_v0 }
  0x8a   : > { %533 = vst.msk [vmem:[#allocation3] sm:$0xff] %vm500_vm0, %v4479_v0 }
  0x8b   : > { %534 = vst.msk [vmem:[#allocation3 + $0x8] sm:$0xff] %vm500_vm0, %v4479_v0 }
  0x8c   : > { %535 = vst.msk [vmem:[#allocation3 + $0x10] sm:$0xff] %vm500_vm0, %v4479_v0 }
  0x8d   : > { %536 = vst.msk [vmem:[#allocation3 + $0x18] sm:$0xff] %vm500_vm0, %v4479_v0 }
  0x8e   : > { %537 = vst.msk [vmem:[#allocation3 + $0x20] sm:$0xff] %vm500_vm0, %v4479_v0 }
  0x8f   : > { %538 = vst.msk [vmem:[#allocation3 + $0x28] sm:$0xff] %vm500_vm0, %v4479_v0 }
  0x90   : > { %539 = vst.msk [vmem:[#allocation3 + $0x30] sm:$0xff] %vm500_vm0, %v4479_v0 }
  0x91   : > { %540 = vst.msk [vmem:[#allocation3 + $0x38] sm:$0xff] %vm500_vm0, %v4479_v0 }
  0x92   : > { %541 = vst.msk [vmem:[#allocation3 + $0x40] sm:$0xff] %vm500_vm0, %v4479_v0 }
  0x93   : > { %542 = vst.msk [vmem:[#allocation3 + $0x48] sm:$0xff] %vm500_vm0, %v4479_v0 }
  0x94   : > { %543 = vst.msk [vmem:[#allocation3 + $0x50] sm:$0xff] %vm500_vm0, %v4479_v0 }
  0x95   : > { %544 = vst.msk [vmem:[#allocation3 + $0x58] sm:$0xff] %vm500_vm0, %v4479_v0 }
  0x96   : > { %545 = vst.msk [vmem:[#allocation3 + $0x60] sm:$0xff] %vm500_vm0, %v4479_v0 }
  0x97   : > { %546 = vst.msk [vmem:[#allocation3 + $0x68] sm:$0xff] %vm500_vm0, %v4479_v0 }
  0x98   : > { %547 = vst.msk [vmem:[#allocation3 + $0x70] sm:$0xff] %vm500_vm0, %v4479_v0 }
  0x99   : > { %548 = vst.msk [vmem:[#allocation3 + $0x78] sm:$0xff] %vm500_vm0, %v4479_v0 }
  0x9a   : > { %549 = vst.msk [vmem:[#allocation3 + $0x80] sm:$0xff] %vm500_vm0, %v4479_v0 }
  0x9b   : > { %550 = vst.msk [vmem:[#allocation3 + $0x88] sm:$0xff] %vm500_vm0, %v4479_v0 }
  0x9c   : > { %551 = vst.msk [vmem:[#allocation3 + $0x90] sm:$0xff] %vm500_vm0, %v4479_v0 }
  0x9d   : > { %552 = vst.msk [vmem:[#allocation3 + $0x98] sm:$0xff] %vm500_vm0, %v4479_v0 }
  0x9e   : > { %553 = vst.msk [vmem:[#allocation3 + $0xa0] sm:$0xff] %vm500_vm0, %v4479_v0 }
  0x9f   : > { %554 = vst.msk [vmem:[#allocation3 + $0xa8] sm:$0xff] %vm500_vm0, %v4479_v0 }
  0xa0   : > { %555 = vst.msk [vmem:[#allocation3 + $0xb0] sm:$0xff] %vm500_vm0, %v4479_v0 }
  0xa1   : > { %556 = vst.msk [vmem:[#allocation3 + $0xb8] sm:$0xff] %vm500_vm0, %v4479_v0 }
  0xa2   : > { %557 = vst.msk [vmem:[#allocation3 + $0xc0] sm:$0xff] %vm500_vm0, %v4479_v0 }
  0xa3   : > { %558 = vst.msk [vmem:[#allocation3 + $0xc8] sm:$0xff] %vm500_vm0, %v4479_v0 }
  0xa4   : > { %559 = vst.msk [vmem:[#allocation3 + $0xd0] sm:$0xff] %vm500_vm0, %v4479_v0 }
  0xa5   : > { %560 = vst.msk [vmem:[#allocation3 + $0xd8] sm:$0xff] %vm500_vm0, %v4479_v0 }
  0xa6   : > { %561 = vst.msk [vmem:[#allocation3 + $0xe0] sm:$0xff] %vm500_vm0, %v4479_v0 }
  0xa7   : > { %562 = vst.msk [vmem:[#allocation3 + $0xe8] sm:$0xff] %vm500_vm0, %v4479_v0 }
  0xa8   : > { %563 = vst.msk [vmem:[#allocation3 + $0xf0] sm:$0xff] %vm500_vm0, %v4479_v0 }
  0xa9   : > { %564 = vst.msk [vmem:[#allocation3 + $0xf8] sm:$0xff] %vm500_vm0, %v4479_v0 }
  0xaa PF: > { %v4909_v1 = vld [vmem:[%s4734_s12] sm:$0xff]   ;;  %v4912_v2 = vld [vmem:[%s4734_s12 + $0x8] sm:$0xff]   ;;  %v4915_v3 = vld [vmem:[%s4734_s12 + $0x10] sm:$0xff]   ;;  %vm1550_vm1 = vcmask 7168   ;;  %s5834_s7 = sld [smem:[#allocation24_spill]] }
  0xab   : > { %v4918_v4 = vld [vmem:[%s4734_s12 + $0x18] sm:$0xff]   ;;  %v4921_v5 = vld [vmem:[%s4734_s12 + $0x20] sm:$0xff]   ;;  %v4924_v6 = vld [vmem:[%s4734_s12 + $0x28] sm:$0xff]  }
  0xac   : > { %v4927_v7 = vld [vmem:[%s4734_s12 + $0x30] sm:$0xff]   ;;  %v4930_v8 = vld [vmem:[%s4734_s12 + $0x38] sm:$0xff]   ;;  %v4933_v9 = vld [vmem:[%s4734_s12 + $0x40] sm:$0xff]  }
  0xad   : > { %v4936_v10 = vld [vmem:[%s4734_s12 + $0x48] sm:$0xff]   ;;  %v4939_v11 = vld [vmem:[%s4734_s12 + $0x50] sm:$0xff]   ;;  %v4942_v12 = vld [vmem:[%s4734_s12 + $0x58] sm:$0xff]  }
  0xae   : > { %v4945_v13 = vld [vmem:[%s4734_s12 + $0x60] sm:$0xff]   ;;  %v4948_v14 = vld [vmem:[%s4734_s12 + $0x68] sm:$0xff]   ;;  %v4951_v15 = vld [vmem:[%s4734_s12 + $0x70] sm:$0xff]  }
  0xaf   : > { %v4954_v16 = vld [vmem:[%s4734_s12 + $0x78] sm:$0xff]   ;;  %v4957_v17 = vld [vmem:[%s4741_s19] sm:$0xff]   ;;  %v4960_v18 = vld [vmem:[%s4741_s19 + $0x8] sm:$0xff]  }
  0xb0   : > { %v4963_v19 = vld [vmem:[%s4741_s19 + $0x10] sm:$0xff]   ;;  %v4966_v20 = vld [vmem:[%s4741_s19 + $0x18] sm:$0xff]   ;;  %v4969_v21 = vld [vmem:[%s4741_s19 + $0x20] sm:$0xff]   ;;  %p3603_p7 = scmp.ne.s32.totalorder %s5834_s7, 1 }
  0xb1   : > { %v4972_v22 = vld [vmem:[%s4741_s19 + $0x28] sm:$0xff]   ;;  %v4975_v23 = vld [vmem:[%s4741_s19 + $0x30] sm:$0xff]   ;;  %v4978_v24 = vld [vmem:[%s4741_s19 + $0x38] sm:$0xff]  }
  0xb2   : > { %v4981_v25 = vld [vmem:[%s4741_s19 + $0x40] sm:$0xff]   ;;  %v4984_v26 = vld [vmem:[%s4741_s19 + $0x48] sm:$0xff]   ;;  %v4987_v27 = vld [vmem:[%s4741_s19 + $0x50] sm:$0xff]  }
  0xb3   : > { %v4990_v28 = vld [vmem:[%s4741_s19 + $0x58] sm:$0xff]   ;;  %v4993_v29 = vld [vmem:[%s4741_s19 + $0x60] sm:$0xff]   ;;  %v4996_v30 = vld [vmem:[%s4741_s19 + $0x68] sm:$0xff]  }
  0xb4   : > { %v4999_v31 = vld [vmem:[%s4741_s19 + $0x70] sm:$0xff]   ;;  %v5002_v32 = vld [vmem:[%s4741_s19 + $0x78] sm:$0xff]   ;;  %v3665_v41 = vld [vmem:[%s4754_s26 + $0x28] sm:$0xff] }
  0xb5   : > { %v3667_v33 = vld [vmem:[%s4754_s26 + $0x38] sm:$0xff]  ;;  %v3666_v37 = vld [vmem:[%s4754_s26 + $0x30] sm:$0xff]  ;;  %v3673_v42 = vld [vmem:[%s4754_s26 + $0x68] sm:$0xff] }
  0xb6   : > { %v3675_v34 = vld [vmem:[%s4754_s26 + $0x78] sm:$0xff]  ;;  %886 = vmatpush.bf16.xpose.msra.mxu0 %v3667_v33  ;;  %v3674_v38 = vld [vmem:[%s4754_s26 + $0x70] sm:$0xff]  ;;  %v3649_v43 = vld [vmem:[%s4748_s14 + $0x28] sm:$0xff] }
  0xb7   : > { %v3651_v35 = vld [vmem:[%s4748_s14 + $0x38] sm:$0xff]  ;;  %975 = vmatpush.bf16.xpose.msra.mxu1 %v3675_v34  ;;  %v3650_v39 = vld [vmem:[%s4748_s14 + $0x30] sm:$0xff]  ;;  %v3657_v44 = vld [vmem:[%s4748_s14 + $0x68] sm:$0xff] }
  0xb8   : > { %v3659_v36 = vld [vmem:[%s4748_s14 + $0x78] sm:$0xff]  ;;  %1775 = vmatpush.bf16.xpose.msra.mxu2 %v3651_v35  ;;  %v3658_v40 = vld [vmem:[%s4748_s14 + $0x70] sm:$0xff]  ;;  %v3664_v45 = vld [vmem:[%s4754_s26 + $0x20] sm:$0xff] }
  0xb9   : > { %1864 = vmatpush.bf16.xpose.msra.mxu3 %v3659_v36  ;;  %v3672_v46 = vld [vmem:[%s4754_s26 + $0x60] sm:$0xff]  ;;  %v3663_v49 = vld [vmem:[%s4754_s26 + $0x18] sm:$0xff]  ;;  %v3662_v53 = vld [vmem:[%s4754_s26 + $0x10] sm:$0xff] }
  0xba   : > { %v3648_v47 = vld [vmem:[%s4748_s14 + $0x20] sm:$0xff]  ;;  %v3671_v50 = vld [vmem:[%s4754_s26 + $0x58] sm:$0xff]  ;;  %v3670_v54 = vld [vmem:[%s4754_s26 + $0x50] sm:$0xff] }
  0xbb   : > { %v3656_v48 = vld [vmem:[%s4748_s14 + $0x60] sm:$0xff]  ;;  %v3647_v51 = vld [vmem:[%s4748_s14 + $0x18] sm:$0xff]  ;;  %v3646_v55 = vld [vmem:[%s4748_s14 + $0x10] sm:$0xff] }
  0xbc   : > { %v3655_v52 = vld [vmem:[%s4748_s14 + $0x58] sm:$0xff]  ;;  %v3654_v56 = vld [vmem:[%s4748_s14 + $0x50] sm:$0xff]  ;;  %v3661_v57 = vld [vmem:[%s4754_s26 + $0x8] sm:$0xff] }
  0xbd   : > { %v3669_v58 = vld [vmem:[%s4754_s26 + $0x48] sm:$0xff]  ;;  %v3660_v61 = vld [vmem:[%s4754_s26] sm:$0xff] }
  0xbe   : > { %887 = vmatpush.bf16.xpose.msra.mxu0 %v3666_v37  ;;  %v3645_v59 = vld [vmem:[%s4748_s14 + $0x8] sm:$0xff]  ;;  %v3668_v62 = vld [vmem:[%s4754_s26 + $0x40] sm:$0xff]  ;;  %v3614_v37 = vld [vmem:[%s4734_s12 + $0x10] sm:$0xff] }
  0xbf   : > { %976 = vmatpush.bf16.xpose.msra.mxu1 %v3674_v38  ;;  %v3653_v60 = vld [vmem:[%s4748_s14 + $0x48] sm:$0xff]  ;;  %v3644_v63 = vld [vmem:[%s4748_s14] sm:$0xff]  ;;  %v3630_v38 = vld [vmem:[%s4741_s19 + $0x10] sm:$0xff] }
  0xc0   : > { %1776 = vmatpush.bf16.xpose.msra.mxu2 %v3650_v39  ;;  %v3652_v0 = vld [vmem:[%s4748_s14 + $0x40] sm:$0xff]  ;;  %v3613_v35 = vld [vmem:[%s4734_s12 + $0x8] sm:$0xff]  ;;  %v3615_v39 = vld [vmem:[%s4734_s12 + $0x18] sm:$0xff] }
  0xc1   : > { %1865 = vmatpush.bf16.xpose.msra.mxu3 %v3658_v40  ;;  %v3612_v33 = vld [vmem:[%s4734_s12] sm:$0xff]  ;;  %v3629_v36 = vld [vmem:[%s4741_s19 + $0x8] sm:$0xff]  ;;  %v3631_v40 = vld [vmem:[%s4741_s19 + $0x18] sm:$0xff] }
  0xc2   : > { %v3628_v34 = vld [vmem:[%s4741_s19] sm:$0xff] }
  0xc6   : > { %888 = vmatpush.bf16.xpose.msra.mxu0 %v3665_v41  ;;  %v3616_v41 = vld [vmem:[%s4734_s12 + $0x20] sm:$0xff] }
  0xc7   : > { %977 = vmatpush.bf16.xpose.msra.mxu1 %v3673_v42  ;;  %v3632_v42 = vld [vmem:[%s4741_s19 + $0x20] sm:$0xff] }
  0xc8   : > { %1777 = vmatpush.bf16.xpose.msra.mxu2 %v3649_v43  ;;  %v3617_v43 = vld [vmem:[%s4734_s12 + $0x28] sm:$0xff] }
  0xc9   : > { %1866 = vmatpush.bf16.xpose.msra.mxu3 %v3657_v44  ;;  %v3633_v44 = vld [vmem:[%s4741_s19 + $0x28] sm:$0xff] }
  0xce   : > { %889 = vmatpush.bf16.xpose.msra.mxu0 %v3664_v45  ;;  %v3618_v45 = vld [vmem:[%s4734_s12 + $0x30] sm:$0xff] }
  0xcf   : > { %978 = vmatpush.bf16.xpose.msra.mxu1 %v3672_v46  ;;  %v3634_v46 = vld [vmem:[%s4741_s19 + $0x30] sm:$0xff] }
  0xd0   : > { %1778 = vmatpush.bf16.xpose.msra.mxu2 %v3648_v47  ;;  %v3619_v47 = vld [vmem:[%s4734_s12 + $0x38] sm:$0xff] }
  0xd1   : > { %1867 = vmatpush.bf16.xpose.msra.mxu3 %v3656_v48  ;;  %v3635_v48 = vld [vmem:[%s4741_s19 + $0x38] sm:$0xff] }
  0xd6   : > { %890 = vmatpush.bf16.xpose.msra.mxu0 %v3663_v49  ;;  %v693_v49 = vld [vmem:[%s492_s4] sm:$0x3] }
  0xd7   : > { %979 = vmatpush.bf16.xpose.msra.mxu1 %v3671_v50  ;;  %v5058_v50 = vstv %s4769_s8 }
  0xd8   : > { %1779 = vmatpush.bf16.xpose.msra.mxu2 %v3647_v51  ;;  %v5060_v51 = vperm.slane %v693_v49, 0 }
  0xd9   : > { %1868 = vmatpush.bf16.xpose.msra.mxu3 %v3655_v52  ;;  %v3620_v52 = vld [vmem:[%s4734_s12 + $0x40] sm:$0xff] }
  0xde   : > { %891 = vmatpush.bf16.xpose.msra.mxu0 %v3662_v53 }
  0xdf   : > { %980 = vmatpush.bf16.xpose.msra.mxu1 %v3670_v54  ;;  %v5063_v54 = vperm.slane %v693_v49, 1 }
  0xe0   : > { %1780 = vmatpush.bf16.xpose.msra.mxu2 %v3646_v55  ;;  %v3636_v55 = vld [vmem:[%s4741_s19 + $0x40] sm:$0xff] }
  0xe1   : > { %1869 = vmatpush.bf16.xpose.msra.mxu3 %v3654_v56 }
  0xe6   : > { %892 = vmatpush.bf16.xpose.msra.mxu0 %v3661_v57 }
  0xe7   : > { %981 = vmatpush.bf16.xpose.msra.mxu1 %v3669_v58 }
  0xe8   : > { %1781 = vmatpush.bf16.xpose.msra.mxu2 %v3645_v59 }
  0xe9   : > { %1870 = vmatpush.bf16.xpose.msra.mxu3 %v3653_v60 }
  0xee   : > { %893 = vmatpush.bf16.xpose.msra.mxu0 %v3660_v61 }
  0xef   : > { %982 = vmatpush.bf16.xpose.msra.mxu1 %v3668_v62 }
  0xf0   : > { %1782 = vmatpush.bf16.xpose.msra.mxu2 %v3644_v63 }
  0xf1   : > { %1871 = vmatpush.bf16.xpose.msra.mxu3 %v3652_v0 }
  0xf5   : > { %894 = vmatmul.bf16.vlgmr.msra.gmra.mxu0 %v3612_v33 }
  0xf6   : > { %983 = vmatmul.bf16.vlgmr.msra.gmra.mxu1 %v3612_v33 }
  0xf7   : > { %1783 = vmatmul.bf16.vlgmr.msra.gmra.mxu2 %v3628_v34 }
  0xf8   : > { %1872 = vmatmul.bf16.vlgmr.msra.gmra.mxu3 %v3628_v34 }
 0x105   : > { %899 = vmatmul.bf16.gmra.mxu0 %v3613_v35 }
 0x106   : > { %988 = vmatmul.bf16.gmra.mxu1 %v3613_v35 }
 0x107   : > { %1788 = vmatmul.bf16.gmra.mxu2 %v3629_v36 }
 0x108   : > { %1877 = vmatmul.bf16.gmra.mxu3 %v3629_v36 }
 0x115   : > { %904 = vmatmul.bf16.gmra.mxu0 %v3614_v37 }
 0x116   : > { %993 = vmatmul.bf16.gmra.mxu1 %v3614_v37 }
 0x117   : > { %1793 = vmatmul.bf16.gmra.mxu2 %v3630_v38 }
 0x118   : > { %1882 = vmatmul.bf16.gmra.mxu3 %v3630_v38 }
 0x125   : > { %909 = vmatmul.bf16.gmra.mxu0 %v3615_v39 }
 0x126   : > { %998 = vmatmul.bf16.gmra.mxu1 %v3615_v39 }
 0x127   : > { %1798 = vmatmul.bf16.gmra.mxu2 %v3631_v40 }
 0x128   : > { %1887 = vmatmul.bf16.gmra.mxu3 %v3631_v40 }
 0x135   : > { %914 = vmatmul.bf16.gmra.mxu0 %v3616_v41 }
 0x136   : > { %1003 = vmatmul.bf16.gmra.mxu1 %v3616_v41 }
 0x137   : > { %1803 = vmatmul.bf16.gmra.mxu2 %v3632_v42 }
 0x138   : > { %1892 = vmatmul.bf16.gmra.mxu3 %v3632_v42 }
 0x145   : > { %919 = vmatmul.bf16.gmra.mxu0 %v3617_v43 }
 0x146   : > { %1008 = vmatmul.bf16.gmra.mxu1 %v3617_v43 }
 0x147   : > { %1808 = vmatmul.bf16.gmra.mxu2 %v3633_v44 }
 0x148   : > { %1897 = vmatmul.bf16.gmra.mxu3 %v3633_v44 }
 0x155   : > { %924 = vmatmul.bf16.gmra.mxu0 %v3618_v45 }
 0x156   : > { %1013 = vmatmul.bf16.gmra.mxu1 %v3618_v45 }
 0x157   : > { %1813 = vmatmul.bf16.gmra.mxu2 %v3634_v46 }
 0x158   : > { %1902 = vmatmul.bf16.gmra.mxu3 %v3634_v46 }
 0x165   : > { %929 = vmatmul.bf16.gmra.mxu0 %v3619_v47 }
 0x166   : > { %1018 = vmatmul.bf16.gmra.mxu1 %v3619_v47 }
 0x167   : > { %1818 = vmatmul.bf16.gmra.mxu2 %v3635_v48 }
 0x168   : > { %1907 = vmatmul.bf16.gmra.mxu3 %v3635_v48 }
 0x172   : > { %v895_v53 = vpop.f32.mrf.mxu0 }
 0x173   : > { %v1065_v56 = vmul.f32 %v5058_v50, %v895_v53  ;;  %v984_v57 = vpop.f32.mrf.mxu1 }
 0x174   : > { %v1066_v58 = vmul.f32 %v5058_v50, %v984_v57  ;;  %v3621_v57 = vld [vmem:[%s4734_s12 + $0x48] sm:$0xff] }
 0x175   : > { %v1134_v59 = vadd.f32 %v5060_v51, %v1065_v56  ;;  %934 = vmatmul.bf16.gmra.mxu0 %v3620_v52 }
 0x176   : > { %v1135_v60 = vadd.f32 %v5063_v54, %v1066_v58  ;;  %1023 = vmatmul.bf16.gmra.mxu1 %v3620_v52 }
 0x177   : > { %1823 = vmatmul.bf16.gmra.mxu2 %v3636_v55  ;;  %v1230_v61 = vsub.f32 %v1134_v59, %v5058_v50 }
 0x178   : > { %1912 = vmatmul.bf16.gmra.mxu3 %v3636_v55  ;;  %v1231_v62 = vsub.f32 %v1135_v60, %v5058_v50 }
 0x179   : > { %v1294_v63 = vmul.f32 1.442695, %v1230_v61 }
 0x17a   : > { %v1784_v0 = vpop.f32.mrf.mxu2  ;;  %v1296_v33 = vmul.f32 1.442695, %v1231_v62  ;;  %v897_v36 = vpop.f32.mrf.mxu0 }
 0x17b   : > { %v1953_v34 = vmul.f32 %v1784_v0, %v5058_v50  ;;  %v1873_v35 = vpop.f32.mrf.mxu3  ;;  %3803 = vpow2.f32 %v1294_v63  ;;  %v1067_v38 = vmul.f32 %v5058_v50, %v897_v36  ;;  %v986_v39 = vpop.f32.mrf.mxu1  ;;  %v3637_v63 = vld [vmem:[%s4741_s19 + $0x48] sm:$0xff] }
 0x17c   : > { %v1954_v37 = vmul.f32 %v1873_v35, %v5058_v50  ;;  %3805 = vpow2.f32 %v1296_v33  ;;  %v1068_v41 = vmul.f32 %v5058_v50, %v986_v39 }
 0x17d   : > { %v2017_v40 = vadd.f32 %v1953_v34, %v5060_v51  ;;  %v1136_v43 = vadd.f32 %v5060_v51, %v1067_v38 }
 0x17e   : > { %v2018_v42 = vadd.f32 %v1954_v37, %v5063_v54  ;;  %v1137_v45 = vadd.f32 %v5063_v54, %v1068_v41 }
 0x17f   : > { %v2113_v44 = vsub.f32 %v2017_v40, %v5058_v50  ;;  %v1232_v47 = vsub.f32 %v1136_v43, %v5058_v50 }
 0x180   : > { %v2114_v46 = vsub.f32 %v2018_v42, %v5058_v50  ;;  %v1233_v49 = vsub.f32 %v1137_v45, %v5058_v50 }
 0x181   : > { %v2177_v48 = vmul.f32 1.442695, %v2113_v44  ;;  %v3804_v52 = vpop.eup %3803  ;;  %v1298_v55 = vmul.f32 1.442695, %v1232_v47 }
 0x182   : > { %v2179_v53 = vmul.f32 1.442695, %v2114_v46  ;;  %v1786_v56 = vpop.f32.mrf.mxu2  ;;  %v3806_v58 = vpop.eup %3805  ;;  %v1300_v59 = vmul.f32 1.442695, %v1233_v49 }
 0x183   : > { %3807 = vpow2.f32 %v2177_v48  ;;  %v1955_v60 = vmul.f32 %v1786_v56, %v5058_v50  ;;  %v1875_v61 = vpop.f32.mrf.mxu3  ;;  %v900_v62 = vpop.f32.mrf.mxu0  ;;  %v1422_v35 = vadd.f32 %v3806_v58, %v3804_v52 }
 0x184   : > { %3809 = vpow2.f32 %v2179_v53  ;;  %v1956_v0 = vmul.f32 %v1875_v61, %v5058_v50  ;;  %v1069_v33 = vmul.f32 %v5058_v50, %v900_v62  ;;  %v989_v34 = vpop.f32.mrf.mxu1 }
 0x185   : > { %3811 = vpow2.f32 %v1298_v55  ;;  %v2019_v36 = vadd.f32 %v1955_v60, %v5060_v51  ;;  %v1070_v37 = vmul.f32 %v5058_v50, %v989_v34  ;;  %1423 = vadd.xlane.f32.xlu0 %v1422_v35  ;;  %939 = vmatmul.bf16.gmra.mxu0 %v3621_v57 }
 0x186   : > { %3813 = vpow2.f32 %v1300_v59  ;;  %v2020_v38 = vadd.f32 %v1956_v0, %v5063_v54  ;;  %v1138_v39 = vadd.f32 %v5060_v51, %v1069_v33  ;;  %1028 = vmatmul.bf16.gmra.mxu1 %v3621_v57 }
 0x187   : > { %v2115_v40 = vsub.f32 %v2019_v36, %v5058_v50  ;;  %v1139_v41 = vadd.f32 %v5063_v54, %v1070_v37  ;;  %1828 = vmatmul.bf16.gmra.mxu2 %v3637_v63 }
 0x188   : > { %v2116_v42 = vsub.f32 %v2020_v38, %v5058_v50  ;;  %v1234_v43 = vsub.f32 %v1138_v39, %v5058_v50  ;;  %1917 = vmatmul.bf16.gmra.mxu3 %v3637_v63 }
 0x189   : > { %v3808_v44 = vpop.eup %3807  ;;  %v2181_v45 = vmul.f32 1.442695, %v2115_v40  ;;  %v1235_v46 = vsub.f32 %v1139_v41, %v5058_v50 }
 0x18a   : > { %v3810_v47 = vpop.eup %3809  ;;  %v2183_v48 = vmul.f32 1.442695, %v2116_v42  ;;  %v1302_v49 = vmul.f32 1.442695, %v1234_v43  ;;  %v1789_v52 = vpop.f32.mrf.mxu2 }
 0x18b   : > { %v3812_v53 = vpop.eup %3811  ;;  %3815 = vpow2.f32 %v2181_v45  ;;  %v1304_v55 = vmul.f32 1.442695, %v1235_v46  ;;  %v1957_v56 = vmul.f32 %v1789_v52, %v5058_v50  ;;  %v1878_v57 = vpop.f32.mrf.mxu3  ;;  %v2305_v59 = vadd.f32 %v3810_v47, %v3808_v44  ;;  %v3622_v47 = vld [vmem:[%s4734_s12 + $0x50] sm:$0xff] }
 0x18c   : > { %v902_v58 = vpop.f32.mrf.mxu0  ;;  %v3814_v60 = vpop.eup %3813  ;;  %3817 = vpow2.f32 %v2183_v48  ;;  %v1958_v61 = vmul.f32 %v1878_v57, %v5058_v50 }
 0x18d   : > { %v1071_v62 = vmul.f32 %v5058_v50, %v902_v58  ;;  %v991_v63 = vpop.f32.mrf.mxu1  ;;  %3819 = vpow2.f32 %v1302_v49  ;;  %v2021_v0 = vadd.f32 %v1957_v56, %v5060_v51  ;;  %2306 = vadd.xlane.f32.xlu2 %v2305_v59  ;;  %v1425_v34 = vadd.f32 %v3814_v60, %v3812_v53  ;;  %v3638_v60 = vld [vmem:[%s4741_s19 + $0x50] sm:$0xff] }
 0x18e   : > { %v1072_v33 = vmul.f32 %v5058_v50, %v991_v63  ;;  %3821 = vpow2.f32 %v1304_v55  ;;  %v2022_v35 = vadd.f32 %v1958_v61, %v5063_v54 }
 0x18f   : > { %v1140_v36 = vadd.f32 %v5060_v51, %v1071_v62  ;;  %v2117_v37 = vsub.f32 %v2021_v0, %v5058_v50  ;;  %1426 = vadd.xlane.f32.xlu0 %v1425_v34 }
 0x190   : > { %v1141_v38 = vadd.f32 %v5063_v54, %v1072_v33  ;;  %v2118_v39 = vsub.f32 %v2022_v35, %v5058_v50 }
 0x191   : > { %v1236_v40 = vsub.f32 %v1140_v36, %v5058_v50  ;;  %v3816_v41 = vpop.eup %3815  ;;  %v2185_v42 = vmul.f32 1.442695, %v2117_v37 }
 0x192   : > { %v3818_v43 = vpop.eup %3817  ;;  %v2187_v44 = vmul.f32 1.442695, %v2118_v39  ;;  %v1237_v45 = vsub.f32 %v1141_v38, %v5058_v50  ;;  %v1791_v46 = vpop.f32.mrf.mxu2 }
 0x193   : > { %v3820_v48 = vpop.eup %3819  ;;  %3823 = vpow2.f32 %v2185_v42  ;;  %v1959_v49 = vmul.f32 %v1791_v46, %v5058_v50  ;;  %v1880_v52 = vpop.f32.mrf.mxu3  ;;  %v1306_v56 = vmul.f32 1.442695, %v1236_v40  ;;  %v2308_v63 = vadd.f32 %v3818_v43, %v3816_v41 }
 0x194   : > { %v905_v53 = vpop.f32.mrf.mxu0  ;;  %v3822_v55 = vpop.eup %3821  ;;  %3825 = vpow2.f32 %v2187_v44  ;;  %v1960_v57 = vmul.f32 %v1880_v52, %v5058_v50  ;;  %v1308_v33 = vmul.f32 1.442695, %v1237_v45 }
 0x195   : > { %v1073_v58 = vmul.f32 %v5058_v50, %v905_v53  ;;  %v994_v59 = vpop.f32.mrf.mxu1  ;;  %v2023_v61 = vadd.f32 %v1959_v49, %v5060_v51  ;;  %v1428_v0 = vadd.f32 %v3822_v55, %v3820_v48  ;;  %944 = vmatmul.bf16.gmra.mxu0 %v3622_v47  ;;  %3827 = vpow2.f32 %v1306_v56 }
 0x196   : > { %v1074_v62 = vmul.f32 %v5058_v50, %v994_v59  ;;  %v2024_v34 = vadd.f32 %v1960_v57, %v5063_v54  ;;  %1033 = vmatmul.bf16.gmra.mxu1 %v3622_v47  ;;  %3829 = vpow2.f32 %v1308_v33 }
 0x197   : > { %v1142_v35 = vadd.f32 %v5060_v51, %v1073_v58  ;;  %v2119_v36 = vsub.f32 %v2023_v61, %v5058_v50  ;;  %2309 = vadd.xlane.f32.xlu0 %v2308_v63  ;;  %1429 = vadd.xlane.f32.xlu1 %v1428_v0 }
 0x198   : > { %v1143_v37 = vadd.f32 %v5063_v54, %v1074_v62  ;;  %v2120_v38 = vsub.f32 %v2024_v34, %v5058_v50  ;;  %1833 = vmatmul.bf16.gmra.mxu2 %v3638_v60  ;;  %1922 = vmatmul.bf16.gmra.mxu3 %v3638_v60 }
 0x199   : > { %v1238_v39 = vsub.f32 %v1142_v35, %v5058_v50  ;;  %v3824_v40 = vpop.eup %3823  ;;  %v2189_v41 = vmul.f32 1.442695, %v2119_v36 }
 0x19a   : > { %v1239_v42 = vsub.f32 %v1143_v37, %v5058_v50  ;;  %v3826_v43 = vpop.eup %3825  ;;  %v2191_v44 = vmul.f32 1.442695, %v2120_v38  ;;  %v1794_v45 = vpop.f32.mrf.mxu2 }
 0x19b   : > { %3831 = vpow2.f32 %v2189_v41  ;;  %v1961_v46 = vmul.f32 %v1794_v45, %v5058_v50  ;;  %v1883_v48 = vpop.f32.mrf.mxu3  ;;  %v2311_v52 = vadd.f32 %v3826_v43, %v3824_v40  ;;  %v1310_v53 = vmul.f32 1.442695, %v1238_v39  ;;  %v3828_v62 = vpop.eup %3827 }
 0x19c   : > { %v907_v49 = vpop.f32.mrf.mxu0  ;;  %3833 = vpow2.f32 %v2191_v44  ;;  %v1962_v47 = vmul.f32 %v1883_v48, %v5058_v50  ;;  %v1312_v57 = vmul.f32 1.442695, %v1239_v42  ;;  %v3830_v33 = vpop.eup %3829  ;;  %v3623_v42 = vld [vmem:[%s4734_s12 + $0x58] sm:$0xff] }
 0x19d   : > { %v1075_v55 = vmul.f32 %v5058_v50, %v907_v49  ;;  %v996_v56 = vpop.f32.mrf.mxu1  ;;  %v2025_v58 = vadd.f32 %v1961_v46, %v5060_v51  ;;  %3835 = vpow2.f32 %v1310_v53 }
 0x19e   : > { %v1076_v59 = vmul.f32 %v5058_v50, %v996_v56  ;;  %v2026_v60 = vadd.f32 %v1962_v47, %v5063_v54  ;;  %3837 = vpow2.f32 %v1312_v57  ;;  %v3639_v47 = vld [vmem:[%s4741_s19 + $0x58] sm:$0xff] }
 0x19f   : > { %v1144_v61 = vadd.f32 %v5060_v51, %v1075_v55  ;;  %v2121_v63 = vsub.f32 %v2025_v58, %v5058_v50  ;;  %2312 = vadd.xlane.f32.xlu1 %v2311_v52  ;;  %v1431_v58 = vadd.f32 %v3830_v33, %v3828_v62 }
 0x1a0   : > { %v1145_v0 = vadd.f32 %v5063_v54, %v1076_v59  ;;  %v2122_v34 = vsub.f32 %v2026_v60, %v5058_v50 }
 0x1a1   : > { %v1240_v35 = vsub.f32 %v1144_v61, %v5058_v50  ;;  %v3832_v36 = vpop.eup %3831  ;;  %v2193_v37 = vmul.f32 1.442695, %v2121_v63 }
 0x1a2   : > { %v1241_v38 = vsub.f32 %v1145_v0, %v5058_v50  ;;  %v3834_v39 = vpop.eup %3833  ;;  %v2195_v40 = vmul.f32 1.442695, %v2122_v34  ;;  %v1796_v41 = vpop.f32.mrf.mxu2 }
 0x1a3   : > { %3839 = vpow2.f32 %v2193_v37  ;;  %v1963_v43 = vmul.f32 %v1796_v41, %v5058_v50  ;;  %v1885_v44 = vpop.f32.mrf.mxu3  ;;  %v2314_v45 = vadd.f32 %v3834_v39, %v3832_v36  ;;  %v1314_v48 = vmul.f32 1.442695, %v1240_v35  ;;  %v3836_v59 = vpop.eup %3835 }
 0x1a4   : > { %v910_v46 = vpop.f32.mrf.mxu0  ;;  %3841 = vpow2.f32 %v2195_v40  ;;  %v1964_v49 = vmul.f32 %v1885_v44, %v5058_v50  ;;  %v1316_v55 = vmul.f32 1.442695, %v1241_v38  ;;  %v3838_v63 = vpop.eup %3837 }
 0x1a5   : > { %v1077_v52 = vmul.f32 %v5058_v50, %v910_v46  ;;  %v999_v53 = vpop.f32.mrf.mxu1  ;;  %v2027_v56 = vadd.f32 %v1963_v43, %v5060_v51  ;;  %2315 = vadd.xlane.f32.xlu2 %v2314_v45  ;;  %949 = vmatmul.bf16.gmra.mxu0 %v3623_v42  ;;  %3843 = vpow2.f32 %v1314_v48  ;;  %v1434_v43 = vadd.f32 %v3838_v63, %v3836_v59 }
 0x1a6   : > { %v1078_v57 = vmul.f32 %v5058_v50, %v999_v53  ;;  %v2028_v60 = vadd.f32 %v1964_v49, %v5063_v54  ;;  %1038 = vmatmul.bf16.gmra.mxu1 %v3623_v42  ;;  %3845 = vpow2.f32 %v1316_v55 }
 0x1a7   : > { %v1146_v61 = vadd.f32 %v5060_v51, %v1077_v52  ;;  %v2123_v0 = vsub.f32 %v2027_v56, %v5058_v50  ;;  %1432 = vadd.xlane.f32.xlu1 %v1431_v58 }
 0x1a8   : > { %v1147_v34 = vadd.f32 %v5063_v54, %v1078_v57  ;;  %v2124_v35 = vsub.f32 %v2028_v60, %v5058_v50  ;;  %1838 = vmatmul.bf16.gmra.mxu2 %v3639_v47  ;;  %1927 = vmatmul.bf16.gmra.mxu3 %v3639_v47 }
 0x1a9   : > { %v1242_v36 = vsub.f32 %v1146_v61, %v5058_v50  ;;  %v3840_v62 = vpop.eup %3839  ;;  %v2197_v33 = vmul.f32 1.442695, %v2123_v0 }
 0x1aa   : > { %v1243_v37 = vsub.f32 %v1147_v34, %v5058_v50  ;;  %v3842_v38 = vpop.eup %3841  ;;  %v2199_v39 = vmul.f32 1.442695, %v2124_v35  ;;  %v1799_v41 = vpop.f32.mrf.mxu2 }
 0x1ab   : > { %v1318_v40 = vmul.f32 1.442695, %v1242_v36  ;;  %3847 = vpow2.f32 %v2197_v33  ;;  %v1965_v45 = vmul.f32 %v1799_v41, %v5058_v50  ;;  %v1888_v46 = vpop.f32.mrf.mxu3  ;;  %v2317_v49 = vadd.f32 %v3842_v38, %v3840_v62  ;;  %v3844_v56 = vpop.eup %3843 }
 0x1ac   : > { %v1320_v44 = vmul.f32 1.442695, %v1243_v37  ;;  %v912_v48 = vpop.f32.mrf.mxu0  ;;  %3849 = vpow2.f32 %v2199_v39  ;;  %v1966_v42 = vmul.f32 %v1888_v46, %v5058_v50  ;;  %v3846_v59 = vpop.eup %3845 }
 0x1ad   : > { %v1001_v52 = vpop.f32.mrf.mxu1  ;;  %v1079_v53 = vmul.f32 %v5058_v50, %v912_v48  ;;  %3851 = vpow2.f32 %v1318_v40  ;;  %v2029_v47 = vadd.f32 %v1965_v45, %v5060_v51  ;;  %1435 = vadd.xlane.f32.xlu2 %v1434_v43  ;;  %2318 = vadd.xlane.f32.xlu0 %v2317_v49  ;;  %v1437_v39 = vadd.f32 %v3846_v59, %v3844_v56  ;;  %v3624_v40 = vld [vmem:[%s4734_s12 + $0x60] sm:$0xff] }
 0x1ae   : > { %v1080_v55 = vmul.f32 %v5058_v50, %v1001_v52  ;;  %3853 = vpow2.f32 %v1320_v44  ;;  %v2030_v57 = vadd.f32 %v1966_v42, %v5063_v54 }
 0x1af   : > { %v1148_v58 = vadd.f32 %v5060_v51, %v1079_v53  ;;  %v2125_v60 = vsub.f32 %v2029_v47, %v5058_v50  ;;  %v3640_v47 = vld [vmem:[%s4741_s19 + $0x60] sm:$0xff] }
 0x1b0   : > { %v1149_v61 = vadd.f32 %v5063_v54, %v1080_v55  ;;  %v2126_v63 = vsub.f32 %v2030_v57, %v5058_v50 }
 0x1b1   : > { %v1244_v0 = vsub.f32 %v1148_v58, %v5058_v50  ;;  %v3848_v34 = vpop.eup %3847  ;;  %v2201_v35 = vmul.f32 1.442695, %v2125_v60 }
 0x1b2   : > { %v1245_v36 = vsub.f32 %v1149_v61, %v5058_v50  ;;  %v3850_v62 = vpop.eup %3849  ;;  %v2203_v33 = vmul.f32 1.442695, %v2126_v63  ;;  %v1801_v38 = vpop.f32.mrf.mxu2 }
 0x1b3   : > { %v1322_v37 = vmul.f32 1.442695, %v1244_v0  ;;  %v3852_v41 = vpop.eup %3851  ;;  %3855 = vpow2.f32 %v2201_v35  ;;  %v1967_v44 = vmul.f32 %v1801_v38, %v5058_v50  ;;  %v1890_v45 = vpop.f32.mrf.mxu3  ;;  %v2320_v46 = vadd.f32 %v3850_v62, %v3848_v34 }
 0x1b4   : > { %v1324_v43 = vmul.f32 1.442695, %v1245_v36  ;;  %v915_v48 = vpop.f32.mrf.mxu0  ;;  %v3854_v49 = vpop.eup %3853  ;;  %3857 = vpow2.f32 %v2203_v33  ;;  %v1968_v42 = vmul.f32 %v1890_v45, %v5058_v50 }
 0x1b5   : > { %v1004_v52 = vpop.f32.mrf.mxu1  ;;  %v1081_v53 = vmul.f32 %v5058_v50, %v915_v48  ;;  %v2031_v55 = vadd.f32 %v1967_v44, %v5060_v51  ;;  %2321 = vadd.xlane.f32.xlu1 %v2320_v46  ;;  %1438 = vadd.xlane.f32.xlu2 %v1437_v39  ;;  %v1440_v57 = vadd.f32 %v3854_v49, %v3852_v41 }
 0x1b6   : > { %3859 = vpow2.f32 %v1324_v43  ;;  %v1082_v56 = vmul.f32 %v5058_v50, %v1004_v52  ;;  %v2032_v58 = vadd.f32 %v1968_v42, %v5063_v54  ;;  %954 = vmatmul.bf16.gmra.mxu0 %v3624_v40  ;;  %1043 = vmatmul.bf16.gmra.mxu1 %v3624_v40 }
 0x1b7   : > { %3861 = vpow2.f32 %v1322_v37  ;;  %v1150_v59 = vadd.f32 %v5060_v51, %v1081_v53  ;;  %v2127_v60 = vsub.f32 %v2031_v55, %v5058_v50  ;;  %1441 = vadd.xlane.f32.xlu0 %v1440_v57 }
 0x1b8   : > { %v1151_v61 = vadd.f32 %v5063_v54, %v1082_v56  ;;  %v2128_v63 = vsub.f32 %v2032_v58, %v5058_v50  ;;  %1843 = vmatmul.bf16.gmra.mxu2 %v3640_v47  ;;  %1932 = vmatmul.bf16.gmra.mxu3 %v3640_v47 }
 0x1b9   : > { %v1246_v0 = vsub.f32 %v1150_v59, %v5058_v50  ;;  %v3856_v34 = vpop.eup %3855  ;;  %v2205_v35 = vmul.f32 1.442695, %v2127_v60 }
 0x1ba   : > { %v1247_v36 = vsub.f32 %v1151_v61, %v5058_v50  ;;  %v3858_v62 = vpop.eup %3857  ;;  %v2207_v33 = vmul.f32 1.442695, %v2128_v63  ;;  %v1804_v38 = vpop.f32.mrf.mxu2 }
 0x1bb   : > { %v1326_v37 = vmul.f32 1.442695, %v1246_v0  ;;  %3863 = vpow2.f32 %v2205_v35  ;;  %v1969_v43 = vmul.f32 %v1804_v38, %v5058_v50  ;;  %v1893_v44 = vpop.f32.mrf.mxu3  ;;  %v2323_v46 = vadd.f32 %v3858_v62, %v3856_v34 }
 0x1bc   : > { %v3860_v39 = vpop.eup %3859  ;;  %v1328_v41 = vmul.f32 1.442695, %v1247_v36  ;;  %v917_v45 = vpop.f32.mrf.mxu0  ;;  %3865 = vpow2.f32 %v2207_v33  ;;  %v1970_v40 = vmul.f32 %v1893_v44, %v5058_v50  ;;  %v3625_v33 = vld [vmem:[%s4734_s12 + $0x68] sm:$0xff] }
 0x1bd   : > { %v3862_v48 = vpop.eup %3861  ;;  %v1083_v49 = vmul.f32 %v5058_v50, %v917_v45  ;;  %v1006_v42 = vpop.f32.mrf.mxu1  ;;  %v2033_v52 = vadd.f32 %v1969_v43, %v5060_v51  ;;  %2324 = vadd.xlane.f32.xlu2 %v2323_v46 }
 0x1be   : > { %3867 = vpow2.f32 %v1328_v41  ;;  %v1084_v53 = vmul.f32 %v5058_v50, %v1006_v42  ;;  %v1443_v47 = vadd.f32 %v3862_v48, %v3860_v39  ;;  %v2034_v55 = vadd.f32 %v1970_v40, %v5063_v54 }
 0x1bf   : > { %3869 = vpow2.f32 %v1326_v37  ;;  %v1152_v56 = vadd.f32 %v5060_v51, %v1083_v49  ;;  %v2129_v57 = vsub.f32 %v2033_v52, %v5058_v50  ;;  %v3641_v49 = vld [vmem:[%s4741_s19 + $0x68] sm:$0xff] }
 0x1c0   : > { %v1153_v58 = vadd.f32 %v5063_v54, %v1084_v53  ;;  %1444 = vadd.xlane.f32.xlu1 %v1443_v47  ;;  %v2130_v59 = vsub.f32 %v2034_v55, %v5058_v50 }
 0x1c1   : > { %v1248_v60 = vsub.f32 %v1152_v56, %v5058_v50  ;;  %v3864_v61 = vpop.eup %3863  ;;  %v2209_v63 = vmul.f32 1.442695, %v2129_v57 }
 0x1c2   : > { %v1249_v0 = vsub.f32 %v1153_v58, %v5058_v50  ;;  %v3866_v34 = vpop.eup %3865  ;;  %v2211_v35 = vmul.f32 1.442695, %v2130_v59  ;;  %v1806_v62 = vpop.f32.mrf.mxu2 }
 0x1c3   : > { %v1330_v36 = vmul.f32 1.442695, %v1248_v60  ;;  %3871 = vpow2.f32 %v2209_v63  ;;  %v1971_v39 = vmul.f32 %v1806_v62, %v5058_v50  ;;  %v1895_v41 = vpop.f32.mrf.mxu3  ;;  %v2326_v43 = vadd.f32 %v3866_v34, %v3864_v61 }
 0x1c4   : > { %v3868_v37 = vpop.eup %3867  ;;  %v1332_v38 = vmul.f32 1.442695, %v1249_v0  ;;  %v920_v44 = vpop.f32.mrf.mxu0  ;;  %3873 = vpow2.f32 %v2211_v35  ;;  %v1972_v46 = vmul.f32 %v1895_v41, %v5058_v50 }
 0x1c5   : > { %v3870_v45 = vpop.eup %3869  ;;  %v1009_v48 = vpop.f32.mrf.mxu1  ;;  %v1085_v40 = vmul.f32 %v5058_v50, %v920_v44  ;;  %3875 = vpow2.f32 %v1330_v36  ;;  %v2035_v42 = vadd.f32 %v1971_v39, %v5060_v51  ;;  %2327 = vadd.xlane.f32.xlu0 %v2326_v43 }
 0x1c6   : > { %v1086_v52 = vmul.f32 %v5058_v50, %v1009_v48  ;;  %v1446_v53 = vadd.f32 %v3870_v45, %v3868_v37  ;;  %3877 = vpow2.f32 %v1332_v38  ;;  %v2036_v47 = vadd.f32 %v1972_v46, %v5063_v54  ;;  %959 = vmatmul.bf16.gmra.mxu0 %v3625_v33  ;;  %1048 = vmatmul.bf16.gmra.mxu1 %v3625_v33 }
 0x1c7   : > { %v1154_v55 = vadd.f32 %v5060_v51, %v1085_v40  ;;  %v2131_v56 = vsub.f32 %v2035_v42, %v5058_v50 }
 0x1c8   : > { %v1155_v57 = vadd.f32 %v5063_v54, %v1086_v52  ;;  %1447 = vadd.xlane.f32.xlu2 %v1446_v53  ;;  %v2132_v58 = vsub.f32 %v2036_v47, %v5058_v50  ;;  %1848 = vmatmul.bf16.gmra.mxu2 %v3641_v49 }
 0x1c9   : > { %v1250_v59 = vsub.f32 %v1154_v55, %v5058_v50  ;;  %v3872_v60 = vpop.eup %3871  ;;  %v2213_v61 = vmul.f32 1.442695, %v2131_v56  ;;  %1937 = vmatmul.bf16.gmra.mxu3 %v3641_v49 }
 0x1ca   : > { %v1251_v63 = vsub.f32 %v1155_v57, %v5058_v50  ;;  %v3874_v0 = vpop.eup %3873  ;;  %v2215_v34 = vmul.f32 1.442695, %v2132_v58  ;;  %v1809_v36 = vpop.f32.mrf.mxu2 }
 0x1cb   : > { %v1334_v35 = vmul.f32 1.442695, %v1250_v59  ;;  %v3876_v62 = vpop.eup %3875  ;;  %3879 = vpow2.f32 %v2213_v61  ;;  %v1973_v38 = vmul.f32 %v1809_v36, %v5058_v50  ;;  %v1898_v39 = vpop.f32.mrf.mxu3  ;;  %v2329_v43 = vadd.f32 %v3874_v0, %v3872_v60 }
 0x1cc   : > { %v1336_v37 = vmul.f32 1.442695, %v1251_v63  ;;  %v922_v41 = vpop.f32.mrf.mxu0  ;;  %v3878_v44 = vpop.eup %3877  ;;  %3881 = vpow2.f32 %v2215_v34  ;;  %v1974_v33 = vmul.f32 %v1898_v39, %v5058_v50  ;;  %v3626_v34 = vld [vmem:[%s4734_s12 + $0x70] sm:$0xff] }
 0x1cd   : > { %v1087_v45 = vmul.f32 %v5058_v50, %v922_v41  ;;  %v1011_v46 = vpop.f32.mrf.mxu1  ;;  %v2037_v48 = vadd.f32 %v1973_v38, %v5060_v51  ;;  %2330 = vadd.xlane.f32.xlu1 %v2329_v43  ;;  %v1449_v49 = vadd.f32 %v3878_v44, %v3876_v62 }
 0x1ce   : > { %3883 = vpow2.f32 %v1336_v37  ;;  %v1088_v40 = vmul.f32 %v5058_v50, %v1011_v46  ;;  %v2038_v42 = vadd.f32 %v1974_v33, %v5063_v54 }
 0x1cf   : > { %3885 = vpow2.f32 %v1334_v35  ;;  %v1156_v52 = vadd.f32 %v5060_v51, %v1087_v45  ;;  %v2133_v53 = vsub.f32 %v2037_v48, %v5058_v50  ;;  %1450 = vadd.xlane.f32.xlu0 %v1449_v49  ;;  %v3642_v45 = vld [vmem:[%s4741_s19 + $0x70] sm:$0xff] }
 0x1d0   : > { %v1157_v47 = vadd.f32 %v5063_v54, %v1088_v40  ;;  %v2134_v55 = vsub.f32 %v2038_v42, %v5058_v50 }
 0x1d1   : > { %v1252_v56 = vsub.f32 %v1156_v52, %v5058_v50  ;;  %v3880_v57 = vpop.eup %3879  ;;  %v2217_v58 = vmul.f32 1.442695, %v2133_v53 }
 0x1d2   : > { %v1253_v59 = vsub.f32 %v1157_v47, %v5058_v50  ;;  %v3882_v60 = vpop.eup %3881  ;;  %v2219_v61 = vmul.f32 1.442695, %v2134_v55  ;;  %v1811_v0 = vpop.f32.mrf.mxu2 }
 0x1d3   : > { %v1338_v63 = vmul.f32 1.442695, %v1252_v56  ;;  %3887 = vpow2.f32 %v2217_v58  ;;  %v1975_v62 = vmul.f32 %v1811_v0, %v5058_v50  ;;  %v1900_v37 = vpop.f32.mrf.mxu3  ;;  %v2332_v38 = vadd.f32 %v3882_v60, %v3880_v57 }
 0x1d4   : > { %v3884_v35 = vpop.eup %3883  ;;  %v1340_v36 = vmul.f32 1.442695, %v1253_v59  ;;  %v925_v39 = vpop.f32.mrf.mxu0  ;;  %3889 = vpow2.f32 %v2219_v61  ;;  %v1976_v43 = vmul.f32 %v1900_v37, %v5058_v50 }
 0x1d5   : > { %v3886_v41 = vpop.eup %3885  ;;  %v1014_v44 = vpop.f32.mrf.mxu1  ;;  %v1089_v33 = vmul.f32 %v5058_v50, %v925_v39  ;;  %3891 = vpow2.f32 %v1338_v63  ;;  %v2039_v46 = vadd.f32 %v1975_v62, %v5060_v51  ;;  %2333 = vadd.xlane.f32.xlu2 %v2332_v38 }
 0x1d6   : > { %v1090_v48 = vmul.f32 %v5058_v50, %v1014_v44  ;;  %v1452_v40 = vadd.f32 %v3886_v41, %v3884_v35  ;;  %3893 = vpow2.f32 %v1340_v36  ;;  %v2040_v49 = vadd.f32 %v1976_v43, %v5063_v54  ;;  %964 = vmatmul.bf16.gmra.mxu0 %v3626_v34  ;;  %1053 = vmatmul.bf16.gmra.mxu1 %v3626_v34 }
 0x1d7   : > { %v1158_v42 = vadd.f32 %v5060_v51, %v1089_v33  ;;  %v2135_v52 = vsub.f32 %v2039_v46, %v5058_v50 }
 0x1d8   : > { %v1159_v53 = vadd.f32 %v5063_v54, %v1090_v48  ;;  %1453 = vadd.xlane.f32.xlu1 %v1452_v40  ;;  %v2136_v47 = vsub.f32 %v2040_v49, %v5058_v50  ;;  %1853 = vmatmul.bf16.gmra.mxu2 %v3642_v45 }
 0x1d9   : > { %v1254_v55 = vsub.f32 %v1158_v42, %v5058_v50  ;;  %v3888_v56 = vpop.eup %3887  ;;  %v2221_v57 = vmul.f32 1.442695, %v2135_v52  ;;  %1942 = vmatmul.bf16.gmra.mxu3 %v3642_v45 }
 0x1da   : > { %v1255_v58 = vsub.f32 %v1159_v53, %v5058_v50  ;;  %v3890_v59 = vpop.eup %3889  ;;  %v2223_v60 = vmul.f32 1.442695, %v2136_v47  ;;  %v1814_v63 = vpop.f32.mrf.mxu2 }
 0x1db   : > { %v1342_v61 = vmul.f32 1.442695, %v1254_v55  ;;  %v3892_v0 = vpop.eup %3891  ;;  %3895 = vpow2.f32 %v2221_v57  ;;  %v1977_v36 = vmul.f32 %v1814_v63, %v5058_v50  ;;  %v1903_v62 = vpop.f32.mrf.mxu3  ;;  %v2335_v38 = vadd.f32 %v3890_v59, %v3888_v56 }
 0x1dc   : > { %v1344_v35 = vmul.f32 1.442695, %v1255_v58  ;;  %v927_v37 = vpop.f32.mrf.mxu0  ;;  %v3894_v39 = vpop.eup %3893  ;;  %3897 = vpow2.f32 %v2223_v60  ;;  %v1978_v34 = vmul.f32 %v1903_v62, %v5058_v50  ;;  %v3627_v60 = vld [vmem:[%s4734_s12 + $0x78] sm:$0xff] }
 0x1dd   : > { %v1091_v41 = vmul.f32 %v5058_v50, %v927_v37  ;;  %v1016_v43 = vpop.f32.mrf.mxu1  ;;  %v2041_v44 = vadd.f32 %v1977_v36, %v5060_v51  ;;  %2336 = vadd.xlane.f32.xlu0 %v2335_v38  ;;  %v1455_v45 = vadd.f32 %v3894_v39, %v3892_v0 }
 0x1de   : > { %3899 = vpow2.f32 %v1344_v35  ;;  %v1092_v33 = vmul.f32 %v5058_v50, %v1016_v43  ;;  %v2042_v46 = vadd.f32 %v1978_v34, %v5063_v54 }
 0x1df   : > { %3901 = vpow2.f32 %v1342_v61  ;;  %v1160_v48 = vadd.f32 %v5060_v51, %v1091_v41  ;;  %v2137_v40 = vsub.f32 %v2041_v44, %v5058_v50  ;;  %1456 = vadd.xlane.f32.xlu2 %v1455_v45  ;;  %v3643_v41 = vld [vmem:[%s4741_s19 + $0x78] sm:$0xff] }
 0x1e0   : > { %v1161_v49 = vadd.f32 %v5063_v54, %v1092_v33  ;;  %v2138_v42 = vsub.f32 %v2042_v46, %v5058_v50 }
 0x1e1   : > { %v1256_v52 = vsub.f32 %v1160_v48, %v5058_v50  ;;  %v3896_v53 = vpop.eup %3895  ;;  %v2225_v47 = vmul.f32 1.442695, %v2137_v40 }
 0x1e2   : > { %v1257_v55 = vsub.f32 %v1161_v49, %v5058_v50  ;;  %v3898_v56 = vpop.eup %3897  ;;  %v2227_v57 = vmul.f32 1.442695, %v2138_v42  ;;  %v1816_v59 = vpop.f32.mrf.mxu2 }
 0x1e3   : > { %v1346_v58 = vmul.f32 1.442695, %v1256_v52  ;;  %3903 = vpow2.f32 %v2225_v47  ;;  %v1979_v0 = vmul.f32 %v1816_v59, %v5058_v50  ;;  %v1905_v35 = vpop.f32.mrf.mxu3  ;;  %v2338_v36 = vadd.f32 %v3898_v56, %v3896_v53 }
 0x1e4   : > { %v3900_v61 = vpop.eup %3899  ;;  %v1348_v63 = vmul.f32 1.442695, %v1257_v55  ;;  %v930_v62 = vpop.f32.mrf.mxu0  ;;  %3905 = vpow2.f32 %v2227_v57  ;;  %v1980_v38 = vmul.f32 %v1905_v35, %v5058_v50 }
 0x1e5   : > { %v3902_v37 = vpop.eup %3901  ;;  %v1019_v39 = vpop.f32.mrf.mxu1  ;;  %v1093_v34 = vmul.f32 %v5058_v50, %v930_v62  ;;  %3907 = vpow2.f32 %v1346_v58  ;;  %v2043_v43 = vadd.f32 %v1979_v0, %v5060_v51  ;;  %2339 = vadd.xlane.f32.xlu1 %v2338_v36 }
 0x1e6   : > { %v1094_v44 = vmul.f32 %v5058_v50, %v1019_v39  ;;  %v1458_v33 = vadd.f32 %v3902_v37, %v3900_v61  ;;  %3909 = vpow2.f32 %v1348_v63  ;;  %v2044_v45 = vadd.f32 %v1980_v38, %v5063_v54  ;;  %969 = vmatmul.bf16.gmra.mxu0 %v3627_v60  ;;  %1058 = vmatmul.bf16.gmra.mxu1 %v3627_v60 }
 0x1e7   : > { %v1162_v46 = vadd.f32 %v5060_v51, %v1093_v34  ;;  %v2139_v48 = vsub.f32 %v2043_v43, %v5058_v50 }
 0x1e8   : > { %v1163_v40 = vadd.f32 %v5063_v54, %v1094_v44  ;;  %1459 = vadd.xlane.f32.xlu0 %v1458_v33  ;;  %v2140_v49 = vsub.f32 %v2044_v45, %v5058_v50  ;;  %1858 = vmatmul.bf16.gmra.mxu2 %v3643_v41 }
 0x1e9   : > { %v1258_v42 = vsub.f32 %v1162_v46, %v5058_v50  ;;  %v3904_v52 = vpop.eup %3903  ;;  %v2229_v53 = vmul.f32 1.442695, %v2139_v48  ;;  %1947 = vmatmul.bf16.gmra.mxu3 %v3643_v41 }
 0x1ea   : > { %v1259_v47 = vsub.f32 %v1163_v40, %v5058_v50  ;;  %v3906_v55 = vpop.eup %3905  ;;  %v2231_v56 = vmul.f32 1.442695, %v2140_v49  ;;  %v1819_v58 = vpop.f32.mrf.mxu2 }
 0x1eb   : > { %v1350_v57 = vmul.f32 1.442695, %v1258_v42  ;;  %v3908_v59 = vpop.eup %3907  ;;  %3911 = vpow2.f32 %v2229_v53  ;;  %v1981_v63 = vmul.f32 %v1819_v58, %v5058_v50  ;;  %v1908_v0 = vpop.f32.mrf.mxu3  ;;  %v2341_v36 = vadd.f32 %v3906_v55, %v3904_v52 }
 0x1ec   : > { %v1352_v61 = vmul.f32 1.442695, %v1259_v47  ;;  %v932_v35 = vpop.f32.mrf.mxu0  ;;  %v3910_v62 = vpop.eup %3909  ;;  %3913 = vpow2.f32 %v2231_v56  ;;  %v1982_v60 = vmul.f32 %v1908_v0, %v5058_v50 }
 0x1ed   : > { %v1095_v37 = vmul.f32 %v5058_v50, %v932_v35  ;;  %v1021_v38 = vpop.f32.mrf.mxu1  ;;  %v2045_v39 = vadd.f32 %v1981_v63, %v5060_v51  ;;  %2342 = vadd.xlane.f32.xlu2 %v2341_v36  ;;  %v1461_v41 = vadd.f32 %v3910_v62, %v3908_v59 }
 0x1ee   : > { %3915 = vpow2.f32 %v1352_v61  ;;  %v1096_v34 = vmul.f32 %v5058_v50, %v1021_v38  ;;  %v2046_v43 = vadd.f32 %v1982_v60, %v5063_v54 }
 0x1ef   : > { %3917 = vpow2.f32 %v1350_v57  ;;  %v1164_v44 = vadd.f32 %v5060_v51, %v1095_v37  ;;  %v2141_v33 = vsub.f32 %v2045_v39, %v5058_v50  ;;  %1462 = vadd.xlane.f32.xlu1 %v1461_v41 }
 0x1f0   : > { %v1165_v45 = vadd.f32 %v5063_v54, %v1096_v34  ;;  %v2142_v46 = vsub.f32 %v2046_v43, %v5058_v50 }
 0x1f1   : > { %v1260_v48 = vsub.f32 %v1164_v44, %v5058_v50  ;;  %v3912_v40 = vpop.eup %3911  ;;  %v2233_v49 = vmul.f32 1.442695, %v2141_v33  ;;  %v1198_v44 = vld [vmem:[#allocation2] sm:$0xff] }
 0x1f2   : > { %v1261_v42 = vsub.f32 %v1165_v45, %v5058_v50  ;;  %v3914_v52 = vpop.eup %3913  ;;  %v2235_v53 = vmul.f32 1.442695, %v2142_v46  ;;  %v1821_v55 = vpop.f32.mrf.mxu2 }
 0x1f3   : > { %v1354_v47 = vmul.f32 1.442695, %v1260_v48  ;;  %3919 = vpow2.f32 %v2233_v49  ;;  %v1983_v58 = vmul.f32 %v1821_v55, %v5058_v50  ;;  %v1910_v59 = vpop.f32.mrf.mxu3  ;;  %v2344_v61 = vadd.f32 %v3914_v52, %v3912_v40 }
 0x1f4   : > { %v3916_v56 = vpop.eup %3915  ;;  %v1356_v57 = vmul.f32 1.442695, %v1261_v42  ;;  %v935_v63 = vpop.f32.mrf.mxu0  ;;  %3921 = vpow2.f32 %v2235_v53  ;;  %v1984_v35 = vmul.f32 %v1910_v59, %v5058_v50 }
 0x1f5   : > { %v3918_v0 = vpop.eup %3917  ;;  %v1024_v36 = vpop.f32.mrf.mxu1  ;;  %v1097_v62 = vmul.f32 %v5058_v50, %v935_v63  ;;  %3923 = vpow2.f32 %v1354_v47  ;;  %v2047_v60 = vadd.f32 %v1983_v58, %v5060_v51  ;;  %2345 = vadd.xlane.f32.xlu0 %v2344_v61 }
 0x1f6   : > { %v1098_v37 = vmul.f32 %v5058_v50, %v1024_v36  ;;  %v1464_v38 = vadd.f32 %v3918_v0, %v3916_v56  ;;  %3925 = vpow2.f32 %v1356_v57  ;;  %v2048_v39 = vadd.f32 %v1984_v35, %v5063_v54 }
 0x1f7   : > { %v1166_v34 = vadd.f32 %v5060_v51, %v1097_v62  ;;  %v2143_v41 = vsub.f32 %v2047_v60, %v5058_v50 }
 0x1f8   : > { %v1167_v43 = vadd.f32 %v5063_v54, %v1098_v37  ;;  %1465 = vadd.xlane.f32.xlu2 %v1464_v38  ;;  %v2144_v33 = vsub.f32 %v2048_v39, %v5058_v50  ;;  %v1424_v49 = vpop.xlane.xlu0 %1423 }
 0x1f9   : > { %v1262_v45 = vsub.f32 %v1166_v34, %v5058_v50  ;;  %v3920_v46 = vpop.eup %3919  ;;  %v2237_v48 = vmul.f32 1.442695, %v2143_v41  ;;  %v1518_v47 = vadd.f32 %v1424_v49, %v1198_v44  ;;  %v2081_v41 = vld [vmem:[#allocation3] sm:$0xff] }
 0x1fa   : > { %v1263_v40 = vsub.f32 %v1167_v43, %v5058_v50  ;;  %v3922_v42 = vpop.eup %3921  ;;  %v2239_v52 = vmul.f32 1.442695, %v2144_v33  ;;  %v1824_v55 = vpop.f32.mrf.mxu2 }
 0x1fb   : > { %v1358_v53 = vmul.f32 1.442695, %v1262_v45  ;;  %v3924_v56 = vpop.eup %3923  ;;  %3927 = vpow2.f32 %v2237_v48  ;;  %v1985_v58 = vmul.f32 %v1824_v55, %v5058_v50  ;;  %v1913_v59 = vpop.f32.mrf.mxu3  ;;  %v2347_v63 = vadd.f32 %v3922_v42, %v3920_v46  ;;  %1551 = vst.msk [vmem:[#allocation2] sm:$0xff] %vm1550_vm1, %v1518_v47  ;;  %v1199_v48 = vld [vmem:[#allocation2 + $0x8] sm:$0xff] }
 0x1fc   : > { %v1360_v57 = vmul.f32 1.442695, %v1263_v40  ;;  %v937_v61 = vpop.f32.mrf.mxu0  ;;  %v3926_v0 = vpop.eup %3925  ;;  %3929 = vpow2.f32 %v2239_v52  ;;  %v1986_v35 = vmul.f32 %v1913_v59, %v5058_v50 }
 0x1fd   : > { %v1099_v36 = vmul.f32 %v5058_v50, %v937_v61  ;;  %v1026_v62 = vpop.f32.mrf.mxu1  ;;  %v2049_v60 = vadd.f32 %v1985_v58, %v5060_v51  ;;  %2348 = vadd.xlane.f32.xlu1 %v2347_v63  ;;  %v1467_v38 = vadd.f32 %v3926_v0, %v3924_v56 }
 0x1fe   : > { %3931 = vpow2.f32 %v1360_v57  ;;  %v1100_v37 = vmul.f32 %v5058_v50, %v1026_v62  ;;  %v2050_v39 = vadd.f32 %v1986_v35, %v5063_v54 }
 0x1ff   : > { %3933 = vpow2.f32 %v1358_v53  ;;  %v1168_v34 = vadd.f32 %v5060_v51, %v1099_v36  ;;  %v2145_v43 = vsub.f32 %v2049_v60, %v5058_v50  ;;  %1468 = vadd.xlane.f32.xlu0 %v1467_v38 }
 0x200   : > { %v1169_v44 = vadd.f32 %v5063_v54, %v1100_v37  ;;  %v2146_v33 = vsub.f32 %v2050_v39, %v5058_v50  ;;  %v2307_v46 = vpop.xlane.xlu2 %2306 }
 0x201   : > { %v1264_v45 = vsub.f32 %v1168_v34, %v5058_v50  ;;  %v3928_v40 = vpop.eup %3927  ;;  %v2241_v49 = vmul.f32 1.442695, %v2145_v43  ;;  %v2401_v52 = vadd.f32 %v2307_v46, %v2081_v41 }
 0x202   : > { %v1265_v42 = vsub.f32 %v1169_v44, %v5058_v50  ;;  %v3930_v53 = vpop.eup %3929  ;;  %v2243_v47 = vmul.f32 1.442695, %v2146_v33  ;;  %v1427_v56 = vpop.xlane.xlu0 %1426 }
 0x203   : > { %v1362_v55 = vmul.f32 1.442695, %v1264_v45  ;;  %v1826_v57 = vpop.f32.mrf.mxu2  ;;  %3935 = vpow2.f32 %v2241_v49  ;;  %2433 = vst.msk [vmem:[#allocation3] sm:$0xff] %vm1550_vm1, %v2401_v52  ;;  %v1519_v61 = vadd.f32 %v1427_v56, %v1199_v48  ;;  %v1915_v0 = vpop.f32.mrf.mxu3  ;;  %v2350_v37 = vadd.f32 %v3930_v53, %v3928_v40  ;;  %v2082_v40 = vld [vmem:[#allocation3 + $0x8] sm:$0xff]  ;;  %v1200_v49 = vld [vmem:[#allocation2 + $0x10] sm:$0xff] }
 0x204   : > { %v3932_v58 = vpop.eup %3931  ;;  %v1364_v59 = vmul.f32 1.442695, %v1265_v42  ;;  %v1987_v63 = vmul.f32 %v1826_v57, %v5058_v50  ;;  %v940_v35 = vpop.f32.mrf.mxu0  ;;  %3937 = vpow2.f32 %v2243_v47  ;;  %v1988_v62 = vmul.f32 %v1915_v0, %v5058_v50 }
 0x205   : > { %v3934_v36 = vpop.eup %3933  ;;  %v1029_v60 = vpop.f32.mrf.mxu1  ;;  %v1101_v38 = vmul.f32 %v5058_v50, %v940_v35  ;;  %3939 = vpow2.f32 %v1362_v55  ;;  %1552 = vst.msk [vmem:[#allocation2 + $0x8] sm:$0xff] %vm1550_vm1, %v1519_v61  ;;  %2351 = vadd.xlane.f32.xlu2 %v2350_v37 }
 0x206   : > { %v2051_v39 = vadd.f32 %v1987_v63, %v5060_v51  ;;  %v1102_v34 = vmul.f32 %v5058_v50, %v1029_v60  ;;  %v1470_v41 = vadd.f32 %v3934_v36, %v3932_v58  ;;  %3941 = vpow2.f32 %v1364_v59 }
 0x207   : > { %v2052_v43 = vadd.f32 %v1988_v62, %v5063_v54  ;;  %v1170_v44 = vadd.f32 %v5060_v51, %v1101_v38 }
 0x208   : > { %v2147_v33 = vsub.f32 %v2051_v39, %v5058_v50  ;;  %v1171_v45 = vadd.f32 %v5063_v54, %v1102_v34  ;;  %1471 = vadd.xlane.f32.xlu1 %v1470_v41 }
 0x209   : > { %v2148_v46 = vsub.f32 %v2052_v43, %v5058_v50  ;;  %v1266_v48 = vsub.f32 %v1170_v44, %v5058_v50  ;;  %v3936_v42 = vpop.eup %3935 }
 0x20a   : > { %v2245_v52 = vmul.f32 1.442695, %v2147_v33  ;;  %v1267_v53 = vsub.f32 %v1171_v45, %v5058_v50  ;;  %v3938_v47 = vpop.eup %3937  ;;  %v2310_v57 = vpop.xlane.xlu0 %2309 }
 0x20b   : > { %v2247_v55 = vmul.f32 1.442695, %v2148_v46  ;;  %v1366_v56 = vmul.f32 1.442695, %v1266_v48  ;;  %v1430_v58 = vpop.xlane.xlu1 %1429  ;;  %v3940_v59 = vpop.eup %3939  ;;  %v2402_v63 = vadd.f32 %v2310_v57, %v2082_v40  ;;  %v2353_v34 = vadd.f32 %v3938_v47, %v3936_v42  ;;  %v2083_v42 = vld [vmem:[#allocation3 + $0x10] sm:$0xff] }
 0x20c   : > { %3943 = vpow2.f32 %v2245_v52  ;;  %v1368_v61 = vmul.f32 1.442695, %v1267_v53  ;;  %v1520_v0 = vadd.f32 %v1430_v58, %v1200_v49  ;;  %v1829_v35 = vpop.f32.mrf.mxu2  ;;  %v1918_v36 = vpop.f32.mrf.mxu3 }
 0x20d   : > { %v3942_v62 = vpop.eup %3941  ;;  %3945 = vpow2.f32 %v2247_v55  ;;  %v1989_v60 = vmul.f32 %v1829_v35, %v5058_v50  ;;  %v1990_v37 = vmul.f32 %v1918_v36, %v5058_v50  ;;  %v942_v38 = vpop.f32.mrf.mxu0  ;;  %2434 = vst.msk [vmem:[#allocation3 + $0x8] sm:$0xff] %vm1550_vm1, %v2402_v63  ;;  %2354 = vadd.xlane.f32.xlu0 %v2353_v34 }
 0x20e   : > { %v1031_v39 = vpop.f32.mrf.mxu1  ;;  %3947 = vpow2.f32 %v1368_v61  ;;  %v1103_v41 = vmul.f32 %v5058_v50, %v942_v38  ;;  %v1473_v44 = vadd.f32 %v3942_v62, %v3940_v59  ;;  %1553 = vst.msk [vmem:[#allocation2 + $0x10] sm:$0xff] %vm1550_vm1, %v1520_v0 }
 0x20f   : > { %v1104_v43 = vmul.f32 %v5058_v50, %v1031_v39  ;;  %3949 = vpow2.f32 %v1366_v56  ;;  %v2053_v33 = vadd.f32 %v1989_v60, %v5060_v51  ;;  %v2054_v45 = vadd.f32 %v1990_v37, %v5063_v54 }
 0x210   : > { %v1172_v46 = vadd.f32 %v5060_v51, %v1103_v41  ;;  %1474 = vadd.xlane.f32.xlu2 %v1473_v44 }
 0x211   : > { %v1173_v48 = vadd.f32 %v5063_v54, %v1104_v43  ;;  %v2149_v40 = vsub.f32 %v2053_v33, %v5058_v50  ;;  %v2150_v49 = vsub.f32 %v2054_v45, %v5058_v50 }
 0x212   : > { %v3944_v52 = vpop.eup %3943  ;;  %v1268_v53 = vsub.f32 %v1172_v46, %v5058_v50  ;;  %v2084_v46 = vld [vmem:[#allocation3 + $0x18] sm:$0xff] }
 0x213   : > { %v1269_v47 = vsub.f32 %v1173_v48, %v5058_v50  ;;  %v3946_v55 = vpop.eup %3945  ;;  %v2249_v56 = vmul.f32 1.442695, %v2149_v40  ;;  %v2251_v57 = vmul.f32 1.442695, %v2150_v49  ;;  %v2313_v58 = vpop.xlane.xlu1 %2312 }
 0x214   : > { %v3948_v59 = vpop.eup %3947  ;;  %v1370_v61 = vmul.f32 1.442695, %v1268_v53  ;;  %v2403_v0 = vadd.f32 %v2313_v58, %v2083_v42  ;;  %v1831_v35 = vpop.f32.mrf.mxu2  ;;  %v2356_v62 = vadd.f32 %v3946_v55, %v3944_v52  ;;  %v1201_v53 = vld [vmem:[#allocation2 + $0x18] sm:$0xff] }
 0x215   : > { %v1372_v63 = vmul.f32 1.442695, %v1269_v47  ;;  %v1920_v36 = vpop.f32.mrf.mxu3  ;;  %v3950_v60 = vpop.eup %3949  ;;  %3951 = vpow2.f32 %v2249_v56  ;;  %v1991_v37 = vmul.f32 %v1831_v35, %v5058_v50 }
 0x216   : > { %v1992_v38 = vmul.f32 %v1920_v36, %v5058_v50  ;;  %v945_v39 = vpop.f32.mrf.mxu0  ;;  %3953 = vpow2.f32 %v2251_v57  ;;  %2435 = vst.msk [vmem:[#allocation3 + $0x10] sm:$0xff] %vm1550_vm1, %v2403_v0  ;;  %v1034_v34 = vpop.f32.mrf.mxu1  ;;  %2357 = vadd.xlane.f32.xlu1 %v2356_v62  ;;  %v1476_v43 = vadd.f32 %v3950_v60, %v3948_v59 }
 0x217   : > { %v1105_v41 = vmul.f32 %v5058_v50, %v945_v39  ;;  %3955 = vpow2.f32 %v1370_v61  ;;  %v2055_v44 = vadd.f32 %v1991_v37, %v5060_v51  ;;  %v1106_v45 = vmul.f32 %v5058_v50, %v1034_v34 }
 0x218   : > { %v2056_v33 = vadd.f32 %v1992_v38, %v5063_v54  ;;  %3957 = vpow2.f32 %v1372_v63  ;;  %1477 = vadd.xlane.f32.xlu0 %v1476_v43  ;;  %v2316_v52 = vpop.xlane.xlu2 %2315 }
 0x219   : > { %v1174_v48 = vadd.f32 %v5060_v51, %v1105_v41  ;;  %v2151_v40 = vsub.f32 %v2055_v44, %v5058_v50  ;;  %v1175_v42 = vadd.f32 %v5063_v54, %v1106_v45  ;;  %v2404_v55 = vadd.f32 %v2316_v52, %v2084_v46 }
 0x21a   : > { %v2152_v49 = vsub.f32 %v2056_v33, %v5058_v50 }
 0x21b   : > { %v1270_v47 = vsub.f32 %v1174_v48, %v5058_v50  ;;  %v3952_v56 = vpop.eup %3951  ;;  %v2253_v57 = vmul.f32 1.442695, %v2151_v40  ;;  %v1271_v59 = vsub.f32 %v1175_v42, %v5058_v50  ;;  %v1433_v61 = vpop.xlane.xlu1 %1432  ;;  %2436 = vst.msk [vmem:[#allocation3 + $0x18] sm:$0xff] %vm1550_vm1, %v2404_v55  ;;  %v1202_v40 = vld [vmem:[#allocation2 + $0x20] sm:$0xff] }
 0x21c   : > { %v2255_v58 = vmul.f32 1.442695, %v2152_v49  ;;  %v3954_v63 = vpop.eup %3953  ;;  %v1521_v35 = vadd.f32 %v1433_v61, %v1201_v53  ;;  %v1834_v36 = vpop.f32.mrf.mxu2  ;;  %v2085_v49 = vld [vmem:[#allocation3 + $0x20] sm:$0xff] }
 0x21d   : > { %v1374_v0 = vmul.f32 1.442695, %v1270_v47  ;;  %v3956_v62 = vpop.eup %3955  ;;  %3959 = vpow2.f32 %v2253_v57  ;;  %v1376_v60 = vmul.f32 1.442695, %v1271_v59  ;;  %v1993_v37 = vmul.f32 %v1834_v36, %v5058_v50  ;;  %v1923_v38 = vpop.f32.mrf.mxu3 }
 0x21e   : > { %v947_v39 = vpop.f32.mrf.mxu0  ;;  %v2359_v34 = vadd.f32 %v3954_v63, %v3952_v56  ;;  %v3958_v41 = vpop.eup %3957  ;;  %3961 = vpow2.f32 %v2255_v58  ;;  %1554 = vst.msk [vmem:[#allocation2 + $0x18] sm:$0xff] %vm1550_vm1, %v1521_v35  ;;  %v1994_v43 = vmul.f32 %v1923_v38, %v5058_v50 }
 0x21f   : > { %v1107_v44 = vmul.f32 %v5058_v50, %v947_v39  ;;  %v1036_v33 = vpop.f32.mrf.mxu1  ;;  %3963 = vpow2.f32 %v1376_v60  ;;  %v2057_v45 = vadd.f32 %v1993_v37, %v5060_v51  ;;  %v1479_v48 = vadd.f32 %v3958_v41, %v3956_v62 }
 0x220   : > { %v1108_v46 = vmul.f32 %v5058_v50, %v1036_v33  ;;  %2360 = vadd.xlane.f32.xlu2 %v2359_v34  ;;  %3965 = vpow2.f32 %v1374_v0  ;;  %v2058_v42 = vadd.f32 %v1994_v43, %v5063_v54  ;;  %v1436_v55 = vpop.xlane.xlu2 %1435  ;;  %v2319_v56 = vpop.xlane.xlu0 %2318 }
 0x221   : > { %v1176_v52 = vadd.f32 %v5060_v51, %v1107_v44  ;;  %v2153_v53 = vsub.f32 %v2057_v45, %v5058_v50  ;;  %1480 = vadd.xlane.f32.xlu1 %v1479_v48  ;;  %v1522_v59 = vadd.f32 %v1436_v55, %v1202_v40  ;;  %v2405_v61 = vadd.f32 %v2319_v56, %v2085_v49 }
 0x222   : > { %v1177_v47 = vadd.f32 %v5063_v54, %v1108_v46  ;;  %v2154_v57 = vsub.f32 %v2058_v42, %v5058_v50 }
 0x223   : > { %v1272_v58 = vsub.f32 %v1176_v52, %v5058_v50  ;;  %v3960_v63 = vpop.eup %3959  ;;  %v2257_v35 = vmul.f32 1.442695, %v2153_v53  ;;  %1555 = vst.msk [vmem:[#allocation2 + $0x20] sm:$0xff] %vm1550_vm1, %v1522_v59  ;;  %v2086_v52 = vld [vmem:[#allocation3 + $0x28] sm:$0xff] }
 0x224   : > { %v1273_v0 = vsub.f32 %v1177_v47, %v5058_v50  ;;  %v3962_v36 = vpop.eup %3961  ;;  %v2259_v62 = vmul.f32 1.442695, %v2154_v57  ;;  %v1836_v37 = vpop.f32.mrf.mxu2  ;;  %2437 = vst.msk [vmem:[#allocation3 + $0x20] sm:$0xff] %vm1550_vm1, %v2405_v61  ;;  %v1203_v53 = vld [vmem:[#allocation2 + $0x28] sm:$0xff]  ;;  %v1204_v61 = vld [vmem:[#allocation2 + $0x30] sm:$0xff] }
 0x225   : > { %v1378_v60 = vmul.f32 1.442695, %v1272_v58  ;;  %v3964_v38 = vpop.eup %3963  ;;  %3967 = vpow2.f32 %v2257_v35  ;;  %v1995_v34 = vmul.f32 %v1836_v37, %v5058_v50  ;;  %v1925_v41 = vpop.f32.mrf.mxu3  ;;  %v2362_v43 = vadd.f32 %v3962_v36, %v3960_v63 }
 0x226   : > { %v1380_v39 = vmul.f32 1.442695, %v1273_v0  ;;  %v950_v44 = vpop.f32.mrf.mxu0  ;;  %v3966_v33 = vpop.eup %3965  ;;  %3969 = vpow2.f32 %v2259_v62  ;;  %v1996_v45 = vmul.f32 %v1925_v41, %v5058_v50 }
 0x227   : > { %v1039_v46 = vpop.f32.mrf.mxu1  ;;  %v1109_v48 = vmul.f32 %v5058_v50, %v950_v44  ;;  %3971 = vpow2.f32 %v1378_v60  ;;  %v2059_v40 = vadd.f32 %v1995_v34, %v5060_v51  ;;  %2363 = vadd.xlane.f32.xlu0 %v2362_v43  ;;  %v1482_v42 = vadd.f32 %v3966_v33, %v3964_v38 }
 0x228   : > { %v1110_v49 = vmul.f32 %v5058_v50, %v1039_v46  ;;  %3973 = vpow2.f32 %v1380_v39  ;;  %v2060_v47 = vadd.f32 %v1996_v45, %v5063_v54  ;;  %v2322_v58 = vpop.xlane.xlu1 %2321  ;;  %v1439_v59 = vpop.xlane.xlu2 %1438 }
 0x229   : > { %v1178_v55 = vadd.f32 %v5060_v51, %v1109_v48  ;;  %v2155_v56 = vsub.f32 %v2059_v40, %v5058_v50  ;;  %1483 = vadd.xlane.f32.xlu2 %v1482_v42  ;;  %v2406_v0 = vadd.f32 %v2322_v58, %v2086_v52  ;;  %v1523_v36 = vadd.f32 %v1439_v59, %v1203_v53  ;;  %v2087_v58 = vld [vmem:[#allocation3 + $0x30] sm:$0xff] }
 0x22a   : > { %v1179_v57 = vadd.f32 %v5063_v54, %v1110_v49  ;;  %v2156_v63 = vsub.f32 %v2060_v47, %v5058_v50  ;;  %v1442_v38 = vpop.xlane.xlu0 %1441 }
 0x22b   : > { %v1274_v35 = vsub.f32 %v1178_v55, %v5058_v50  ;;  %v3968_v62 = vpop.eup %3967  ;;  %v2261_v60 = vmul.f32 1.442695, %v2155_v56  ;;  %2438 = vst.msk [vmem:[#allocation3 + $0x28] sm:$0xff] %vm1550_vm1, %v2406_v0  ;;  %v1524_v43 = vadd.f32 %v1442_v38, %v1204_v61 }
 0x22c   : > { %v1275_v37 = vsub.f32 %v1179_v57, %v5058_v50  ;;  %v3970_v39 = vpop.eup %3969  ;;  %v2263_v34 = vmul.f32 1.442695, %v2156_v63  ;;  %v1839_v44 = vpop.f32.mrf.mxu2  ;;  %1556 = vst.msk [vmem:[#allocation2 + $0x28] sm:$0xff] %vm1550_vm1, %v1523_v36  ;;  %v1205_v36 = vld [vmem:[#allocation2 + $0x38] sm:$0xff] }
 0x22d   : > { %v1382_v41 = vmul.f32 1.442695, %v1274_v35  ;;  %v3972_v33 = vpop.eup %3971  ;;  %3975 = vpow2.f32 %v2261_v60  ;;  %v1997_v46 = vmul.f32 %v1839_v44, %v5058_v50  ;;  %v1928_v48 = vpop.f32.mrf.mxu3  ;;  %v2365_v49 = vadd.f32 %v3970_v39, %v3968_v62  ;;  %1557 = vst.msk [vmem:[#allocation2 + $0x30] sm:$0xff] %vm1550_vm1, %v1524_v43 }
 0x22e   : > { %v1384_v45 = vmul.f32 1.442695, %v1275_v37  ;;  %v952_v40 = vpop.f32.mrf.mxu0  ;;  %v3974_v42 = vpop.eup %3973  ;;  %3977 = vpow2.f32 %v2263_v34  ;;  %v1998_v52 = vmul.f32 %v1928_v48, %v5058_v50 }
 0x22f   : > { %v1111_v53 = vmul.f32 %v5058_v50, %v952_v40  ;;  %v1041_v47 = vpop.f32.mrf.mxu1  ;;  %v2061_v55 = vadd.f32 %v1997_v46, %v5060_v51  ;;  %2366 = vadd.xlane.f32.xlu1 %v2365_v49  ;;  %v1485_v57 = vadd.f32 %v3974_v42, %v3972_v33 }
 0x230   : > { %3979 = vpow2.f32 %v1384_v45  ;;  %v1112_v56 = vmul.f32 %v5058_v50, %v1041_v47  ;;  %v2062_v59 = vadd.f32 %v1998_v52, %v5063_v54  ;;  %v2325_v0 = vpop.xlane.xlu2 %2324 }
 0x231   : > { %3981 = vpow2.f32 %v1382_v41  ;;  %v1180_v61 = vadd.f32 %v5060_v51, %v1111_v53  ;;  %v2157_v63 = vsub.f32 %v2061_v55, %v5058_v50  ;;  %1486 = vadd.xlane.f32.xlu0 %v1485_v57  ;;  %v2407_v37 = vadd.f32 %v2325_v0, %v2087_v58 }
 0x232   : > { %v1181_v35 = vadd.f32 %v5063_v54, %v1112_v56  ;;  %v2158_v62 = vsub.f32 %v2062_v59, %v5058_v50 }
 0x233   : > { %v1276_v60 = vsub.f32 %v1180_v61, %v5058_v50  ;;  %v3976_v38 = vpop.eup %3975  ;;  %v2265_v39 = vmul.f32 1.442695, %v2157_v63  ;;  %v1445_v41 = vpop.xlane.xlu1 %1444  ;;  %2439 = vst.msk [vmem:[#allocation3 + $0x30] sm:$0xff] %vm1550_vm1, %v2407_v37  ;;  %v2088_v63 = vld [vmem:[#allocation3 + $0x38] sm:$0xff]  ;;  %v1206_v37 = vld [vmem:[#allocation2 + $0x40] sm:$0xff] }
 0x234   : > { %v1277_v34 = vsub.f32 %v1181_v35, %v5058_v50  ;;  %v3978_v43 = vpop.eup %3977  ;;  %v2267_v44 = vmul.f32 1.442695, %v2158_v62  ;;  %v1525_v45 = vadd.f32 %v1445_v41, %v1205_v36  ;;  %v1841_v46 = vpop.f32.mrf.mxu2 }
 0x235   : > { %v1386_v33 = vmul.f32 1.442695, %v1276_v60  ;;  %3983 = vpow2.f32 %v2265_v39  ;;  %v1999_v49 = vmul.f32 %v1841_v46, %v5058_v50  ;;  %v1930_v42 = vpop.f32.mrf.mxu3  ;;  %v2368_v52 = vadd.f32 %v3978_v43, %v3976_v38 }
 0x236   : > { %v3980_v48 = vpop.eup %3979  ;;  %v1388_v40 = vmul.f32 1.442695, %v1277_v34  ;;  %v955_v53 = vpop.f32.mrf.mxu0  ;;  %3985 = vpow2.f32 %v2267_v44  ;;  %1558 = vst.msk [vmem:[#allocation2 + $0x38] sm:$0xff] %vm1550_vm1, %v1525_v45  ;;  %v2000_v55 = vmul.f32 %v1930_v42, %v5058_v50 }
 0x237   : > { %v3982_v47 = vpop.eup %3981  ;;  %v1044_v56 = vpop.f32.mrf.mxu1  ;;  %v1113_v57 = vmul.f32 %v5058_v50, %v955_v53  ;;  %3987 = vpow2.f32 %v1386_v33  ;;  %v2063_v58 = vadd.f32 %v1999_v49, %v5060_v51  ;;  %2369 = vadd.xlane.f32.xlu2 %v2368_v52 }
 0x238   : > { %v1114_v59 = vmul.f32 %v5058_v50, %v1044_v56  ;;  %v1488_v61 = vadd.f32 %v3982_v47, %v3980_v48  ;;  %3989 = vpow2.f32 %v1388_v40  ;;  %v2064_v35 = vadd.f32 %v2000_v55, %v5063_v54  ;;  %v2328_v60 = vpop.xlane.xlu0 %2327 }
 0x239   : > { %v1182_v0 = vadd.f32 %v5060_v51, %v1113_v57  ;;  %v2159_v36 = vsub.f32 %v2063_v58, %v5058_v50  ;;  %v2408_v34 = vadd.f32 %v2328_v60, %v2088_v63 }
 0x23a   : > { %v1183_v62 = vadd.f32 %v5063_v54, %v1114_v59  ;;  %1489 = vadd.xlane.f32.xlu1 %v1488_v61  ;;  %v2160_v38 = vsub.f32 %v2064_v35, %v5058_v50 }
 0x23b   : > { %v1278_v39 = vsub.f32 %v1182_v0, %v5058_v50  ;;  %v3984_v41 = vpop.eup %3983  ;;  %v2269_v43 = vmul.f32 1.442695, %v2159_v36  ;;  %v1448_v33 = vpop.xlane.xlu2 %1447  ;;  %2440 = vst.msk [vmem:[#allocation3 + $0x38] sm:$0xff] %vm1550_vm1, %v2408_v34  ;;  %v2089_v36 = vld [vmem:[#allocation3 + $0x40] sm:$0xff]  ;;  %v1207_v34 = vld [vmem:[#allocation2 + $0x48] sm:$0xff] }
 0x23c   : > { %v1279_v44 = vsub.f32 %v1183_v62, %v5058_v50  ;;  %v3986_v45 = vpop.eup %3985  ;;  %v2271_v46 = vmul.f32 1.442695, %v2160_v38  ;;  %v1526_v40 = vadd.f32 %v1448_v33, %v1206_v37  ;;  %v1844_v49 = vpop.f32.mrf.mxu2 }
 0x23d   : > { %v1390_v48 = vmul.f32 1.442695, %v1278_v39  ;;  %v3988_v42 = vpop.eup %3987  ;;  %3991 = vpow2.f32 %v2269_v43  ;;  %v2001_v53 = vmul.f32 %v1844_v49, %v5058_v50  ;;  %v1933_v47 = vpop.f32.mrf.mxu3  ;;  %v2371_v56 = vadd.f32 %v3986_v45, %v3984_v41 }
 0x23e   : > { %v1392_v52 = vmul.f32 1.442695, %v1279_v44  ;;  %v957_v55 = vpop.f32.mrf.mxu0  ;;  %v3990_v57 = vpop.eup %3989  ;;  %3993 = vpow2.f32 %v2271_v46  ;;  %1559 = vst.msk [vmem:[#allocation2 + $0x40] sm:$0xff] %vm1550_vm1, %v1526_v40  ;;  %v2002_v58 = vmul.f32 %v1933_v47, %v5058_v50 }
 0x23f   : > { %v1115_v59 = vmul.f32 %v5058_v50, %v957_v55  ;;  %v1046_v61 = vpop.f32.mrf.mxu1  ;;  %v2065_v63 = vadd.f32 %v2001_v53, %v5060_v51  ;;  %2372 = vadd.xlane.f32.xlu0 %v2371_v56  ;;  %v1491_v0 = vadd.f32 %v3990_v57, %v3988_v42 }
 0x240   : > { %3995 = vpow2.f32 %v1392_v52  ;;  %v1116_v35 = vmul.f32 %v5058_v50, %v1046_v61  ;;  %v2066_v62 = vadd.f32 %v2002_v58, %v5063_v54  ;;  %v2331_v39 = vpop.xlane.xlu1 %2330 }
 0x241   : > { %3997 = vpow2.f32 %v1390_v48  ;;  %v1184_v60 = vadd.f32 %v5060_v51, %v1115_v59  ;;  %v2161_v37 = vsub.f32 %v2065_v63, %v5058_v50  ;;  %1492 = vadd.xlane.f32.xlu2 %v1491_v0  ;;  %v2409_v44 = vadd.f32 %v2331_v39, %v2089_v36 }
 0x242   : > { %v1185_v38 = vadd.f32 %v5063_v54, %v1116_v35  ;;  %v2162_v41 = vsub.f32 %v2066_v62, %v5058_v50  ;;  %v1451_v48 = vpop.xlane.xlu0 %1450 }
 0x243   : > { %v1280_v43 = vsub.f32 %v1184_v60, %v5058_v50  ;;  %v3992_v33 = vpop.eup %3991  ;;  %v2273_v45 = vmul.f32 1.442695, %v2161_v37  ;;  %2441 = vst.msk [vmem:[#allocation3 + $0x40] sm:$0xff] %vm1550_vm1, %v2409_v44  ;;  %v1527_v52 = vadd.f32 %v1451_v48, %v1207_v34  ;;  %v2090_v37 = vld [vmem:[#allocation3 + $0x48] sm:$0xff]  ;;  %v1208_v44 = vld [vmem:[#allocation2 + $0x50] sm:$0xff] }
 0x244   : > { %v1281_v46 = vsub.f32 %v1185_v38, %v5058_v50  ;;  %v3994_v40 = vpop.eup %3993  ;;  %v2275_v49 = vmul.f32 1.442695, %v2162_v41  ;;  %v1846_v53 = vpop.f32.mrf.mxu2 }
 0x245   : > { %v1394_v42 = vmul.f32 1.442695, %v1280_v43  ;;  %3999 = vpow2.f32 %v2273_v45  ;;  %v2003_v56 = vmul.f32 %v1846_v53, %v5058_v50  ;;  %v1935_v57 = vpop.f32.mrf.mxu3  ;;  %v2374_v58 = vadd.f32 %v3994_v40, %v3992_v33  ;;  %1560 = vst.msk [vmem:[#allocation2 + $0x48] sm:$0xff] %vm1550_vm1, %v1527_v52 }
 0x246   : > { %v3996_v47 = vpop.eup %3995  ;;  %v1396_v55 = vmul.f32 1.442695, %v1281_v46  ;;  %v960_v59 = vpop.f32.mrf.mxu0  ;;  %4001 = vpow2.f32 %v2275_v49  ;;  %v2004_v63 = vmul.f32 %v1935_v57, %v5058_v50 }
 0x247   : > { %v3998_v61 = vpop.eup %3997  ;;  %v1049_v35 = vpop.f32.mrf.mxu1  ;;  %v1117_v0 = vmul.f32 %v5058_v50, %v960_v59  ;;  %4003 = vpow2.f32 %v1394_v42  ;;  %v2067_v36 = vadd.f32 %v2003_v56, %v5060_v51  ;;  %2375 = vadd.xlane.f32.xlu1 %v2374_v58 }
 0x248   : > { %v1118_v62 = vmul.f32 %v5058_v50, %v1049_v35  ;;  %v1494_v60 = vadd.f32 %v3998_v61, %v3996_v47  ;;  %4005 = vpow2.f32 %v1396_v55  ;;  %v2068_v38 = vadd.f32 %v2004_v63, %v5063_v54  ;;  %v2334_v43 = vpop.xlane.xlu2 %2333 }
 0x249   : > { %v1186_v39 = vadd.f32 %v5060_v51, %v1117_v0  ;;  %v2163_v34 = vsub.f32 %v2067_v36, %v5058_v50  ;;  %v2410_v46 = vadd.f32 %v2334_v43, %v2090_v37 }
 0x24a   : > { %v1187_v41 = vadd.f32 %v5063_v54, %v1118_v62  ;;  %1495 = vadd.xlane.f32.xlu0 %v1494_v60  ;;  %v2164_v33 = vsub.f32 %v2068_v38, %v5058_v50 }
 0x24b   : > { %v1282_v45 = vsub.f32 %v1186_v39, %v5058_v50  ;;  %v4000_v48 = vpop.eup %3999  ;;  %v2277_v40 = vmul.f32 1.442695, %v2163_v34  ;;  %v1454_v42 = vpop.xlane.xlu1 %1453  ;;  %2442 = vst.msk [vmem:[#allocation3 + $0x48] sm:$0xff] %vm1550_vm1, %v2410_v46  ;;  %v2091_v34 = vld [vmem:[#allocation3 + $0x50] sm:$0xff]  ;;  %v1209_v46 = vld [vmem:[#allocation2 + $0x58] sm:$0xff] }
 0x24c   : > { %v1283_v49 = vsub.f32 %v1187_v41, %v5058_v50  ;;  %v4002_v52 = vpop.eup %4001  ;;  %v2279_v53 = vmul.f32 1.442695, %v2164_v33  ;;  %v1528_v55 = vadd.f32 %v1454_v42, %v1208_v44  ;;  %v1849_v56 = vpop.f32.mrf.mxu2 }
 0x24d   : > { %v1398_v47 = vmul.f32 1.442695, %v1282_v45  ;;  %v4004_v57 = vpop.eup %4003  ;;  %4007 = vpow2.f32 %v2277_v40  ;;  %v2005_v59 = vmul.f32 %v1849_v56, %v5058_v50  ;;  %v1938_v61 = vpop.f32.mrf.mxu3  ;;  %v2377_v35 = vadd.f32 %v4002_v52, %v4000_v48 }
 0x24e   : > { %v1400_v58 = vmul.f32 1.442695, %v1283_v49  ;;  %v962_v63 = vpop.f32.mrf.mxu0  ;;  %v4006_v0 = vpop.eup %4005  ;;  %4009 = vpow2.f32 %v2279_v53  ;;  %1561 = vst.msk [vmem:[#allocation2 + $0x50] sm:$0xff] %vm1550_vm1, %v1528_v55  ;;  %v2006_v36 = vmul.f32 %v1938_v61, %v5058_v50 }
 0x24f   : > { %v1119_v62 = vmul.f32 %v5058_v50, %v962_v63  ;;  %v1051_v60 = vpop.f32.mrf.mxu1  ;;  %v2069_v37 = vadd.f32 %v2005_v59, %v5060_v51  ;;  %2378 = vadd.xlane.f32.xlu2 %v2377_v35  ;;  %v1497_v39 = vadd.f32 %v4006_v0, %v4004_v57 }
 0x250   : > { %4011 = vpow2.f32 %v1400_v58  ;;  %v1120_v38 = vmul.f32 %v5058_v50, %v1051_v60  ;;  %v2070_v41 = vadd.f32 %v2006_v36, %v5063_v54  ;;  %v2337_v45 = vpop.xlane.xlu0 %2336 }
 0x251   : > { %4013 = vpow2.f32 %v1398_v47  ;;  %v1188_v43 = vadd.f32 %v5060_v51, %v1119_v62  ;;  %v2165_v44 = vsub.f32 %v2069_v37, %v5058_v50  ;;  %1498 = vadd.xlane.f32.xlu1 %v1497_v39  ;;  %v2411_v49 = vadd.f32 %v2337_v45, %v2091_v34 }
 0x252   : > { %v1189_v33 = vadd.f32 %v5063_v54, %v1120_v38  ;;  %v2166_v48 = vsub.f32 %v2070_v41, %v5058_v50  ;;  %v1457_v47 = vpop.xlane.xlu2 %1456 }
 0x253   : > { %v1284_v40 = vsub.f32 %v1188_v43, %v5058_v50  ;;  %v4008_v42 = vpop.eup %4007  ;;  %v2281_v52 = vmul.f32 1.442695, %v2165_v44  ;;  %2443 = vst.msk [vmem:[#allocation3 + $0x50] sm:$0xff] %vm1550_vm1, %v2411_v49  ;;  %v1529_v58 = vadd.f32 %v1457_v47, %v1209_v46  ;;  %v2092_v44 = vld [vmem:[#allocation3 + $0x58] sm:$0xff]  ;;  %v1210_v49 = vld [vmem:[#allocation2 + $0x60] sm:$0xff] }
 0x254   : > { %v1285_v53 = vsub.f32 %v1189_v33, %v5058_v50  ;;  %v4010_v55 = vpop.eup %4009  ;;  %v2283_v56 = vmul.f32 1.442695, %v2166_v48  ;;  %v1851_v59 = vpop.f32.mrf.mxu2 }
 0x255   : > { %v1402_v57 = vmul.f32 1.442695, %v1284_v40  ;;  %4015 = vpow2.f32 %v2281_v52  ;;  %v2007_v35 = vmul.f32 %v1851_v59, %v5058_v50  ;;  %v1940_v0 = vpop.f32.mrf.mxu3  ;;  %v2380_v36 = vadd.f32 %v4010_v55, %v4008_v42  ;;  %1562 = vst.msk [vmem:[#allocation2 + $0x58] sm:$0xff] %vm1550_vm1, %v1529_v58 }
 0x256   : > { %v4012_v61 = vpop.eup %4011  ;;  %v1404_v63 = vmul.f32 1.442695, %v1285_v53  ;;  %v965_v62 = vpop.f32.mrf.mxu0  ;;  %4017 = vpow2.f32 %v2283_v56  ;;  %v2008_v37 = vmul.f32 %v1940_v0, %v5058_v50 }
 0x257   : > { %v4014_v60 = vpop.eup %4013  ;;  %v1054_v38 = vpop.f32.mrf.mxu1  ;;  %v1121_v39 = vmul.f32 %v5058_v50, %v965_v62  ;;  %4019 = vpow2.f32 %v1402_v57  ;;  %v2071_v34 = vadd.f32 %v2007_v35, %v5060_v51  ;;  %2381 = vadd.xlane.f32.xlu0 %v2380_v36 }
 0x258   : > { %v1122_v41 = vmul.f32 %v5058_v50, %v1054_v38  ;;  %v1500_v43 = vadd.f32 %v4014_v60, %v4012_v61  ;;  %4021 = vpow2.f32 %v1404_v63  ;;  %v2072_v33 = vadd.f32 %v2008_v37, %v5063_v54  ;;  %v2340_v40 = vpop.xlane.xlu1 %2339 }
 0x259   : > { %v1190_v45 = vadd.f32 %v5060_v51, %v1121_v39  ;;  %v2167_v46 = vsub.f32 %v2071_v34, %v5058_v50  ;;  %v2412_v53 = vadd.f32 %v2340_v40, %v2092_v44 }
 0x25a   : > { %v1191_v48 = vadd.f32 %v5063_v54, %v1122_v41  ;;  %1501 = vadd.xlane.f32.xlu2 %v1500_v43  ;;  %v2168_v42 = vsub.f32 %v2072_v33, %v5058_v50 }
 0x25b   : > { %v1286_v52 = vsub.f32 %v1190_v45, %v5058_v50  ;;  %v4016_v47 = vpop.eup %4015  ;;  %v2285_v55 = vmul.f32 1.442695, %v2167_v46  ;;  %v1460_v57 = vpop.xlane.xlu0 %1459  ;;  %2444 = vst.msk [vmem:[#allocation3 + $0x58] sm:$0xff] %vm1550_vm1, %v2412_v53  ;;  %v2093_v46 = vld [vmem:[#allocation3 + $0x60] sm:$0xff]  ;;  %v1211_v53 = vld [vmem:[#allocation2 + $0x68] sm:$0xff] }
 0x25c   : > { %v1287_v56 = vsub.f32 %v1191_v48, %v5058_v50  ;;  %v4018_v58 = vpop.eup %4017  ;;  %v2287_v59 = vmul.f32 1.442695, %v2168_v42  ;;  %v1530_v63 = vadd.f32 %v1460_v57, %v1210_v49  ;;  %v1854_v35 = vpop.f32.mrf.mxu2 }
 0x25d   : > { %v1406_v61 = vmul.f32 1.442695, %v1286_v52  ;;  %v4020_v0 = vpop.eup %4019  ;;  %4023 = vpow2.f32 %v2285_v55  ;;  %v2009_v62 = vmul.f32 %v1854_v35, %v5058_v50  ;;  %v1943_v60 = vpop.f32.mrf.mxu3  ;;  %v2383_v38 = vadd.f32 %v4018_v58, %v4016_v47 }
 0x25e   : > { %v1408_v36 = vmul.f32 1.442695, %v1287_v56  ;;  %v967_v37 = vpop.f32.mrf.mxu0  ;;  %v4022_v39 = vpop.eup %4021  ;;  %4025 = vpow2.f32 %v2287_v59  ;;  %1563 = vst.msk [vmem:[#allocation2 + $0x60] sm:$0xff] %vm1550_vm1, %v1530_v63  ;;  %v2010_v34 = vmul.f32 %v1943_v60, %v5058_v50 }
 0x25f   : > { %v1123_v41 = vmul.f32 %v5058_v50, %v967_v37  ;;  %v1056_v43 = vpop.f32.mrf.mxu1  ;;  %v2073_v44 = vadd.f32 %v2009_v62, %v5060_v51  ;;  %2384 = vadd.xlane.f32.xlu1 %v2383_v38  ;;  %v1503_v45 = vadd.f32 %v4022_v39, %v4020_v0 }
 0x260   : > { %4027 = vpow2.f32 %v1408_v36  ;;  %v1124_v33 = vmul.f32 %v5058_v50, %v1056_v43  ;;  %v2074_v48 = vadd.f32 %v2010_v34, %v5063_v54  ;;  %v2343_v52 = vpop.xlane.xlu2 %2342 }
 0x261   : > { %4029 = vpow2.f32 %v1406_v61  ;;  %v1192_v40 = vadd.f32 %v5060_v51, %v1123_v41  ;;  %v2169_v49 = vsub.f32 %v2073_v44, %v5058_v50  ;;  %1504 = vadd.xlane.f32.xlu0 %v1503_v45  ;;  %v2413_v56 = vadd.f32 %v2343_v52, %v2093_v46  ;;  %v2094_v46 = vld [vmem:[#allocation3 + $0x68] sm:$0xff] }
 0x262   : > { %v1193_v42 = vadd.f32 %v5063_v54, %v1124_v33  ;;  %v2170_v47 = vsub.f32 %v2074_v48, %v5058_v50  ;;  %v1463_v61 = vpop.xlane.xlu1 %1462 }
 0x263   : > { %v1288_v55 = vsub.f32 %v1192_v40, %v5058_v50  ;;  %v4024_v57 = vpop.eup %4023  ;;  %v2289_v58 = vmul.f32 1.442695, %v2169_v49  ;;  %2445 = vst.msk [vmem:[#allocation3 + $0x60] sm:$0xff] %vm1550_vm1, %v2413_v56  ;;  %v1531_v36 = vadd.f32 %v1463_v61, %v1211_v53 }
 0x264   : > { %v1289_v59 = vsub.f32 %v1193_v42, %v5058_v50  ;;  %v4026_v63 = vpop.eup %4025  ;;  %v2291_v35 = vmul.f32 1.442695, %v2170_v47  ;;  %v1856_v62 = vpop.f32.mrf.mxu2  ;;  %v1212_v42 = vld [vmem:[#allocation2 + $0x70] sm:$0xff] }
 0x265   : > { %v1410_v0 = vmul.f32 1.442695, %v1288_v55  ;;  %4031 = vpow2.f32 %v2289_v58  ;;  %v1945_v38 = vpop.f32.mrf.mxu3  ;;  %v2386_v39 = vadd.f32 %v4026_v63, %v4024_v57  ;;  %1564 = vst.msk [vmem:[#allocation2 + $0x68] sm:$0xff] %vm1550_vm1, %v1531_v36  ;;  %v2011_v52 = vmul.f32 %v1856_v62, %v5058_v50 }
 0x266   : > { %v4028_v60 = vpop.eup %4027  ;;  %v1412_v37 = vmul.f32 1.442695, %v1289_v59  ;;  %v970_v34 = vpop.f32.mrf.mxu0  ;;  %4033 = vpow2.f32 %v2291_v35  ;;  %v2012_v59 = vmul.f32 %v1945_v38, %v5058_v50 }
 0x267   : > { %v4030_v41 = vpop.eup %4029  ;;  %v1059_v43 = vpop.f32.mrf.mxu1  ;;  %v1125_v44 = vmul.f32 %v5058_v50, %v970_v34  ;;  %4035 = vpow2.f32 %v1410_v0  ;;  %2387 = vadd.xlane.f32.xlu2 %v2386_v39 }
 0x268   : > { %v1126_v33 = vmul.f32 %v5058_v50, %v1059_v43  ;;  %v1506_v45 = vadd.f32 %v4030_v41, %v4028_v60  ;;  %4037 = vpow2.f32 %v1412_v37  ;;  %v2346_v49 = vpop.xlane.xlu0 %2345  ;;  %v2075_v41 = vadd.f32 %v2011_v52, %v5060_v51 }
 0x269   : > { %v1194_v48 = vadd.f32 %v5060_v51, %v1125_v44  ;;  %v2414_v47 = vadd.f32 %v2346_v49, %v2094_v46 }
 0x26a   : > { %v1195_v40 = vadd.f32 %v5063_v54, %v1126_v33  ;;  %1507 = vadd.xlane.f32.xlu1 %v1506_v45 }
 0x26b   : > { %v1290_v53 = vsub.f32 %v1194_v48, %v5058_v50  ;;  %v4032_v55 = vpop.eup %4031  ;;  %v1466_v57 = vpop.xlane.xlu2 %1465  ;;  %2446 = vst.msk [vmem:[#allocation3 + $0x68] sm:$0xff] %vm1550_vm1, %v2414_v47  ;;  %v2095_v48 = vld [vmem:[#allocation3 + $0x70] sm:$0xff] }
 0x26c   : > { %v1291_v56 = vsub.f32 %v1195_v40, %v5058_v50  ;;  %v4034_v58 = vpop.eup %4033  ;;  %v1532_v63 = vadd.f32 %v1466_v57, %v1212_v42  ;;  %v1859_v35 = vpop.f32.mrf.mxu2  ;;  %v2076_v40 = vadd.f32 %v2012_v59, %v5063_v54 }
 0x26d   : > { %v1414_v61 = vmul.f32 1.442695, %v1290_v53  ;;  %v4036_v0 = vpop.eup %4035  ;;  %v2013_v60 = vmul.f32 %v1859_v35, %v5058_v50  ;;  %v1948_v62 = vpop.f32.mrf.mxu3  ;;  %v2389_v39 = vadd.f32 %v4034_v58, %v4032_v55  ;;  %v1213_v55 = vld [vmem:[#allocation2 + $0x78] sm:$0xff] }
 0x26e   : > { %v1416_v36 = vmul.f32 1.442695, %v1291_v56  ;;  %v972_v37 = vpop.f32.mrf.mxu0  ;;  %v4038_v34 = vpop.eup %4037  ;;  %1565 = vst.msk [vmem:[#allocation2 + $0x70] sm:$0xff] %vm1550_vm1, %v1532_v63  ;;  %v2014_v43 = vmul.f32 %v1948_v62, %v5058_v50  ;;  %v2171_v63 = vsub.f32 %v2075_v41, %v5058_v50 }
 0x26f   : > { %v1127_v38 = vmul.f32 %v5058_v50, %v972_v37  ;;  %v1061_v44 = vpop.f32.mrf.mxu1  ;;  %v2077_v33 = vadd.f32 %v2013_v60, %v5060_v51  ;;  %2390 = vadd.xlane.f32.xlu0 %v2389_v39  ;;  %v1509_v46 = vadd.f32 %v4038_v34, %v4036_v0  ;;  %v2172_v0 = vsub.f32 %v2076_v40, %v5058_v50 }
 0x270   : > { %4039 = vpow2.f32 %v1416_v36  ;;  %v1128_v45 = vmul.f32 %v5058_v50, %v1061_v44  ;;  %v2078_v49 = vadd.f32 %v2014_v43, %v5063_v54  ;;  %v2349_v47 = vpop.xlane.xlu1 %2348 }
 0x271   : > { %4041 = vpow2.f32 %v1414_v61  ;;  %v1196_v42 = vadd.f32 %v5060_v51, %v1127_v38  ;;  %v2173_v52 = vsub.f32 %v2077_v33, %v5058_v50  ;;  %1510 = vadd.xlane.f32.xlu2 %v1509_v46  ;;  %v2415_v58 = vadd.f32 %v2349_v47, %v2095_v48 }
 0x272   : > { %v1197_v53 = vadd.f32 %v5063_v54, %v1128_v45  ;;  %v2174_v56 = vsub.f32 %v2078_v49, %v5058_v50  ;;  %v1469_v35 = vpop.xlane.xlu0 %1468  ;;  %v2293_v33 = vmul.f32 1.442695, %v2171_v63  ;;  %v2295_v48 = vmul.f32 1.442695, %v2172_v0  ;;  %v2096_v49 = vld [vmem:[#allocation3 + $0x78] sm:$0xff] }
 0x273   : > { %v1292_v57 = vsub.f32 %v1196_v42, %v5058_v50  ;;  %v2297_v59 = vmul.f32 1.442695, %v2173_v52  ;;  %2447 = vst.msk [vmem:[#allocation3 + $0x70] sm:$0xff] %vm1550_vm1, %v2415_v58  ;;  %v1533_v62 = vadd.f32 %v1469_v35, %v1213_v55  ;;  %v1214_v52 = vld [vmem:[#allocation2 + $0x80] sm:$0xff] }
 0x274   : > { %v1293_v61 = vsub.f32 %v1197_v53, %v5058_v50  ;;  %v2299_v36 = vmul.f32 1.442695, %v2174_v56  ;;  %v1861_v37 = vpop.f32.mrf.mxu2 }
 0x275   : > { %v1418_v60 = vmul.f32 1.442695, %v1292_v57  ;;  %4043 = vpow2.f32 %v2297_v59  ;;  %v2015_v43 = vmul.f32 %v1861_v37, %v5058_v50  ;;  %v1950_v38 = vpop.f32.mrf.mxu3  ;;  %1566 = vst.msk [vmem:[#allocation2 + $0x78] sm:$0xff] %vm1550_vm1, %v1533_v62  ;;  %v1215_v62 = vld [vmem:[#allocation2 + $0x88] sm:$0xff] }
 0x276   : > { %v4040_v39 = vpop.eup %4039  ;;  %v1420_v34 = vmul.f32 1.442695, %v1293_v61  ;;  %4045 = vpow2.f32 %v2299_v36  ;;  %v2016_v41 = vmul.f32 %v1950_v38, %v5058_v50  ;;  %v2097_v36 = vld [vmem:[#allocation3 + $0x80] sm:$0xff] }
 0x277   : > { %v4042_v44 = vpop.eup %4041  ;;  %4047 = vpow2.f32 %v1418_v60  ;;  %v2079_v45 = vadd.f32 %v2015_v43, %v5060_v51 }
 0x278   : > { %v1512_v46 = vadd.f32 %v4042_v44, %v4040_v39  ;;  %4049 = vpow2.f32 %v1420_v34  ;;  %v2080_v40 = vadd.f32 %v2016_v41, %v5063_v54  ;;  %v2352_v47 = vpop.xlane.xlu2 %2351 }
 0x279   : > { %v2175_v42 = vsub.f32 %v2079_v45, %v5058_v50  ;;  %4051 = vpow2.f32 %v2293_v33  ;;  %v2416_v57 = vadd.f32 %v2352_v47, %v2096_v49 }
 0x27a   : > { %1513 = vadd.xlane.f32.xlu0 %v1512_v46  ;;  %v2176_v53 = vsub.f32 %v2080_v40, %v5058_v50  ;;  %4053 = vpow2.f32 %v2295_v48  ;;  %v2098_v46 = vld [vmem:[#allocation3 + $0x88] sm:$0xff]  ;;  %v1216_v40 = vld [vmem:[#allocation2 + $0x90] sm:$0xff] }
 0x27b   : > { %v4044_v55 = vpop.eup %4043  ;;  %v2301_v56 = vmul.f32 1.442695, %v2175_v42  ;;  %v1472_v58 = vpop.xlane.xlu1 %1471  ;;  %2448 = vst.msk [vmem:[#allocation3 + $0x78] sm:$0xff] %vm1550_vm1, %v2416_v57 }
 0x27c   : > { %v4046_v63 = vpop.eup %4045  ;;  %v2303_v51 = vmul.f32 1.442695, %v2176_v53  ;;  %v1534_v59 = vadd.f32 %v1472_v58, %v1214_v52  ;;  %v2099_v53 = vld [vmem:[#allocation3 + $0x90] sm:$0xff] }
 0x27d   : > { %v4048_v61 = vpop.eup %4047  ;;  %4055 = vpow2.f32 %v2301_v56  ;;  %v2395_v54 = vadd.f32 %v4046_v63, %v4044_v55  ;;  %v1217_v55 = vld [vmem:[#allocation2 + $0x98] sm:$0xff] }
 0x27e   : > { %v4050_v35 = vpop.eup %4049  ;;  %4057 = vpow2.f32 %v2303_v51  ;;  %1567 = vst.msk [vmem:[#allocation2 + $0x80] sm:$0xff] %vm1550_vm1, %v1534_v59  ;;  %v2100_v63 = vld [vmem:[#allocation3 + $0x98] sm:$0xff]  ;;  %v1218_v59 = vld [vmem:[#allocation2 + $0xa0] sm:$0xff] }
 0x27f   : > { %2396 = vadd.xlane.f32.xlu2 %v2395_v54  ;;  %v1515_v0 = vadd.f32 %v4050_v35, %v4048_v61  ;;  %v4052_v60 = vpop.eup %4051 }
 0x280   : > { %v4054_v37 = vpop.eup %4053  ;;  %v2355_v39 = vpop.xlane.xlu0 %2354 }
 0x281   : > { %1516 = vadd.xlane.f32.xlu1 %v1515_v0  ;;  %v2417_v43 = vadd.f32 %v2355_v39, %v2097_v36  ;;  %v2392_v45 = vadd.f32 %v4054_v37, %v4052_v60  ;;  %v2101_v0 = vld [vmem:[#allocation3 + $0xa0] sm:$0xff]  ;;  %v1219_v60 = vld [vmem:[#allocation2 + $0xa8] sm:$0xff] }
 0x283   : > { %v4056_v34 = vpop.eup %4055  ;;  %v1475_v38 = vpop.xlane.xlu2 %1474  ;;  %2449 = vst.msk [vmem:[#allocation3 + $0x80] sm:$0xff] %vm1550_vm1, %v2417_v43 }
 0x284   : > { %v4058_v44 = vpop.eup %4057  ;;  %v1535_v41 = vadd.f32 %v1475_v38, %v1215_v62  ;;  %v1220_v38 = vld [vmem:[#allocation2 + $0xb0] sm:$0xff] }
 0x285   : > { %v2398_v33 = vadd.f32 %v4058_v44, %v4056_v34  ;;  %v2102_v34 = vld [vmem:[#allocation3 + $0xa8] sm:$0xff] }
 0x286   : > { %1568 = vst.msk [vmem:[#allocation2 + $0x88] sm:$0xff] %vm1550_vm1, %v1535_v41 }
 0x287   : > { %2399 = vadd.xlane.f32.xlu0 %v2398_v33 }
 0x289   : > { %2393 = vadd.xlane.f32.xlu1 %v2392_v45  ;;  %v2358_v48 = vpop.xlane.xlu1 %2357  ;;  %v2103_v45 = vld [vmem:[#allocation3 + $0xb0] sm:$0xff] }
 0x28a   : > { %v2418_v49 = vadd.f32 %v2358_v48, %v2098_v46  ;;  %v1221_v48 = vld [vmem:[#allocation2 + $0xb8] sm:$0xff] }
 0x28b   : > { %v1478_v42 = vpop.xlane.xlu0 %1477 }
 0x28c   : > { %2450 = vst.msk [vmem:[#allocation3 + $0x88] sm:$0xff] %vm1550_vm1, %v2418_v49  ;;  %v1536_v52 = vadd.f32 %v1478_v42, %v1216_v40 }
 0x28e   : > { %1569 = vst.msk [vmem:[#allocation2 + $0x90] sm:$0xff] %vm1550_vm1, %v1536_v52  ;;  %v2104_v52 = vld [vmem:[#allocation3 + $0xb8] sm:$0xff] }
 0x293   : > { %v2361_v47 = vpop.xlane.xlu2 %2360 }
 0x294   : > { %v2419_v56 = vadd.f32 %v2361_v47, %v2099_v53  ;;  %v1481_v57 = vpop.xlane.xlu1 %1480  ;;  %v1222_v47 = vld [vmem:[#allocation2 + $0xc0] sm:$0xff] }
 0x295   : > { %v1537_v58 = vadd.f32 %v1481_v57, %v1217_v55 }
 0x296   : > { %2451 = vst.msk [vmem:[#allocation3 + $0x90] sm:$0xff] %vm1550_vm1, %v2419_v56 }
 0x297   : > { %1570 = vst.msk [vmem:[#allocation2 + $0x98] sm:$0xff] %vm1550_vm1, %v1537_v58  ;;  %v2105_v58 = vld [vmem:[#allocation3 + $0xc0] sm:$0xff] }
 0x29a   : > { %v2364_v51 = vpop.xlane.xlu0 %2363 }
 0x29b   : > { %v2420_v61 = vadd.f32 %v2364_v51, %v2100_v63  ;;  %v1223_v51 = vld [vmem:[#allocation2 + $0xc8] sm:$0xff] }
 0x29c   : > { %v1484_v54 = vpop.xlane.xlu2 %1483 }
 0x29d   : > { %2452 = vst.msk [vmem:[#allocation3 + $0x98] sm:$0xff] %vm1550_vm1, %v2420_v61  ;;  %v1538_v35 = vadd.f32 %v1484_v54, %v1218_v59 }
 0x29f   : > { %1571 = vst.msk [vmem:[#allocation2 + $0xa0] sm:$0xff] %vm1550_vm1, %v1538_v35  ;;  %v2106_v35 = vld [vmem:[#allocation3 + $0xc8] sm:$0xff] }
 0x2a2   : > { %v2367_v36 = vpop.xlane.xlu1 %2366 }
 0x2a3   : > { %v2421_v62 = vadd.f32 %v2367_v36, %v2101_v0  ;;  %v1224_v36 = vld [vmem:[#allocation2 + $0xd0] sm:$0xff] }
 0x2a4   : > { %v1487_v37 = vpop.xlane.xlu0 %1486 }
 0x2a5   : > { %2453 = vst.msk [vmem:[#allocation3 + $0xa0] sm:$0xff] %vm1550_vm1, %v2421_v62  ;;  %v1539_v39 = vadd.f32 %v1487_v37, %v1219_v60 }
 0x2a7   : > { %1572 = vst.msk [vmem:[#allocation2 + $0xa8] sm:$0xff] %vm1550_vm1, %v1539_v39  ;;  %v2107_v39 = vld [vmem:[#allocation3 + $0xd0] sm:$0xff] }
 0x2aa   : > { %v2370_v43 = vpop.xlane.xlu2 %2369 }
 0x2ab   : > { %v2422_v44 = vadd.f32 %v2370_v43, %v2102_v34  ;;  %v1225_v43 = vld [vmem:[#allocation2 + $0xd8] sm:$0xff] }
 0x2ad   : > { %v1490_v41 = vpop.xlane.xlu1 %1489  ;;  %2454 = vst.msk [vmem:[#allocation3 + $0xa8] sm:$0xff] %vm1550_vm1, %v2422_v44 }
 0x2ae   : > { %v1540_v33 = vadd.f32 %v1490_v41, %v1220_v38 }
 0x2b0   : > { %1573 = vst.msk [vmem:[#allocation2 + $0xb0] sm:$0xff] %vm1550_vm1, %v1540_v33  ;;  %v2108_v33 = vld [vmem:[#allocation3 + $0xd8] sm:$0xff] }
 0x2b2   : > { %v2373_v46 = vpop.xlane.xlu0 %2372 }
 0x2b3   : > { %v2423_v40 = vadd.f32 %v2373_v46, %v2103_v45  ;;  %v1226_v46 = vld [vmem:[#allocation2 + $0xe0] sm:$0xff] }
 0x2b4   : > { %v1493_v49 = vpop.xlane.xlu2 %1492 }
 0x2b5   : > { %2455 = vst.msk [vmem:[#allocation3 + $0xb0] sm:$0xff] %vm1550_vm1, %v2423_v40  ;;  %v1541_v42 = vadd.f32 %v1493_v49, %v1221_v48 }
 0x2b7   : > { %1574 = vst.msk [vmem:[#allocation2 + $0xb8] sm:$0xff] %vm1550_vm1, %v1541_v42  ;;  %v2109_v42 = vld [vmem:[#allocation3 + $0xe0] sm:$0xff] }
 0x2ba   : > { %v2376_v53 = vpop.xlane.xlu1 %2375 }
 0x2bb   : > { %v2424_v55 = vadd.f32 %v2376_v53, %v2104_v52  ;;  %v1227_v53 = vld [vmem:[#allocation2 + $0xe8] sm:$0xff] }
 0x2bd   : > { %v1496_v56 = vpop.xlane.xlu0 %1495  ;;  %2456 = vst.msk [vmem:[#allocation3 + $0xb8] sm:$0xff] %vm1550_vm1, %v2424_v55 }
 0x2be   : > { %v1542_v57 = vadd.f32 %v1496_v56, %v1222_v47 }
 0x2c0   : > { %1575 = vst.msk [vmem:[#allocation2 + $0xc0] sm:$0xff] %vm1550_vm1, %v1542_v57  ;;  %v1228_v57 = vld [vmem:[#allocation2 + $0xf0] sm:$0xff] }
 0x2c2   : > { %v2379_v63 = vpop.xlane.xlu2 %2378 }
 0x2c3   : > { %v2425_v59 = vadd.f32 %v2379_v63, %v2105_v58 }
 0x2c4   : > { %v1499_v61 = vpop.xlane.xlu1 %1498 }
 0x2c5   : > { %2457 = vst.msk [vmem:[#allocation3 + $0xc0] sm:$0xff] %vm1550_vm1, %v2425_v59  ;;  %v1543_v54 = vadd.f32 %v1499_v61, %v1223_v51  ;;  %v2111_v51 = vld [vmem:[#allocation3 + $0xf0] sm:$0xff]  ;;  %v1229_v61 = vld [vmem:[#allocation2 + $0xf8] sm:$0xff] }
 0x2c7   : > { %1576 = vst.msk [vmem:[#allocation2 + $0xc8] sm:$0xff] %vm1550_vm1, %v1543_v54 }
 0x2ca   : > { %v2382_v0 = vpop.xlane.xlu0 %2381 }
 0x2cb   : > { %v2426_v60 = vadd.f32 %v2382_v0, %v2106_v35 }
 0x2cd   : > { %v1502_v62 = vpop.xlane.xlu2 %1501  ;;  %2458 = vst.msk [vmem:[#allocation3 + $0xc8] sm:$0xff] %vm1550_vm1, %v2426_v60 }
 0x2ce   : > { %v1544_v37 = vadd.f32 %v1502_v62, %v1224_v36  ;;  %v2112_v36 = vld [vmem:[#allocation3 + $0xf8] sm:$0xff]  ;;  %v2110_v62 = vld [vmem:[#allocation3 + $0xe8] sm:$0xff] }
 0x2d0   : > { %1577 = vst.msk [vmem:[#allocation2 + $0xd0] sm:$0xff] %vm1550_vm1, %v1544_v37 }
 0x2d2   : > { %v2385_v34 = vpop.xlane.xlu1 %2384 }
 0x2d3   : > { %v2427_v38 = vadd.f32 %v2385_v34, %v2107_v39 }
 0x2d4   : > { %v1505_v44 = vpop.xlane.xlu0 %1504 }
 0x2d5   : > { %2459 = vst.msk [vmem:[#allocation3 + $0xd0] sm:$0xff] %vm1550_vm1, %v2427_v38  ;;  %v1545_v41 = vadd.f32 %v1505_v44, %v1225_v43 }
 0x2d7   : > { %1578 = vst.msk [vmem:[#allocation2 + $0xd8] sm:$0xff] %vm1550_vm1, %v1545_v41 }
 0x2da   : > { %v2388_v45 = vpop.xlane.xlu2 %2387 }
 0x2db   : > { %v2428_v48 = vadd.f32 %v2388_v45, %v2108_v33 }
 0x2dd   : > { %v1508_v40 = vpop.xlane.xlu1 %1507  ;;  %2460 = vst.msk [vmem:[#allocation3 + $0xd8] sm:$0xff] %vm1550_vm1, %v2428_v48 }
 0x2de   : > { %v1546_v49 = vadd.f32 %v1508_v40, %v1226_v46 }
 0x2e0   : > { %1579 = vst.msk [vmem:[#allocation2 + $0xe0] sm:$0xff] %vm1550_vm1, %v1546_v49 }
 0x2e2   : > { %v2391_v52 = vpop.xlane.xlu0 %2390 }
 0x2e3   : > { %v2429_v47 = vadd.f32 %v2391_v52, %v2109_v42 }
 0x2e4   : > { %v1511_v55 = vpop.xlane.xlu2 %1510 }
 0x2e5   : > { %2461 = vst.msk [vmem:[#allocation3 + $0xe0] sm:$0xff] %vm1550_vm1, %v2429_v47  ;;  %v1547_v56 = vadd.f32 %v1511_v55, %v1227_v53 }
 0x2e7   : > { %1580 = vst.msk [vmem:[#allocation2 + $0xe8] sm:$0xff] %vm1550_vm1, %v1547_v56 }
 0x2ed   : > { %v1514_v58 = vpop.xlane.xlu0 %1513 }
 0x2ee   : > { %v1548_v63 = vadd.f32 %v1514_v58, %v1228_v57 }
 0x2f0   : > { %1581 = vst.msk [vmem:[#allocation2 + $0xf0] sm:$0xff] %vm1550_vm1, %v1548_v63 }
 0x2f2   : > { %v2397_v59 = vpop.xlane.xlu2 %2396 }
 0x2f3   : > { %v2431_v54 = vadd.f32 %v2397_v59, %v2111_v51 }
 0x2f4   : > { %v1517_v35 = vpop.xlane.xlu1 %1516 }
 0x2f5   : > { %2463 = vst.msk [vmem:[#allocation3 + $0xf0] sm:$0xff] %vm1550_vm1, %v2431_v54  ;;  %v1549_v0 = vadd.f32 %v1517_v35, %v1229_v61 }
 0x2f7   : > { %1582 = vst.msk [vmem:[#allocation2 + $0xf8] sm:$0xff] %vm1550_vm1, %v1549_v0 }
 0x2fa   : > { %v2400_v60 = vpop.xlane.xlu0 %2399 }
 0x2fb   : > { %v2432_v37 = vadd.f32 %v2400_v60, %v2112_v36  ;;  %2468 = sbr.rel (%p3603_p7) target bundleno = 1153 (0x481), region = 76 }
 0x2fc   : > { %v2394_v39 = vpop.xlane.xlu1 %2393 }
 0x2fd   : > { %2464 = vst.msk [vmem:[#allocation3 + $0xf8] sm:$0xff] %vm1550_vm1, %v2432_v37  ;;  %v2430_v34 = vadd.f32 %v2394_v39, %v2110_v62 }
 0x2ff   : > { %2462 = vst.msk [vmem:[#allocation3 + $0xe8] sm:$0xff] %vm1550_vm1, %v2430_v34 }
 0x300   : > { %v2484_v43 = vunpack.c.h.bf16 %v4930_v8  ;;  %v2516_v38 = vunpack.c.h.bf16 %v4978_v24  ;;  %v2483_v44 = vunpack.c.l.bf16 %v4930_v8  ;;  %v2515_v41 = vunpack.c.l.bf16 %v4978_v24 }
 0x301   : > { %v2482_v33 = vunpack.c.h.bf16 %v4927_v7  ;;  %v2514_v45 = vunpack.c.h.bf16 %v4975_v23  ;;  %v2500_v49 = vunpack.c.h.bf16 %v4954_v16  ;;  %v2532_v42 = vunpack.c.h.bf16 %v5002_v32 }
 0x302   : > { %v2548_v46 = vmul.f32 %v2516_v38, %v2484_v43  ;;  %v2547_v48 = vmul.f32 %v2515_v41, %v2483_v44  ;;  %v2499_v52 = vunpack.c.l.bf16 %v4954_v16  ;;  %v2531_v53 = vunpack.c.l.bf16 %v5002_v32 }
 0x303   : > { %v2546_v40 = vmul.f32 %v2514_v45, %v2482_v33  ;;  %v2498_v8 = vunpack.c.h.bf16 %v4951_v15  ;;  %v2530_v24 = vunpack.c.h.bf16 %v4999_v31  ;;  %v2564_v47 = vmul.f32 %v2532_v42, %v2500_v49 }
 0x304   : > { %2595 = vadd.xlane.f32.xlu0 %v2548_v46  ;;  %2593 = vadd.xlane.f32.xlu1 %v2547_v48  ;;  %v2563_v55 = vmul.f32 %v2531_v53, %v2499_v52  ;;  %v2497_v57 = vunpack.c.l.bf16 %v4951_v15  ;;  %v2529_v58 = vunpack.c.l.bf16 %v4999_v31  ;;  %v2481_v63 = vunpack.c.l.bf16 %v4927_v7 }
 0x305   : > { %2591 = vadd.xlane.f32.xlu2 %v2546_v40  ;;  %v2562_v56 = vmul.f32 %v2530_v24, %v2498_v8  ;;  %v2513_v16 = vunpack.c.l.bf16 %v4975_v23  ;;  %v2480_v32 = vunpack.c.h.bf16 %v4924_v6  ;;  %v2512_v51 = vunpack.c.h.bf16 %v4972_v22 }
 0x306   : > { %v2561_v59 = vmul.f32 %v2529_v58, %v2497_v57  ;;  %v2496_v35 = vunpack.c.h.bf16 %v4948_v14  ;;  %v2528_v15 = vunpack.c.h.bf16 %v4996_v30  ;;  %v2479_v31 = vunpack.c.l.bf16 %v4924_v6 }
 0x307   : > { %v2545_v61 = vmul.f32 %v2513_v16, %v2481_v63  ;;  %v2544_v54 = vmul.f32 %v2512_v51, %v2480_v32  ;;  %v2511_v7 = vunpack.c.l.bf16 %v4972_v22  ;;  %v2495_v23 = vunpack.c.l.bf16 %v4948_v14 }
 0x308   : > { %v2527_v0 = vunpack.c.l.bf16 %v4996_v30  ;;  %v2560_v36 = vmul.f32 %v2528_v15, %v2496_v35  ;;  %v2494_v37 = vunpack.c.h.bf16 %v4945_v13  ;;  %v2526_v39 = vunpack.c.h.bf16 %v4993_v29 }
 0x309   : > { %v2543_v60 = vmul.f32 %v2511_v7, %v2479_v31  ;;  %v2478_v34 = vunpack.c.h.bf16 %v4921_v5  ;;  %v2510_v6 = vunpack.c.h.bf16 %v4969_v21  ;;  %v2477_v22 = vunpack.c.l.bf16 %v4921_v5 }
 0x30a   : > { %v2559_v62 = vmul.f32 %v2527_v0, %v2495_v23  ;;  %v2509_v14 = vunpack.c.l.bf16 %v4969_v21  ;;  %v2558_v43 = vmul.f32 %v2526_v39, %v2494_v37  ;;  %v2493_v44 = vunpack.c.l.bf16 %v4945_v13  ;;  %v2836_v37 = vld [vmem:[#allocation3 + $0x78] sm:$0xff] }
 0x30b   : > { %v2542_v30 = vmul.f32 %v2510_v6, %v2478_v34  ;;  %v2525_v41 = vunpack.c.l.bf16 %v4993_v29  ;;  %v2476_v33 = vunpack.c.h.bf16 %v4918_v4  ;;  %v2508_v45 = vunpack.c.h.bf16 %v4966_v20  ;;  %v2675_v6 = vld [vmem:[#allocation2 + $0x70] sm:$0xff] }
 0x30c   : > { %2627 = vadd.xlane.f32.xlu0 %v2564_v47  ;;  %2625 = vadd.xlane.f32.xlu1 %v2563_v55  ;;  %v2541_v38 = vmul.f32 %v2509_v14, %v2477_v22  ;;  %v2492_v46 = vunpack.c.h.bf16 %v4942_v12  ;;  %v2524_v5 = vunpack.c.h.bf16 %v4990_v28  ;;  %v2491_v49 = vunpack.c.l.bf16 %v4942_v12  ;;  %v2835_v14 = vld [vmem:[#allocation3 + $0x70] sm:$0xff] }
 0x30d   : > { %2623 = vadd.xlane.f32.xlu2 %v2562_v56  ;;  %v2557_v48 = vmul.f32 %v2525_v41, %v2493_v44  ;;  %v2540_v21 = vmul.f32 %v2508_v45, %v2476_v33  ;;  %v2523_v13 = vunpack.c.l.bf16 %v4990_v28  ;;  %v2475_v29 = vunpack.c.l.bf16 %v4918_v4  ;;  %v2834_v44 = vld [vmem:[#allocation3 + $0x68] sm:$0xff]  ;;  %v2852_v41 = vld [vmem:[#allocation3 + $0xf8] sm:$0xff]  ;;  %v2691_v33 = vld [vmem:[#allocation2 + $0xf0] sm:$0xff] }
 0x30e   : > { %v2556_v40 = vmul.f32 %v2524_v5, %v2492_v46  ;;  %v2507_v42 = vunpack.c.l.bf16 %v4966_v20  ;;  %v2474_v52 = vunpack.c.h.bf16 %v4915_v3  ;;  %v2506_v53 = vunpack.c.h.bf16 %v4963_v19  ;;  %v2851_v46 = vld [vmem:[#allocation3 + $0xf0] sm:$0xff] }
 0x30f   : > { %v2555_v8 = vmul.f32 %v2523_v13, %v2491_v49  ;;  %v2490_v55 = vunpack.c.h.bf16 %v4939_v11  ;;  %v2522_v12 = vunpack.c.h.bf16 %v4987_v27  ;;  %v2473_v28 = vunpack.c.l.bf16 %v4915_v3 }
 0x310   : > { %v2539_v24 = vmul.f32 %v2507_v42, %v2475_v29  ;;  %v2538_v47 = vmul.f32 %v2506_v53, %v2474_v52  ;;  %v2505_v4 = vunpack.c.l.bf16 %v4963_v19  ;;  %v2489_v20 = vunpack.c.l.bf16 %v4939_v11  ;;  %v2673_v53 = vld [vmem:[#allocation2 + $0x60] sm:$0xff] }
 0x311   : > { %v2521_v56 = vunpack.c.l.bf16 %v4987_v27  ;;  %v2554_v57 = vmul.f32 %v2522_v12, %v2490_v55  ;;  %v2488_v16 = vunpack.c.h.bf16 %v4936_v10  ;;  %v2520_v32 = vunpack.c.h.bf16 %v4984_v26  ;;  %v2689_v12 = vld [vmem:[#allocation2 + $0xe0] sm:$0xff] }
 0x312   : > { %v2537_v58 = vmul.f32 %v2505_v4, %v2473_v28  ;;  %v2472_v51 = vunpack.c.h.bf16 %v4912_v2  ;;  %v2504_v3 = vunpack.c.h.bf16 %v4960_v18  ;;  %v2471_v19 = vunpack.c.l.bf16 %v4912_v2 }
 0x313   : > { %v2553_v63 = vmul.f32 %v2521_v56, %v2489_v20  ;;  %v2503_v11 = vunpack.c.l.bf16 %v4960_v18  ;;  %v2519_v35 = vunpack.c.l.bf16 %v4984_v26  ;;  %v2470_v15 = vunpack.c.h.bf16 %v4909_v1  ;;  %v2849_v56 = vld [vmem:[#allocation3 + $0xe0] sm:$0xff] }
 0x314   : > { %2621 = vadd.xlane.f32.xlu1 %v2561_v59  ;;  %2589 = vadd.xlane.f32.xlu0 %v2545_v61  ;;  %v2552_v59 = vmul.f32 %v2520_v32, %v2488_v16  ;;  %v2536_v27 = vmul.f32 %v2504_v3, %v2472_v51  ;;  %v2502_v31 = vunpack.c.h.bf16 %v4957_v17  ;;  %v2486_v7 = vunpack.c.h.bf16 %v4933_v9  ;;  %v2832_v51 = vld [vmem:[#allocation3 + $0x58] sm:$0xff] }
 0x315   : > { %2587 = vadd.xlane.f32.xlu2 %v2544_v54  ;;  %v2535_v61 = vmul.f32 %v2503_v11, %v2471_v19  ;;  %v2487_v54 = vunpack.c.l.bf16 %v4936_v10  ;;  %v2518_v2 = vunpack.c.h.bf16 %v4981_v25  ;;  %v2517_v10 = vunpack.c.l.bf16 %v4981_v25  ;;  %v2692_v25 = vld [vmem:[#allocation2 + $0xf8] sm:$0xff] }
 0x316   : > { %v2534_v18 = vmul.f32 %v2502_v31, %v2470_v15  ;;  %v2469_v26 = vunpack.c.l.bf16 %v4909_v1  ;;  %v2724_v45 = vmax.f32 %v2692_v25, 1e-30  ;;  %v2884_v5 = vmax.f32 %v2852_v41, 1e-30 }
 0x317   : > { %v2551_v23 = vmul.f32 %v2519_v35, %v2487_v54  ;;  %v2550_v0 = vmul.f32 %v2518_v2, %v2486_v7  ;;  %v2883_v49 = vmax.f32 %v2851_v46, 1e-30  ;;  %v2705_v20 = vmax.f32 %v2673_v53, 1e-30 }
 0x318   : > { %v2721_v32 = vmax.f32 %v2689_v12, 1e-30  ;;  %v2881_v19 = vmax.f32 %v2849_v56, 1e-30  ;;  %v2864_v35 = vmax.f32 %v2832_v51, 1e-30 }
 0x319   : > { %v2686_v51 = vld [vmem:[#allocation2 + $0xc8] sm:$0xff] }
 0x31c   : > { %2619 = vadd.xlane.f32.xlu0 %v2560_v36  ;;  %2585 = vadd.xlane.f32.xlu1 %v2543_v60  ;;  %v2485_v36 = vunpack.c.l.bf16 %v4933_v9  ;;  %v2501_v60 = vunpack.c.l.bf16 %v4957_v17  ;;  %v2867_v9 = vmax.f32 %v2835_v14, 1e-30  ;;  %v2866_v17 = vmax.f32 %v2834_v44, 1e-30  ;;  %v2848_v44 = vld [vmem:[#allocation3 + $0xd8] sm:$0xff] }
 0x31d   : > { %2617 = vadd.xlane.f32.xlu2 %v2559_v62  ;;  %v2676_v62 = vld [vmem:[#allocation2 + $0x78] sm:$0xff] }
 0x31e   : > { %v2549_v39 = vmul.f32 %v2517_v10, %v2485_v36  ;;  %v2533_v34 = vmul.f32 %v2501_v60, %v2469_v26  ;;  %v2708_v22 = vmax.f32 %v2676_v62, 1e-30  ;;  %v2671_v26 = vld [vmem:[#allocation2 + $0x50] sm:$0xff] }
 0x320   : > { %4059 = vlog2.f32 %v2708_v22  ;;  %v2688_v22 = vld [vmem:[#allocation2 + $0xd8] sm:$0xff] }
 0x324   : > { %2615 = vadd.xlane.f32.xlu1 %v2558_v43  ;;  %2583 = vadd.xlane.f32.xlu0 %v2542_v30  ;;  %v2868_v43 = vmax.f32 %v2836_v37, 1e-30  ;;  %v2674_v30 = vld [vmem:[#allocation2 + $0x68] sm:$0xff]  ;;  %v2831_v37 = vld [vmem:[#allocation3 + $0x50] sm:$0xff] }
 0x325   : > { %2581 = vadd.xlane.f32.xlu2 %v2541_v38  ;;  %v2707_v38 = vmax.f32 %v2675_v6, 1e-30  ;;  %v2706_v1 = vmax.f32 %v2674_v30, 1e-30 }
 0x326   : > { %4061 = vlog2.f32 %v2868_v43  ;;  %v4060_v13 = vpop.eup %4059 }
 0x327   : > { %4063 = vlog2.f32 %v2707_v38  ;;  %v2756_v55 = vmul.f32 0.6931472, %v4060_v13  ;;  %v2703_v38 = vmax.f32 %v2671_v26, 1e-30 }
 0x328   : > { %4065 = vlog2.f32 %v2867_v9 }
 0x329   : > { %4067 = vlog2.f32 %v2706_v1 }
 0x32a   : > { %4069 = vlog2.f32 %v2866_v17  ;;  %v2863_v17 = vmax.f32 %v2831_v37, 1e-30 }
 0x32b   : > { %4071 = vlog2.f32 %v2724_v45 }
 0x32c   : > { %2613 = vadd.xlane.f32.xlu0 %v2557_v48  ;;  %2579 = vadd.xlane.f32.xlu1 %v2540_v21  ;;  %v2690_v48 = vld [vmem:[#allocation2 + $0xe8] sm:$0xff]  ;;  %v2723_v21 = vmax.f32 %v2691_v33, 1e-30  ;;  %v4062_v42 = vpop.eup %4061  ;;  %4073 = vlog2.f32 %v2884_v5  ;;  %v2687_v33 = vld [vmem:[#allocation2 + $0xd0] sm:$0xff] }
 0x32d   : > { %2611 = vadd.xlane.f32.xlu2 %v2556_v40  ;;  %v2850_v40 = vld [vmem:[#allocation3 + $0xe8] sm:$0xff]  ;;  %v2722_v29 = vmax.f32 %v2690_v48, 1e-30  ;;  %v2916_v4 = vmul.f32 0.6931472, %v4062_v42 }
 0x32e   : > { %v2882_v52 = vmax.f32 %v2850_v40, 1e-30  ;;  %4075 = vlog2.f32 %v2723_v21  ;;  %v2720_v21 = vmax.f32 %v2688_v22, 1e-30  ;;  %v2880_v42 = vmax.f32 %v2848_v44, 1e-30 }
 0x32f   : > { %4077 = vlog2.f32 %v2883_v49  ;;  %v2668_v44 = vld [vmem:[#allocation2 + $0x38] sm:$0xff] }
 0x330   : > { %4079 = vlog2.f32 %v2722_v29 }
 0x331   : > { %4081 = vlog2.f32 %v2882_v52  ;;  %v2847_v52 = vld [vmem:[#allocation3 + $0xd0] sm:$0xff] }
 0x332   : > { %4083 = vlog2.f32 %v2705_v20 }
 0x334   : > { %2609 = vadd.xlane.f32.xlu1 %v2555_v8  ;;  %2577 = vadd.xlane.f32.xlu0 %v2539_v24  ;;  %v4064_v8 = vpop.eup %4063  ;;  %v2833_v24 = vld [vmem:[#allocation3 + $0x60] sm:$0xff] }
 0x335   : > { %2575 = vadd.xlane.f32.xlu2 %v2538_v47  ;;  %v4066_v47 = vpop.eup %4065  ;;  %v2754_v31 = vmul.f32 0.6931472, %v4064_v8 }
 0x336   : > { %v4068_v28 = vpop.eup %4067  ;;  %v2914_v2 = vmul.f32 0.6931472, %v4066_v47  ;;  %v2719_v47 = vmax.f32 %v2687_v33, 1e-30 }
 0x337   : > { %v2803_v43 = vadd.f32 %v2754_v31, %v5058_v50 }
 0x338   : > { %v2963_v30 = vadd.f32 %v2914_v2, %v5058_v50 }
 0x33c   : > { %2607 = vadd.xlane.f32.xlu0 %v2554_v57  ;;  %2573 = vadd.xlane.f32.xlu1 %v2537_v58  ;;  %v4070_v57 = vpop.eup %4069  ;;  %v2865_v58 = vmax.f32 %v2833_v24, 1e-30 }
 0x33d   : > { %2605 = vadd.xlane.f32.xlu2 %v2553_v63  ;;  %v2672_v63 = vld [vmem:[#allocation2 + $0x58] sm:$0xff]  ;;  %v4072_v16 = vpop.eup %4071 }
 0x33e   : > { %v4074_v3 = vpop.eup %4073  ;;  %4085 = vlog2.f32 %v2865_v58  ;;  %v2788_v36 = vmul.f32 0.6931472, %v4072_v16  ;;  %v2830_v58 = vld [vmem:[#allocation3 + $0x48] sm:$0xff] }
 0x33f   : > { %v4076_v11 = vpop.eup %4075  ;;  %4087 = vlog2.f32 %v2721_v32  ;;  %v2948_v10 = vmul.f32 0.6931472, %v4074_v3 }
 0x340   : > { %v4078_v54 = vpop.eup %4077  ;;  %4089 = vlog2.f32 %v2881_v19  ;;  %v2786_v60 = vmul.f32 0.6931472, %v4076_v11  ;;  %v2820_v46 = vadd.f32 %v2788_v36, %v5058_v50 }
 0x341   : > { %v4080_v15 = vpop.eup %4079  ;;  %v2946_v62 = vmul.f32 0.6931472, %v4078_v54  ;;  %v2980_v5 = vadd.f32 %v2948_v10, %v5058_v50 }
 0x342   : > { %v4082_v7 = vpop.eup %4081  ;;  %v2819_v48 = vadd.f32 %v2786_v60, %v5058_v50  ;;  %v2829_v60 = vld [vmem:[#allocation3 + $0x40] sm:$0xff] }
 0x343   : > { %v2944_v6 = vmul.f32 0.6931472, %v4082_v7  ;;  %v2979_v49 = vadd.f32 %v2946_v62, %v5058_v50  ;;  %v3012_v56 = vadd.f32 %v2980_v5, %v2820_v46  ;;  %v2861_v33 = vmax.f32 %v2829_v60, 1e-30 }
 0x344   : > { %2603 = vadd.xlane.f32.xlu1 %v2552_v59  ;;  %2571 = vadd.xlane.f32.xlu0 %v2536_v27  ;;  %v2804_v59 = vadd.f32 %v2756_v55, %v5058_v50  ;;  %v2964_v27 = vadd.f32 %v2916_v4, %v5058_v50  ;;  %v2995_v55 = vadd.f32 %v2963_v30, %v2803_v43  ;;  %v2670_v4 = vld [vmem:[#allocation2 + $0x48] sm:$0xff] }
 0x345   : > { %2569 = vadd.xlane.f32.xlu2 %v2535_v61  ;;  %v2704_v61 = vmax.f32 %v2672_v63, 1e-30  ;;  %v2978_v29 = vadd.f32 %v2944_v6, %v5058_v50  ;;  %v3011_v63 = vadd.f32 %v2979_v49, %v2819_v48  ;;  %v2702_v11 = vmax.f32 %v2670_v4, 1e-30  ;;  %v2828_v48 = vld [vmem:[#allocation3 + $0x38] sm:$0xff] }
 0x346   : > { %v3027_v7 = vmul.f32 0.5, %v2995_v55 }
 0x347   : > { %4091 = vlog2.f32 %v2704_v61  ;;  %v5617_v37 = vmul.f32 0.5, %v3011_v63 }
 0x348   : > { %4093 = vlog2.f32 %v2864_v35  ;;  %v2862_v35 = vmax.f32 %v2830_v58, 1e-30 }
 0x349   : > { %4095 = vlog2.f32 %v2703_v38 }
 0x34a   : > { %4097 = vlog2.f32 %v2863_v17 }
 0x34b   : > { %4099 = vlog2.f32 %v2720_v21 }
 0x34c   : > { %2601 = vadd.xlane.f32.xlu0 %v2551_v23  ;;  %2567 = vadd.xlane.f32.xlu1 %v2534_v18  ;;  %v2752_v23 = vmul.f32 0.6931472, %v4068_v28  ;;  %v2912_v18 = vmul.f32 0.6931472, %v4070_v57  ;;  %v2879_v57 = vmax.f32 %v2847_v52, 1e-30  ;;  %4101 = vlog2.f32 %v2880_v42 }
 0x34d   : > { %2599 = vadd.xlane.f32.xlu2 %v2550_v0  ;;  %v2996_v0 = vadd.f32 %v2964_v27, %v2804_v59  ;;  %4103 = vlog2.f32 %v2719_v47  ;;  %v2846_v59 = vld [vmem:[#allocation3 + $0xc8] sm:$0xff] }
 0x34e   : > { %v2802_v1 = vadd.f32 %v2752_v23, %v5058_v50  ;;  %v2962_v41 = vadd.f32 %v2912_v18, %v5058_v50  ;;  %4105 = vlog2.f32 %v2879_v57  ;;  %v2718_v23 = vmax.f32 %v2686_v51, 1e-30  ;;  %v2844_v51 = vld [vmem:[#allocation3 + $0xb8] sm:$0xff] }
 0x34f   : > { %v5597_v25 = vmul.f32 0.5, %v2996_v0  ;;  %v5613_v0 = vmul.f32 0.5, %v3012_v56  ;;  %v2878_v26 = vmax.f32 %v2846_v59, 1e-30  ;;  %4107 = vlog2.f32 %v2702_v11 }
 0x350   : > { %v2994_v20 = vadd.f32 %v2962_v41, %v2802_v1  ;;  %4109 = vlog2.f32 %v2862_v35 }
 0x351   : > { %4111 = vlog2.f32 %v2718_v23 }
 0x352   : > { %v5611_v2 = vmul.f32 0.5, %v2994_v20  ;;  %4113 = vlog2.f32 %v2878_v26 }
 0x354   : > { %2597 = vadd.xlane.f32.xlu1 %v2549_v39  ;;  %2565 = vadd.xlane.f32.xlu0 %v2533_v34  ;;  %v4084_v39 = vpop.eup %4083  ;;  %v2784_v34 = vmul.f32 0.6931472, %v4080_v15  ;;  %v2669_v15 = vld [vmem:[#allocation2 + $0x40] sm:$0xff] }
 0x355   : > { %v4086_v14 = vpop.eup %4085  ;;  %v2750_v8 = vmul.f32 0.6931472, %v4084_v39 }
 0x356   : > { %v4088_v9 = vpop.eup %4087  ;;  %v2818_v13 = vadd.f32 %v2784_v34, %v5058_v50  ;;  %v2910_v24 = vmul.f32 0.6931472, %v4086_v14  ;;  %v2701_v34 = vmax.f32 %v2669_v15, 1e-30 }
 0x357   : > { %v4090_v45 = vpop.eup %4089  ;;  %v2782_v12 = vmul.f32 0.6931472, %v4088_v9  ;;  %v2801_v19 = vadd.f32 %v2750_v8, %v5058_v50  ;;  %v2845_v8 = vld [vmem:[#allocation3 + $0xc0] sm:$0xff] }
 0x358   : > { %v4092_v40 = vpop.eup %4091  ;;  %v2942_v28 = vmul.f32 0.6931472, %v4090_v45  ;;  %v3010_v3 = vadd.f32 %v2978_v29, %v2818_v13  ;;  %v2961_v27 = vadd.f32 %v2910_v24, %v5058_v50  ;;  %4115 = vlog2.f32 %v2701_v34  ;;  %v2685_v29 = vld [vmem:[#allocation2 + $0xc0] sm:$0xff] }
 0x359   : > { %v4094_v53 = vpop.eup %4093  ;;  %v2748_v16 = vmul.f32 0.6931472, %v4092_v40  ;;  %v2817_v61 = vadd.f32 %v2782_v12, %v5058_v50  ;;  %v2700_v13 = vmax.f32 %v2668_v44, 1e-30  ;;  %4117 = vlog2.f32 %v2861_v33 }
 0x35a   : > { %v2908_v32 = vmul.f32 0.6931472, %v4094_v53  ;;  %v2977_v54 = vadd.f32 %v2942_v28, %v5058_v50  ;;  %v4096_v31 = vpop.eup %4095  ;;  %v5619_v39 = vmul.f32 0.5, %v3010_v3  ;;  %v2993_v43 = vadd.f32 %v2961_v27, %v2801_v19  ;;  %v2684_v28 = vld [vmem:[#allocation2 + $0xb8] sm:$0xff] }
 0x35b   : > { %v4098_v18 = vpop.eup %4097  ;;  %v2800_v36 = vadd.f32 %v2748_v16, %v5058_v50  ;;  %v2746_v38 = vmul.f32 0.6931472, %v4096_v31  ;;  %v2860_v12 = vmax.f32 %v2828_v48, 1e-30  ;;  %v2717_v57 = vmax.f32 %v2685_v29, 1e-30 }
 0x35c   : > { %v2960_v10 = vadd.f32 %v2908_v32, %v5058_v50  ;;  %v4100_v62 = vpop.eup %4099  ;;  %v3009_v30 = vadd.f32 %v2977_v54, %v2817_v61  ;;  %v2906_v5 = vmul.f32 0.6931472, %v4098_v18  ;;  %v5625_v42 = vmul.f32 0.5, %v2993_v43 }
 0x35d   : > { %v4102_v6 = vpop.eup %4101  ;;  %v2780_v49 = vmul.f32 0.6931472, %v4100_v62  ;;  %4119 = vlog2.f32 %v2700_v13  ;;  %v2877_v32 = vmax.f32 %v2845_v8, 1e-30  ;;  %v2716_v54 = vmax.f32 %v2684_v28, 1e-30 }
 0x35e   : > { %v4104_v9 = vpop.eup %4103  ;;  %v2992_v46 = vadd.f32 %v2960_v10, %v2800_v36  ;;  %v2940_v52 = vmul.f32 0.6931472, %v4102_v6  ;;  %v5628_v20 = vmul.f32 0.5, %v3009_v30  ;;  %v2959_v16 = vadd.f32 %v2906_v5, %v5058_v50  ;;  %v2667_v10 = vld [vmem:[#allocation2 + $0x30] sm:$0xff] }
 0x35f   : > { %v4106_v21 = vpop.eup %4105  ;;  %v2778_v53 = vmul.f32 0.6931472, %v4104_v9  ;;  %v2816_v59 = vadd.f32 %v2780_v49, %v5058_v50  ;;  %4121 = vlog2.f32 %v2860_v12  ;;  %v2876_v36 = vmax.f32 %v2844_v51, 1e-30  ;;  %v2827_v6 = vld [vmem:[#allocation3 + $0x30] sm:$0xff] }
 0x360   : > { %v4108_v24 = vpop.eup %4107  ;;  %v2938_v56 = vmul.f32 0.6931472, %v4106_v21  ;;  %v5631_v63 = vmul.f32 0.5, %v2992_v46  ;;  %v2976_v27 = vadd.f32 %v2940_v52, %v5058_v50  ;;  %4123 = vlog2.f32 %v2717_v57  ;;  %v2683_v30 = vld [vmem:[#allocation2 + $0xb0] sm:$0xff]  ;;  %v2666_v46 = vld [vmem:[#allocation2 + $0x28] sm:$0xff] }
 0x361   : > { %v4110_v4 = vpop.eup %4109  ;;  %v2815_v61 = vadd.f32 %v2778_v53, %v5058_v50  ;;  %4125 = vlog2.f32 %v2877_v32  ;;  %v2715_v49 = vmax.f32 %v2683_v30, 1e-30 }
 0x362   : > { %v4112_v58 = vpop.eup %4111  ;;  %v2975_v18 = vadd.f32 %v2938_v56, %v5058_v50  ;;  %v2904_v62 = vmul.f32 0.6931472, %v4110_v4  ;;  %4127 = vlog2.f32 %v2716_v54  ;;  %v2698_v4 = vmax.f32 %v2666_v46, 1e-30 }
 0x363   : > { %v4114_v3 = vpop.eup %4113  ;;  %v2776_v34 = vmul.f32 0.6931472, %v4112_v58  ;;  %4129 = vlog2.f32 %v2876_v36 }
 0x364   : > { %v4116_v35 = vpop.eup %4115  ;;  %v3007_v48 = vadd.f32 %v2975_v18, %v2815_v61  ;;  %v2958_v21 = vadd.f32 %v2904_v62, %v5058_v50 }
 0x365   : > { %v4118_v26 = vpop.eup %4117  ;;  %v2742_v43 = vmul.f32 0.6931472, %v4116_v35 }
 0x366   : > { %v2902_v33 = vmul.f32 0.6931472, %v4118_v26 }
 0x367   : > { %v2797_v53 = vadd.f32 %v2742_v43, %v5058_v50  ;;  %v2681_v43 = vld [vmem:[#allocation2 + $0xa0] sm:$0xff] }
 0x368   : > { %v2957_v57 = vadd.f32 %v2902_v33, %v5058_v50 }
 0x36a   : > { %v2989_v18 = vadd.f32 %v2957_v57, %v2797_v53 }
 0x377   : > { %v2596_v22 = vpop.xlane.xlu0 %2595  ;;  %v2594_v14 = vpop.xlane.xlu1 %2593 }
 0x378   : > { %v2644_v1 = vmul.f32 %v2596_v22, %v5058_v50  ;;  %v2643_v41 = vmul.f32 %v2594_v14, %v5058_v50  ;;  %v2592_v17 = vpop.xlane.xlu2 %2591  ;;  %v2936_v14 = vmul.f32 0.6931472, %v4114_v3  ;;  %v2665_v3 = vld [vmem:[#allocation2 + $0x20] sm:$0xff] }
 0x379   : > { %v2642_v45 = vmul.f32 %v2592_v17, %v5058_v50  ;;  %v2843_v17 = vld [vmem:[#allocation3 + $0xb0] sm:$0xff] }
 0x37a   : > { %v3060_v40 = vsub.f32 %v5597_v25, %v2644_v1  ;;  %v3059_v47 = vsub.f32 %v3027_v7, %v2643_v41  ;;  %v2799_v25 = vadd.f32 %v2746_v38, %v5058_v50  ;;  %v4120_v38 = vpop.eup %4119  ;;  %v3008_v1 = vadd.f32 %v2976_v27, %v2816_v59 }
 0x37b   : > { %v3058_v55 = vsub.f32 %v5611_v2, %v2642_v45  ;;  %v2744_v2 = vmul.f32 0.6931472, %v4108_v24  ;;  %v2699_v41 = vmax.f32 %v2667_v10, 1e-30  ;;  %v2859_v45 = vmax.f32 %v2827_v6, 1e-30  ;;  %v4122_v5 = vpop.eup %4121 }
 0x37c   : > { %3083 = vmatpush.msra.mxu0 %v3060_v40  ;;  %v2991_v22 = vadd.f32 %v2959_v16, %v2799_v25  ;;  %v2814_v40 = vadd.f32 %v2776_v34, %v5058_v50  ;;  %v4124_v13 = vpop.eup %4123  ;;  %v2974_v52 = vadd.f32 %v2936_v14, %v5058_v50  ;;  %v2740_v8 = vmul.f32 0.6931472, %v4120_v38  ;;  %v2842_v10 = vld [vmem:[#allocation3 + $0xa8] sm:$0xff] }
 0x37d   : > { %v2875_v24 = vmax.f32 %v2843_v17, 1e-30  ;;  %4131 = vlog2.f32 %v2699_v41  ;;  %v2900_v51 = vmul.f32 0.6931472, %v4122_v5  ;;  %v2774_v59 = vmul.f32 0.6931472, %v4124_v13 }
 0x37e   : > { %3084 = vmatpush.msra.mxu0 %v3059_v47  ;;  %v4126_v47 = vpop.eup %4125  ;;  %4133 = vlog2.f32 %v2859_v45  ;;  %v3023_v61 = vmul.f32 0.5, %v2991_v22  ;;  %v3040_v54 = vmul.f32 0.5, %v3008_v1  ;;  %v2841_v17 = vld [vmem:[#allocation3 + $0xa0] sm:$0xff]  ;;  %v2874_v46 = vmax.f32 %v2842_v10, 1e-30  ;;  %v2663_v10 = vld [vmem:[#allocation2 + $0x10] sm:$0xff] }
 0x37f   : > { %v2628_v19 = vpop.xlane.xlu0 %2627  ;;  %v2626_v11 = vpop.xlane.xlu1 %2625  ;;  %4135 = vlog2.f32 %v2715_v49  ;;  %v2934_v27 = vmul.f32 0.6931472, %v4126_v47  ;;  %v2956_v34 = vadd.f32 %v2900_v51, %v5058_v50  ;;  %v2813_v6 = vadd.f32 %v2774_v59, %v5058_v50 }
 0x380   : > { %v2660_v15 = vmul.f32 %v2628_v19, %v5058_v50  ;;  %v2659_v31 = vmul.f32 %v2626_v11, %v5058_v50  ;;  %3085 = vmatpush.msra.mxu0 %v3058_v55  ;;  %v2624_v7 = vpop.xlane.xlu2 %2623  ;;  %v4128_v25 = vpop.eup %4127  ;;  %4137 = vlog2.f32 %v2875_v24  ;;  %v2713_v49 = vmax.f32 %v2681_v43, 1e-30 }
 0x381   : > { %v2658_v23 = vmul.f32 %v2624_v7, %v5058_v50  ;;  %v4130_v19 = vpop.eup %4129  ;;  %v2772_v35 = vmul.f32 0.6931472, %v4128_v25  ;;  %4139 = vlog2.f32 %v2698_v4  ;;  %v2682_v7 = vld [vmem:[#allocation2 + $0xa8] sm:$0xff]  ;;  %v2973_v22 = vadd.f32 %v2934_v27, %v5058_v50  ;;  %v2664_v25 = vld [vmem:[#allocation2 + $0x18] sm:$0xff] }
 0x382   : > { %v3076_v60 = vsub.f32 %v5613_v0, %v2660_v15  ;;  %v3075_v44 = vsub.f32 %v5617_v37, %v2659_v31  ;;  %v2798_v0 = vadd.f32 %v2744_v2, %v5058_v50  ;;  %v2826_v37 = vld [vmem:[#allocation3 + $0x28] sm:$0xff]  ;;  %v2825_v15 = vld [vmem:[#allocation3 + $0x20] sm:$0xff]  ;;  %v3039_v31 = vmul.f32 0.5, %v3007_v48 }
 0x383   : > { %v3074_v9 = vsub.f32 %v5619_v39, %v2658_v23  ;;  %v2858_v58 = vmax.f32 %v2826_v37, 1e-30  ;;  %v4132_v2 = vpop.eup %4131  ;;  %v3006_v23 = vadd.f32 %v2974_v52, %v2814_v40  ;;  %v2932_v36 = vmul.f32 0.6931472, %v4130_v19 }
 0x384   : > { %3103 = vmatpush.msra.mxu1 %v3076_v60  ;;  %v4134_v26 = vpop.eup %4133  ;;  %v2857_v14 = vmax.f32 %v2825_v15, 1e-30  ;;  %v2812_v1 = vadd.f32 %v2772_v35, %v5058_v50  ;;  %v2714_v41 = vmax.f32 %v2682_v7, 1e-30  ;;  %v2738_v45 = vmul.f32 0.6931472, %v4132_v2 }
 0x385   : > { %4141 = vlog2.f32 %v2858_v58  ;;  %v4136_v30 = vpop.eup %4135  ;;  %v2972_v40 = vadd.f32 %v2932_v36, %v5058_v50  ;;  %v3038_v24 = vmul.f32 0.5, %v3006_v23  ;;  %v3021_v47 = vmul.f32 0.5, %v2989_v18  ;;  %v2840_v7 = vld [vmem:[#allocation3 + $0x98] sm:$0xff] }
 0x386   : > { %3104 = vmatpush.msra.mxu1 %v3075_v44  ;;  %v2770_v53 = vmul.f32 0.6931472, %v4136_v30  ;;  %v2795_v51 = vadd.f32 %v2738_v45, %v5058_v50  ;;  %v2662_v45 = vld [vmem:[#allocation2 + $0x8] sm:$0xff] }
 0x387   : > { %v2622_v39 = vpop.xlane.xlu1 %2621  ;;  %v2590_v29 = vpop.xlane.xlu0 %2589 }
 0x388   : > { %v2657_v55 = vmul.f32 %v2622_v39, %v5058_v50  ;;  %v2641_v12 = vmul.f32 %v2590_v29, %v5058_v50  ;;  %3105 = vmatpush.msra.mxu1 %v3074_v9  ;;  %v2588_v28 = vpop.xlane.xlu2 %2587  ;;  %v2898_v39 = vmul.f32 0.6931472, %v4134_v26  ;;  %v2873_v29 = vmax.f32 %v2841_v17, 1e-30 }
 0x389   : > { %v2640_v56 = vmul.f32 %v2588_v28, %v5058_v50  ;;  %v3005_v28 = vadd.f32 %v2973_v22, %v2813_v6  ;;  %v2811_v27 = vadd.f32 %v2770_v53, %v5058_v50  ;;  %v2823_v6 = vld [vmem:[#allocation3 + $0x10] sm:$0xff] }
 0x38a   : > { %v3057_v16 = vsub.f32 %v5625_v42, %v2641_v12  ;;  %v3073_v32 = vsub.f32 %v5628_v20, %v2657_v55  ;;  %v2990_v42 = vadd.f32 %v2958_v21, %v2798_v0  ;;  %v2697_v20 = vmax.f32 %v2665_v3, 1e-30  ;;  %v4138_v0 = vpop.eup %4137 }
 0x38b   : > { %v3056_v11 = vsub.f32 %v5631_v63, %v2640_v56  ;;  %v2796_v63 = vadd.f32 %v2740_v8, %v5058_v50  ;;  %v4140_v5 = vpop.eup %4139  ;;  %v2930_v8 = vmul.f32 0.6931472, %v4138_v0  ;;  %v2824_v56 = vld [vmem:[#allocation3 + $0x18] sm:$0xff]  ;;  %v2955_v3 = vadd.f32 %v2898_v39, %v5058_v50 }
 0x38c   : > { %3086 = vmatpush.msra.mxu0 %v3057_v16  ;;  %3106 = vmatpush.msra.mxu1 %v3073_v32  ;;  %4143 = vlog2.f32 %v2697_v20  ;;  %v4142_v37 = vpop.eup %4141  ;;  %v3022_v52 = vmul.f32 0.5, %v2990_v42  ;;  %v2736_v55 = vmul.f32 0.6931472, %v4140_v5  ;;  %v3004_v32 = vadd.f32 %v2972_v40, %v2812_v1 }
 0x38d   : > { %4145 = vlog2.f32 %v2857_v14  ;;  %v2988_v12 = vadd.f32 %v2956_v34, %v2796_v63  ;;  %v2896_v4 = vmul.f32 0.6931472, %v4142_v37  ;;  %v2696_v42 = vmax.f32 %v2664_v25, 1e-30 }
 0x38e   : > { %3087 = vmatpush.msra.mxu0 %v3056_v11  ;;  %4147 = vlog2.f32 %v2714_v41  ;;  %v2856_v20 = vmax.f32 %v2824_v56, 1e-30  ;;  %v3037_v14 = vmul.f32 0.5, %v3005_v28  ;;  %v3036_v43 = vmul.f32 0.5, %v3004_v32  ;;  %v2838_v32 = vld [vmem:[#allocation3 + $0x88] sm:$0xff] }
 0x38f   : > { %v2620_v60 = vpop.xlane.xlu0 %2619  ;;  %v2586_v62 = vpop.xlane.xlu1 %2585  ;;  %4149 = vlog2.f32 %v2874_v46  ;;  %v2954_v63 = vadd.f32 %v2896_v4, %v5058_v50  ;;  %v2987_v30 = vadd.f32 %v2955_v3, %v2795_v51  ;;  %v2695_v41 = vmax.f32 %v2663_v10, 1e-30  ;;  %v2822_v46 = vld [vmem:[#allocation3 + $0x8] sm:$0xff] }
 0x390   : > { %v2656_v38 = vmul.f32 %v2620_v60, %v5058_v50  ;;  %v2639_v44 = vmul.f32 %v2586_v62, %v5058_v50  ;;  %v2618_v9 = vpop.xlane.xlu2 %2617  ;;  %4151 = vlog2.f32 %v2713_v49  ;;  %v3020_v62 = vmul.f32 0.5, %v2988_v12  ;;  %v2678_v4 = vld [vmem:[#allocation2 + $0x88] sm:$0xff] }
 0x391   : > { %v2655_v33 = vmul.f32 %v2618_v9, %v5058_v50  ;;  %4153 = vlog2.f32 %v2873_v29  ;;  %v2854_v28 = vmax.f32 %v2822_v46, 1e-30 }
 0x392   : > { %v3055_v48 = vsub.f32 %v3023_v61, %v2639_v44  ;;  %v3072_v21 = vsub.f32 %v3040_v54, %v2656_v38  ;;  %v4144_v57 = vpop.eup %4143  ;;  %v2971_v61 = vadd.f32 %v2930_v8, %v5058_v50  ;;  %v2680_v54 = vld [vmem:[#allocation2 + $0x98] sm:$0xff]  ;;  %v2872_v38 = vmax.f32 %v2840_v7, 1e-30 }
 0x393   : > { %v3071_v13 = vsub.f32 %v3039_v31, %v2655_v33  ;;  %v4146_v35 = vpop.eup %4145  ;;  %v2794_v31 = vadd.f32 %v2736_v55, %v5058_v50  ;;  %v2734_v36 = vmul.f32 0.6931472, %v4144_v57  ;;  %v2712_v34 = vmax.f32 %v2680_v54, 1e-30 }
 0x394   : > { %3088 = vmatpush.msra.mxu0 %v3055_v48  ;;  %3107 = vmatpush.msra.mxu1 %v3072_v21  ;;  %v4148_v2 = vpop.eup %4147  ;;  %v3003_v9 = vadd.f32 %v2971_v61, %v2811_v27  ;;  %v2894_v1 = vmul.f32 0.6931472, %v4146_v35  ;;  %4155 = vlog2.f32 %v2696_v42  ;;  %v2855_v33 = vmax.f32 %v2823_v6, 1e-30  ;;  %v2821_v6 = vld [vmem:[#allocation3] sm:$0xff] }
 0x395   : > { %v4150_v26 = vpop.eup %4149  ;;  %v2986_v17 = vadd.f32 %v2954_v63, %v2794_v31  ;;  %v2793_v0 = vadd.f32 %v2734_v36, %v5058_v50  ;;  %4157 = vlog2.f32 %v2856_v20  ;;  %v2768_v21 = vmul.f32 0.6931472, %v4148_v2  ;;  %v2661_v36 = vld [vmem:[#allocation2] sm:$0xff] }
 0x396   : > { %3108 = vmatpush.msra.mxu1 %v3071_v13  ;;  %v4152_v22 = vpop.eup %4151  ;;  %v2928_v40 = vmul.f32 0.6931472, %v4150_v26  ;;  %4159 = vlog2.f32 %v2712_v34  ;;  %v2953_v8 = vadd.f32 %v2894_v1, %v5058_v50  ;;  %v3019_v27 = vmul.f32 0.5, %v2987_v30  ;;  %v2677_v30 = vld [vmem:[#allocation2 + $0x80] sm:$0xff] }
 0x397   : > { %v2616_v58 = vpop.xlane.xlu1 %2615  ;;  %v2584_v16 = vpop.xlane.xlu0 %2583  ;;  %v2766_v49 = vmul.f32 0.6931472, %v4152_v22  ;;  %4161 = vlog2.f32 %v2872_v38  ;;  %v2810_v57 = vadd.f32 %v2768_v21, %v5058_v50  ;;  %v3035_v61 = vmul.f32 0.5, %v3003_v9  ;;  %v2837_v1 = vld [vmem:[#allocation3 + $0x80] sm:$0xff] }
 0x398   : > { %v2654_v19 = vmul.f32 %v2616_v58, %v5058_v50  ;;  %v2638_v11 = vmul.f32 %v2584_v16, %v5058_v50  ;;  %v2582_v59 = vpop.xlane.xlu2 %2581  ;;  %v4154_v44 = vpop.eup %4153  ;;  %4163 = vlog2.f32 %v2695_v41  ;;  %v2970_v58 = vadd.f32 %v2928_v40, %v5058_v50 }
 0x399   : > { %v2637_v15 = vmul.f32 %v2582_v59, %v5058_v50  ;;  %v2926_v29 = vmul.f32 0.6931472, %v4154_v44  ;;  %4165 = vlog2.f32 %v2855_v33  ;;  %v2809_v3 = vadd.f32 %v2766_v49, %v5058_v50 }
 0x39a   : > { %v3054_v23 = vsub.f32 %v3022_v52, %v2638_v11  ;;  %v3070_v18 = vsub.f32 %v3038_v24, %v2654_v19  ;;  %v2679_v52 = vld [vmem:[#allocation2 + $0x90] sm:$0xff]  ;;  %v2694_v24 = vmax.f32 %v2662_v45, 1e-30  ;;  %v4156_v25 = vpop.eup %4155  ;;  %v2710_v54 = vmax.f32 %v2678_v4, 1e-30 }
 0x39b   : > { %v3053_v60 = vsub.f32 %v3021_v47, %v2637_v15  ;;  %v2839_v47 = vld [vmem:[#allocation3 + $0x90] sm:$0xff]  ;;  %v2711_v16 = vmax.f32 %v2679_v52, 1e-30  ;;  %v4158_v51 = vpop.eup %4157  ;;  %v2969_v19 = vadd.f32 %v2926_v29, %v5058_v50  ;;  %v3018_v15 = vmul.f32 0.5, %v2986_v17 }
 0x39c   : > { %3089 = vmatpush.msra.mxu0 %v3054_v23  ;;  %3109 = vmatpush.msra.mxu1 %v3070_v18  ;;  %v2871_v11 = vmax.f32 %v2839_v47, 1e-30  ;;  %v4160_v59 = vpop.eup %4159  ;;  %4167 = vlog2.f32 %v2694_v24  ;;  %v2985_v31 = vadd.f32 %v2953_v8, %v2793_v0  ;;  %v2870_v42 = vmax.f32 %v2838_v32, 1e-30 }
 0x39d   : > { %v4162_v35 = vpop.eup %4161  ;;  %4169 = vlog2.f32 %v2854_v28  ;;  %v3002_v23 = vadd.f32 %v2970_v58, %v2810_v57  ;;  %v2732_v18 = vmul.f32 0.6931472, %v4156_v25  ;;  %v2892_v63 = vmul.f32 0.6931472, %v4158_v51 }
 0x39e   : > { %3090 = vmatpush.msra.mxu0 %v3053_v60  ;;  %v4164_v20 = vpop.eup %4163  ;;  %4171 = vlog2.f32 %v2711_v16  ;;  %v3001_v34 = vadd.f32 %v2969_v19, %v2809_v3  ;;  %v2693_v9 = vmax.f32 %v2661_v36, 1e-30  ;;  %v2853_v45 = vmax.f32 %v2821_v6, 1e-30 }
 0x39f   : > { %v2614_v5 = vpop.xlane.xlu0 %2613  ;;  %v2580_v48 = vpop.xlane.xlu1 %2579  ;;  %4173 = vlog2.f32 %v2871_v11  ;;  %v2730_v0 = vmul.f32 0.6931472, %v4164_v20  ;;  %v3034_v40 = vmul.f32 0.5, %v3002_v23  ;;  %v2792_v49 = vadd.f32 %v2732_v18, %v5058_v50 }
 0x3a0   : > { %v2653_v37 = vmul.f32 %v2614_v5, %v5058_v50  ;;  %v2636_v13 = vmul.f32 %v2580_v48, %v5058_v50  ;;  %v2612_v39 = vpop.xlane.xlu2 %2611  ;;  %v4166_v10 = vpop.eup %4165  ;;  %4175 = vlog2.f32 %v2710_v54  ;;  %v3017_v5 = vmul.f32 0.5, %v2985_v31 }
 0x3a1   : > { %v2652_v53 = vmul.f32 %v2612_v39, %v5058_v50  ;;  %4177 = vlog2.f32 %v2870_v42  ;;  %v2890_v33 = vmul.f32 0.6931472, %v4166_v10  ;;  %v2709_v48 = vmax.f32 %v2677_v30, 1e-30 }
 0x3a2   : > { %v3052_v55 = vsub.f32 %v3020_v62, %v2636_v13  ;;  %v3069_v12 = vsub.f32 %v3037_v14, %v2653_v37  ;;  %v2764_v14 = vmul.f32 0.6931472, %v4160_v59  ;;  %v4168_v41 = vpop.eup %4167  ;;  %v2952_v37 = vadd.f32 %v2892_v63, %v5058_v50 }
 0x3a3   : > { %v3068_v56 = vsub.f32 %v3036_v43, %v2652_v53  ;;  %v2924_v43 = vmul.f32 0.6931472, %v4162_v35  ;;  %v4170_v46 = vpop.eup %4169  ;;  %v2869_v13 = vmax.f32 %v2837_v1, 1e-30  ;;  %v3033_v29 = vmul.f32 0.5, %v3001_v34 }
 0x3a4   : > { %3091 = vmatpush.msra.mxu0 %v3052_v55  ;;  %3110 = vmatpush.msra.mxu1 %v3069_v12  ;;  %v4172_v21 = vpop.eup %4171  ;;  %v2808_v52 = vadd.f32 %v2764_v14, %v5058_v50  ;;  %4179 = vlog2.f32 %v2693_v9  ;;  %v2791_v55 = vadd.f32 %v2730_v0, %v5058_v50  ;;  %v2951_v12 = vadd.f32 %v2890_v33, %v5058_v50 }
 0x3a5   : > { %v4174_v39 = vpop.eup %4173  ;;  %v2968_v53 = vadd.f32 %v2924_v43, %v5058_v50  ;;  %v2728_v28 = vmul.f32 0.6931472, %v4168_v41  ;;  %4181 = vlog2.f32 %v2853_v45  ;;  %v2888_v58 = vmul.f32 0.6931472, %v4170_v46 }
 0x3a6   : > { %3111 = vmatpush.msra.mxu1 %v3068_v56  ;;  %v4176_v8 = vpop.eup %4175  ;;  %4183 = vlog2.f32 %v2709_v48  ;;  %v2762_v32 = vmul.f32 0.6931472, %v4172_v21  ;;  %v2922_v51 = vmul.f32 0.6931472, %v4174_v39  ;;  %v2984_v11 = vadd.f32 %v2952_v37, %v2792_v49 }
 0x3a7   : > { %v2610_v7 = vpop.xlane.xlu1 %2609  ;;  %v2578_v2 = vpop.xlane.xlu0 %2577  ;;  %4185 = vlog2.f32 %v2869_v13  ;;  %v3000_v59 = vadd.f32 %v2968_v53, %v2808_v52  ;;  %v2760_v54 = vmul.f32 0.6931472, %v4176_v8  ;;  %v2790_v31 = vadd.f32 %v2728_v28, %v5058_v50 }
 0x3a8   : > { %v2651_v26 = vmul.f32 %v2610_v7, %v5058_v50  ;;  %v2635_v60 = vmul.f32 %v2578_v2, %v5058_v50  ;;  %v2576_v62 = vpop.xlane.xlu2 %2575  ;;  %v4178_v4 = vpop.eup %4177  ;;  %v2950_v42 = vadd.f32 %v2888_v58, %v5058_v50  ;;  %v2807_v7 = vadd.f32 %v2762_v32, %v5058_v50 }
 0x3a9   : > { %v2634_v22 = vmul.f32 %v2576_v62, %v5058_v50  ;;  %v2920_v35 = vmul.f32 0.6931472, %v4178_v4  ;;  %v2967_v2 = vadd.f32 %v2922_v51, %v5058_v50  ;;  %v3016_v18 = vmul.f32 0.5, %v2984_v11 }
 0x3aa   : > { %v3051_v38 = vsub.f32 %v3019_v27, %v2635_v60  ;;  %v3067_v44 = vsub.f32 %v3035_v61, %v2651_v26  ;;  %v2983_v61 = vadd.f32 %v2951_v12, %v2791_v55  ;;  %v3032_v63 = vmul.f32 0.5, %v3000_v59 }
 0x3ab   : > { %v3050_v17 = vsub.f32 %v3018_v15, %v2634_v22  ;;  %v4180_v15 = vpop.eup %4179  ;;  %v2806_v62 = vadd.f32 %v2760_v54, %v5058_v50  ;;  %v2966_v34 = vadd.f32 %v2920_v35, %v5058_v50  ;;  %v2982_v43 = vadd.f32 %v2950_v42, %v2790_v31 }
 0x3ac   : > { %3092 = vmatpush.msra.mxu0 %v3051_v38  ;;  %3112 = vmatpush.msra.mxu1 %v3067_v44  ;;  %v4182_v20 = vpop.eup %4181  ;;  %v3015_v60 = vmul.f32 0.5, %v2983_v61  ;;  %v2999_v38 = vadd.f32 %v2967_v2, %v2807_v7  ;;  %v2726_v44 = vmul.f32 0.6931472, %v4180_v15 }
 0x3ad   : > { %v4184_v23 = vpop.eup %4183  ;;  %v2886_v9 = vmul.f32 0.6931472, %v4182_v20  ;;  %v2998_v45 = vadd.f32 %v2966_v34, %v2806_v62  ;;  %v3014_v46 = vmul.f32 0.5, %v2982_v43 }
 0x3ae   : > { %3093 = vmatpush.msra.mxu0 %v3050_v17  ;;  %v4186_v36 = vpop.eup %4185  ;;  %v2758_v17 = vmul.f32 0.6931472, %v4184_v23  ;;  %v2789_v48 = vadd.f32 %v2726_v44, %v5058_v50 }
 0x3af   : > { %v2608_v24 = vpop.xlane.xlu0 %2607  ;;  %v2574_v47 = vpop.xlane.xlu1 %2573  ;;  %v2918_v0 = vmul.f32 0.6931472, %v4186_v36  ;;  %v2949_v21 = vadd.f32 %v2886_v9, %v5058_v50  ;;  %v3030_v39 = vmul.f32 0.5, %v2998_v45 }
 0x3b0   : > { %v2650_v25 = vmul.f32 %v2608_v24, %v5058_v50  ;;  %v2633_v56 = vmul.f32 %v2574_v47, %v5058_v50  ;;  %v2606_v57 = vpop.xlane.xlu2 %2605 }
 0x3b1   : > { %v2649_v16 = vmul.f32 %v2606_v57, %v5058_v50  ;;  %v2965_v49 = vadd.f32 %v2918_v0, %v5058_v50  ;;  %v2981_v55 = vadd.f32 %v2949_v21, %v2789_v48 }
 0x3b2   : > { %v3049_v3 = vsub.f32 %v3017_v5, %v2633_v56  ;;  %v3066_v19 = vsub.f32 %v3034_v40, %v2650_v25  ;;  %v3031_v5 = vmul.f32 0.5, %v2999_v38  ;;  %v2805_v40 = vadd.f32 %v2758_v17, %v5058_v50  ;;  %v3077_v56 = vld [vmem:[%s4761_s25] sm:$0x3] }
 0x3b3   : > { %v3065_v27 = vsub.f32 %v3033_v29, %v2649_v16  ;;  %v3013_v4 = vmul.f32 0.5, %v2981_v55  ;;  %v3079_v51 = vperm.slane %v3077_v56, 0 }
 0x3b4   : > { %3094 = vmatpush.msra.mxu0 %v3049_v3  ;;  %3113 = vmatpush.msra.mxu1 %v3066_v19  ;;  %v2997_v12 = vadd.f32 %v2965_v49, %v2805_v40  ;;  %v3080_v3 = vperm.slane %v3077_v56, 1 }
 0x3b6   : > { %3114 = vmatpush.msra.mxu1 %v3065_v27  ;;  %v3029_v25 = vmul.f32 0.5, %v2997_v12 }
 0x3b7   : > { %v2604_v10 = vpop.xlane.xlu1 %2603  ;;  %v2572_v26 = vpop.xlane.xlu0 %2571 }
 0x3b8   : > { %v2648_v6 = vmul.f32 %v2604_v10, %v5058_v50  ;;  %v2632_v22 = vmul.f32 %v2572_v26, %v5058_v50  ;;  %v2570_v14 = vpop.xlane.xlu2 %2569 }
 0x3b9   : > { %v2631_v30 = vmul.f32 %v2570_v14, %v5058_v50 }
 0x3ba   : > { %v3048_v1 = vsub.f32 %v3016_v18, %v2632_v22  ;;  %v3064_v41 = vsub.f32 %v3032_v63, %v2648_v6 }
 0x3bb   : > { %v3047_v33 = vsub.f32 %v3015_v60, %v2631_v30 }
 0x3bc   : > { %3095 = vmatpush.msra.mxu0 %v3048_v1  ;;  %3115 = vmatpush.msra.mxu1 %v3064_v41 }
 0x3be   : > { %3096 = vmatpush.msra.mxu0 %v3047_v33 }
 0x3bf   : > { %v2602_v37 = vpop.xlane.xlu0 %2601  ;;  %v2568_v13 = vpop.xlane.xlu1 %2567 }
 0x3c0   : > { %v2647_v29 = vmul.f32 %v2602_v37, %v5058_v50  ;;  %v2630_v52 = vmul.f32 %v2568_v13, %v5058_v50  ;;  %v2600_v53 = vpop.xlane.xlu2 %2599 }
 0x3c1   : > { %v2646_v8 = vmul.f32 %v2600_v53, %v5058_v50 }
 0x3c2   : > { %v3046_v24 = vsub.f32 %v3014_v46, %v2630_v52  ;;  %v3063_v47 = vsub.f32 %v3031_v5, %v2647_v29 }
 0x3c3   : > { %v3062_v28 = vsub.f32 %v3030_v39, %v2646_v8 }
 0x3c4   : > { %3097 = vmatpush.msra.mxu0 %v3046_v24  ;;  %3116 = vmatpush.msra.mxu1 %v3063_v47 }
 0x3c6   : > { %3117 = vmatpush.msra.mxu1 %v3062_v28 }
 0x3c7   : > { %v2598_v57 = vpop.xlane.xlu1 %2597  ;;  %v2566_v58 = vpop.xlane.xlu0 %2565 }
 0x3c8   : > { %v2645_v16 = vmul.f32 %v2598_v57, %v5058_v50  ;;  %v2629_v32 = vmul.f32 %v2566_v58, %v5058_v50 }
 0x3ca   : > { %v3045_v19 = vsub.f32 %v3013_v4, %v2629_v32  ;;  %v3061_v11 = vsub.f32 %v3029_v25, %v2645_v16 }
 0x3cc   : > { %3098 = vmatpush.msra.mxu0 %v3045_v19  ;;  %3118 = vmatpush.msra.mxu1 %v3061_v11 }
 0x3cd   : > { %3099 = vmatmul.f32.vlgmr.msra.gmra.mxu0 %v3079_v51  ;;  %3119 = vmatmul.f32.vlgmr.msra.gmra.mxu1 %v3080_v3 }
 0x44a   : > { %v3100_v59 = vpop.f32.mrf.mxu0  ;;  %v3120_v27 = vpop.f32.mrf.mxu1 }
 0x44b   : > { %v3121_v61 = vadd.f32 %v3120_v27, %v3100_v59 }
 0x44d   : > { %3676 = vpush %v3121_v61 }
 0x47e   : > { %s3677_s10 = spop %3676 }
 0x47f   : > { %v3125_v54 = vstv %s3677_s10 }
 0x480   : > { %3127 = vst [vmem:[%s4777_s15] sm:$0xff] %v3125_v54 }
 0x481 PF: > { %s5835_s12 = sld [smem:[#allocation25_spill]]  ;;  %s3141_s13 = sshll.u32 %s4777_s15, 4  ;;  %s3142_s13 = int_to_ptr.vmem [resolvable:$true] %s3141_s13 }
 0x482   : > { %s5837_s18 = sld [smem:[#allocation38_spill]]  ;;  %s3129_s21 = scalar_lea.sflag [#allocation7], %s4730_s28 }
 0x487   : > { %s3605_s17 = sshll.u32 %s5835_s12, 3 }
 0x488   : > { %s3139_s14 = scalar_lea.hbm %s5837_s18, %s3605_s17  ;;  %s4357_s8 = scalar_lea.hbm %s5837_s18, 16 }
 0x489   : > { %s3143_s26 = sshll.u32 %s3139_s14, 4  ;;  %s3144_s26 = int_to_ptr.hbm [resolvable:$true] %s3143_s26 }
 0x48a   : > { %s4351_s25 = sshra.s32 %s3144_s26, 4  ;;  %s4352_s25 = int_to_ptr.hbm [resolvable:$true] %s4351_s25 }
 0x48b   : > { %s4353_s5 = scalar_lea.hbm %s4352_s25, 8  ;;  %p4358_p6 = scmp.lt.s32.totalorder %s4352_s25, %s5837_s18 }
 0x48c   : > { %p4354_p0 = scmp.ne.s32.totalorder %s4352_s25, %s4353_s5  ;;  %p4359_p12 = scmp.lt.s32.totalorder %s4357_s8, %s4353_s5 }
 0x48e   : > { %p4355_p4 = pnand %p4354_p0, %p4598_p8  ;;  %p4360_p13 = por %p4359_p12, %p4358_p6 }
 0x490   : > { %p4356_p5 = pneg %p4355_p4 }
 0x492   : > { %p4361_p2 = pnand %p4360_p13, %p4356_p5 }
 0x494   : > { %4364 = shalt.err (!%p4361_p2)
}
 0x495   : > { %3688 = dma.vmem_to_hbm [thread:$0]  (%p4598_p8), %s3142_s13, 128, %s3144_s26, %s3129_s21  }
 0x496 PF: > { %s5838_s28 = sld [smem:[#allocation27_spill]] }
 0x497   : > { %s5839_s20 = sld [smem:[#allocation22_spill]] }
 0x49c   : > { %p3711_p1 = scmp.ge.s32.totalorder %s5838_s28, 2 }
 0x49d   : > { %s3155_s15 = sand.u32 1, %s5839_s20  }
 0x49e   : > { %p3707_p3 = pnand %p3711_p1, %p4602_p9  ;;  %s3156_s16 = scalar_lea.sflag [#allocation7], %s3155_s15 }
 0x4a0   : > { %p3708_p10 = pneg %p3707_p3 }
 0x4a2   : > { %4430 = dma.done.wait (%p3708_p10), %s3156_s16, 128  }
 0x4a3   : > { %4432 = vsyncadd (%p3708_p10), %s3156_s16, 4294967168  ;;  %s30_s12 = sadd.s32 1, %s5838_s28   ;;  %s5841_s24 = sld [smem:[#allocation21_spill]] }
 0x4a4   : > { %p27_p11 = scmp.ge.s32.totalorder %s30_s12, 6   ;;  %s5842_s28 = sld [smem:[#allocation32_spill]] }
 0x4a5   : > { %s5843_s7 = sld [smem:[#allocation23_spill]]  ;;  %s5848_s26 = smov %s4439_s27 }
 0x4a6   : > { %s5844_s8 = sld [smem:[#allocation33_spill]]  ;;  %s5850_s29 = smov %s4451_s30 }
 0x4a7   : > { %s5845_s0 = sld [smem:[#allocation26_spill]]  ;;  %s5852_s9 = smov %s4471_s11 }
 0x4a8   : > { %s5846_s10 = sld [smem:[#allocation30_spill]] }
 0x4a9   : > { %s5847_s3 = sld [smem:[#allocation31_spill]]  ;;  %s5849_s27 = smov %s5841_s24 }
 0x4ab   : > { %s5851_s30 = smov %s5843_s7  ;;  %29 = sbr.rel (!%p27_p11) target bundleno = 20 (0x14), region = 152 }
 0x4af   : > { %s5853_s11 = smov %s5847_s3 }
 0x4b0   :  { %3162 = vsyncpa [#allocation6], 1 }
 0x4b1   :  { %3164 = vsyncpa [#allocation6 + $0x1], 1 }
 0x4b2   :  { %3165 = vsyncpa [#allocation9], 1 }
 0x4b3   :  { %3167 = vsyncpa [#allocation9 + $0x1], 1 }
 0x4b4   :  { %3168 = vsyncpa [#allocation12], 1 }
 0x4b5   :  { %3170 = vsyncpa [#allocation12 + $0x1], 1 }
 0x4b6   :  { %3171 = vsyncpa [#allocation7], 1 }
 0x4b7   :  { %3173 = vsyncpa [#allocation7 + $0x1], 1 }

</bundles_post_ra>
